<compile_context>
chip_gen: v7x
topology: tpu7x:2x2x1
jax: 0.10.0
libtpu: 0.0.40
codegen_flags: <defaults>
</compile_context>

<pallas_src>
import functools
import math

import jax
import jax.numpy as jnp
from jax import lax
from jax.experimental import pallas as pl
from jax.experimental.pallas import tpu as pltpu

_LN_EPS = 1e-5


def _layer_norm_f32(x, gamma, beta):
    """LayerNorm over the last axis in f32. gamma/beta are (1, D)."""
    mu = jnp.mean(x, axis=-1, keepdims=True)
    xc = x - mu
    var = jnp.mean(xc * xc, axis=-1, keepdims=True)
    return xc * lax.rsqrt(var + _LN_EPS) * gamma + beta


# ---------------------------------------------------------------------------
# Single fused kernel: one batch element per grid step.
# ---------------------------------------------------------------------------
def _layer_kernel(x_ref, g1_ref, b1_ref, wqkv_ref, wo_ref, bo_ref,
                  g2_ref, be2_ref, w12_ref, b12_ref, w3_ref, b3_ref,
                  o_ref, *, num_head, dim_head, hidden):
    cd = wqkv_ref.dtype                      # compute dtype (bf16) for the MXU
    inner = num_head * dim_head
    scale = dim_head ** -0.5

    x = x_ref[...].astype(jnp.float32)                          # (N, dim) f32

    # ---- LayerNorm1 + fused QKV projection (no bias, as in CrossAttention) --
    h1 = _layer_norm_f32(x, g1_ref[...], b1_ref[...]).astype(cd)
    qkv = jnp.dot(h1, wqkv_ref[...],
                  preferred_element_type=jnp.float32).astype(cd)  # (N, 3*inner)

    # ---- per-head attention, entirely in VMEM (no HBM head transposes) -----
    heads = []
    for h in range(num_head):                # static unroll over heads
        lo = h * dim_head
        q_h = qkv[:, lo:lo + dim_head]                           # (N, Dh) bf16
        k_h = qkv[:, inner + lo:inner + lo + dim_head]
        v_h = qkv[:, 2 * inner + lo:2 * inner + lo + dim_head]
        s = lax.dot_general(q_h, k_h, (((1,), (1,)), ((), ())),
                            preferred_element_type=jnp.float32) * scale
        s = s - jnp.max(s, axis=-1, keepdims=True)
        e = jnp.exp(s)
        p = e / jnp.sum(e, axis=-1, keepdims=True)               # exact softmax
        heads.append(jnp.dot(p.astype(cd), v_h,
                             preferred_element_type=jnp.float32))
    attn = jnp.concatenate(heads, axis=-1).astype(cd)            # (N, inner)

    # TODO(synk): nn.Dropout (to_out / FFN) is identity in eval mode (p=0.0);
    # training-mode dropout would use pltpu.prng_seed / prng_random_bits.

    # ---- attention out-projection + first residual (f32 accumulation) ------
    y = jnp.dot(attn, wo_ref[...], preferred_element_type=jnp.float32)
    y = y + bo_ref[...] + x                                      # (N, dim) f32

    # ---- LayerNorm2 + SwiGLU FFN (fused w12) + second residual -------------
    h2 = _layer_norm_f32(y, g2_ref[...], be2_ref[...]).astype(cd)
    x12 = jnp.dot(h2, w12_ref[...],
                  preferred_element_type=jnp.float32) + b12_ref[...]
    gated = (jax.nn.silu(x12[:, :hidden]) * x12[:, hidden:]).astype(cd)
    out = jnp.dot(gated, w3_ref[...],
                  preferred_element_type=jnp.float32) + b3_ref[...]
    o_ref[...] = (out + y).astype(o_ref.dtype)


# ---------------------------------------------------------------------------
# Wrapper
# ---------------------------------------------------------------------------
def layer_forward(x, params, *, num_head, dim_head, compute_dtype=jnp.bfloat16):
    """x: (B, N, dim) float32. Returns (B, N, dim) in x.dtype."""
    B, N, dim = x.shape
    inner = num_head * dim_head
    hidden = params["w12"].shape[1] // 2
    M = B * N
    cd = jnp.dtype(compute_dtype)
    cdb = cd.itemsize

    x2d = x.reshape(M, dim)

    # Matmul operands in compute dtype; LN params / biases stay f32 as hoisted
    # (1, D) rows so broadcasting happens once per tile.
    ln1_g = params["ln1_g"].reshape(1, dim).astype(jnp.float32)
    ln1_b = params["ln1_b"].reshape(1, dim).astype(jnp.float32)
    wqkv = params["wqkv"].astype(cd)
    wo = params["wo"].astype(cd)
    bo = params["bo"].reshape(1, dim).astype(jnp.float32)
    ln2_g = params["ln2_g"].reshape(1, dim).astype(jnp.float32)
    ln2_b = params["ln2_b"].reshape(1, dim).astype(jnp.float32)
    w12 = params["w12"].astype(cd)
    b12 = params["b12"].reshape(1, 2 * hidden).astype(jnp.float32)
    w3 = params["w3"].astype(cd)
    b3 = params["b3"].reshape(1, dim).astype(jnp.float32)

    kernel = functools.partial(_layer_kernel, num_head=num_head,
                               dim_head=dim_head, hidden=hidden)

    wbytes = (wqkv.size + wo.size + w12.size + w3.size) * cdb
    flops = (2 * M * (dim * 3 * inner + inner * dim
                      + dim * 2 * hidden + hidden * dim)
             + 4 * M * N * inner)

    out2d = pl.pallas_call(
        kernel,
        out_shape=jax.ShapeDtypeStruct((M, dim), x.dtype),
        grid_spec=pltpu.PrefetchScalarGridSpec(
            num_scalar_prefetch=0,
            grid=(B,),
            in_specs=[
                pl.BlockSpec((N, dim), lambda b: (b, 0)),            # x tile
                pl.BlockSpec((1, dim), lambda b: (0, 0)),            # ln1 gamma
                pl.BlockSpec((1, dim), lambda b: (0, 0)),            # ln1 beta
                pl.BlockSpec((dim, 3 * inner), lambda b: (0, 0)),    # wqkv
                pl.BlockSpec((inner, dim), lambda b: (0, 0)),        # wo
                pl.BlockSpec((1, dim), lambda b: (0, 0)),            # bo
                pl.BlockSpec((1, dim), lambda b: (0, 0)),            # ln2 gamma
                pl.BlockSpec((1, dim), lambda b: (0, 0)),            # ln2 beta
                pl.BlockSpec((dim, 2 * hidden), lambda b: (0, 0)),   # w12
                pl.BlockSpec((1, 2 * hidden), lambda b: (0, 0)),     # b12
                pl.BlockSpec((hidden, dim), lambda b: (0, 0)),       # w3
                pl.BlockSpec((1, dim), lambda b: (0, 0)),            # b3
            ],
            out_specs=pl.BlockSpec((N, dim), lambda b: (b, 0)),
        ),
        compiler_params=pltpu.CompilerParams(
            dimension_semantics=("parallel",),
            vmem_limit_bytes=32 * 1024 * 1024,
        ),
        cost_estimate=pl.CostEstimate(
            flops=flops,
            transcendentals=M * num_head * N + M * hidden + 2 * M,
            bytes_accessed=2 * M * dim * 4 + wbytes,
        ),
    )(x2d, ln1_g, ln1_b, wqkv, wo, bo, ln2_g, ln2_b, w12, b12, w3, b3)

    return out2d.reshape(B, N, dim)


# ---------------------------------------------------------------------------
# Parameter init + pure-JAX reference (mirrors the kernel's dtype handling)
# ---------------------------------------------------------------------------
def swiglu_hidden(mlp_dim):
    # SwiGLUFFNFused: hidden_features = (int(hidden * 2 / 3) + 7) // 8 * 8
    return (int(mlp_dim * 2 / 3) + 7) // 8 * 8


def init_params(key, dim, num_head, dim_head, mlp_dim):
    inner = num_head * dim_head
    hidden = swiglu_hidden(mlp_dim)
    ks = jax.random.split(key, 11)
    u = jax.random.uniform
    bq = 1.0 / math.sqrt(dim)       # to_q/k/v and w12: fan_in = dim
    bo_ = 1.0 / math.sqrt(inner)    # to_out:            fan_in = inner
    bw3 = 1.0 / math.sqrt(hidden)   # w3:                fan_in = hidden
    return {
        "ln1_g": 1.0 + 0.1 * u(ks[0], (dim,), jnp.float32, -1, 1),
        "ln1_b": 0.1 * u(ks[1], (dim,), jnp.float32, -1, 1),
        "ln2_g": 1.0 + 0.1 * u(ks[2], (dim,), jnp.float32, -1, 1),
        "ln2_b": 0.1 * u(ks[3], (dim,), jnp.float32, -1, 1),
        "wqkv": u(ks[4], (dim, 3 * inner), jnp.float32, -bq, bq),   # (in, out)
        "wo": u(ks[5], (inner, dim), jnp.float32, -bo_, bo_),
        "bo": u(ks[6], (dim,), jnp.float32, -bo_, bo_),
        "w12": u(ks[7], (dim, 2 * hidden), jnp.float32, -bq, bq),   # fused w1|w2
        "b12": u(ks[8], (2 * hidden,), jnp.float32, -bq, bq),
        "w3": u(ks[9], (hidden, dim), jnp.float32, -bw3, bw3),
        "b3": u(ks[10], (dim,), jnp.float32, -bw3, bw3),
    }


def reference_layer(x, p, *, num_head, dim_head, compute_dtype=jnp.bfloat16):
    cd = compute_dtype
    B, N, dim = x.shape
    inner = num_head * dim_head
    hidden = p["w12"].shape[1] // 2
    M = B * N
    x2 = x.reshape(M, dim).astype(jnp.float32)

    def ln(v, g, b):
        mu = jnp.mean(v, -1, keepdims=True)
        vc = v - mu
        var = jnp.mean(vc * vc, -1, keepdims=True)
        return vc * lax.rsqrt(var + _LN_EPS) * g + b

    h = ln(x2, p["ln1_g"], p["ln1_b"]).astype(cd)
    qkv = jnp.dot(h, p["wqkv"].astype(cd),
                  preferred_element_type=jnp.float32).astype(cd)
    q, k, v = jnp.split(qkv, 3, axis=-1)

    def heads(t):
        return t.reshape(B, N, num_head, dim_head).transpose(0, 2, 1, 3)

    q, k, v = heads(q), heads(k), heads(v)
    s = jnp.einsum("bhnd,bhmd->bhnm", q, k,
                   preferred_element_type=jnp.float32) * (dim_head ** -0.5)
    pa = jax.nn.softmax(s, axis=-1).astype(cd)
    o = jnp.einsum("bhnm,bhmd->bhnd", pa, v,
                   preferred_element_type=jnp.float32).astype(cd)
    o = o.transpose(0, 2, 1, 3).reshape(M, inner)

    y = (jnp.dot(o, p["wo"].astype(cd), preferred_element_type=jnp.float32)
         + p["bo"] + x2)
    h2 = ln(y, p["ln2_g"], p["ln2_b"]).astype(cd)
    x12 = (jnp.dot(h2, p["w12"].astype(cd), preferred_element_type=jnp.float32)
           + p["b12"])
    hid = (jax.nn.silu(x12[:, :hidden]) * x12[:, hidden:]).astype(cd)
    out = (jnp.dot(hid, p["w3"].astype(cd), preferred_element_type=jnp.float32)
           + p["b3"] + y)
    return out.reshape(B, N, dim).astype(x.dtype)


if __name__ == "__main__":
    key = jax.random.PRNGKey(0)
    kx, kp = jax.random.split(key)

    # Small but lane-aligned shapes: dim, inner (=num_head*dim_head) and the
    # SwiGLU hidden width are all multiples of 128.
    B, N = 2, 128
    dim, num_head, dim_head, mlp_dim = 128, 4, 32, 192   # SwiGLU hidden -> 128

    x = jax.random.normal(kx, (B, N, dim), jnp.float32)
    params = init_params(kp, dim, num_head, dim_head, mlp_dim)

    out = layer_forward(x, params, num_head=num_head, dim_head=dim_head,
                        compute_dtype=jnp.bfloat16)
    out = jax.block_until_ready(out)

    ref = reference_layer(x, params, num_head=num_head, dim_head=dim_head,
                          compute_dtype=jnp.bfloat16)
    assert out.shape == (B, N, dim)
    max_err = float(jnp.max(jnp.abs(out - ref)))
    assert jnp.allclose(out, ref, atol=5e-2, rtol=5e-2), f"max abs err {max_err}"

    print("KERNEL_OK")
</pallas_src>

<mosaic_0001>
module attributes {stable_mosaic.version = 11 : i64} {
  func.func @_layer_kernel(%arg0: i32, %arg1: memref<128x128xf32, #tpu.memory_space<vmem>>, %arg2: memref<1x128xf32, #tpu.memory_space<vmem>>, %arg3: memref<1x128xf32, #tpu.memory_space<vmem>>, %arg4: memref<128x384xbf16, #tpu.memory_space<vmem>>, %arg5: memref<128x128xbf16, #tpu.memory_space<vmem>>, %arg6: memref<1x128xf32, #tpu.memory_space<vmem>>, %arg7: memref<1x128xf32, #tpu.memory_space<vmem>>, %arg8: memref<1x128xf32, #tpu.memory_space<vmem>>, %arg9: memref<128x256xbf16, #tpu.memory_space<vmem>>, %arg10: memref<1x256xf32, #tpu.memory_space<vmem>>, %arg11: memref<128x128xbf16, #tpu.memory_space<vmem>>, %arg12: memref<1x128xf32, #tpu.memory_space<vmem>>, %arg13: memref<128x128xf32, #tpu.memory_space<vmem>>) attributes {dimension_semantics = [#tpu.dimension_semantics<parallel>], iteration_bounds = array<i64: 2>, scalar_prefetch = 0 : i64, scratch_operands = 0 : i64, tpu.core_type = #tpu.core_type<tc>, window_params = [{transform_indices = @transform_0, window_bounds = array<i64: 128, 128>}, {pipeline_mode = #tpu.pipeline_mode<synchronous>, transform_indices = @transform_1, window_bounds = array<i64: 1, 128>}, {pipeline_mode = #tpu.pipeline_mode<synchronous>, transform_indices = @transform_2, window_bounds = array<i64: 1, 128>}, {pipeline_mode = #tpu.pipeline_mode<synchronous>, transform_indices = @transform_3, window_bounds = array<i64: 128, 384>}, {pipeline_mode = #tpu.pipeline_mode<synchronous>, transform_indices = @transform_4, window_bounds = array<i64: 128, 128>}, {pipeline_mode = #tpu.pipeline_mode<synchronous>, transform_indices = @transform_5, window_bounds = array<i64: 1, 128>}, {pipeline_mode = #tpu.pipeline_mode<synchronous>, transform_indices = @transform_6, window_bounds = array<i64: 1, 128>}, {pipeline_mode = #tpu.pipeline_mode<synchronous>, transform_indices = @transform_7, window_bounds = array<i64: 1, 128>}, {pipeline_mode = #tpu.pipeline_mode<synchronous>, transform_indices = @transform_8, window_bounds = array<i64: 128, 256>}, {pipeline_mode = #tpu.pipeline_mode<synchronous>, transform_indices = @transform_9, window_bounds = array<i64: 1, 256>}, {pipeline_mode = #tpu.pipeline_mode<synchronous>, transform_indices = @transform_10, window_bounds = array<i64: 128, 128>}, {pipeline_mode = #tpu.pipeline_mode<synchronous>, transform_indices = @transform_11, window_bounds = array<i64: 1, 128>}, {transform_indices = @transform_12, window_bounds = array<i64: 128, 128>}]} {
    %c0 = arith.constant 0 : index
    %c0_0 = arith.constant 0 : index
    %0 = vector.load %arg1[%c0, %c0_0] : memref<128x128xf32, #tpu.memory_space<vmem>>, vector<128x128xf32>
    %c0_1 = arith.constant 0 : index
    %c0_2 = arith.constant 0 : index
    %1 = vector.load %arg2[%c0_1, %c0_2] : memref<1x128xf32, #tpu.memory_space<vmem>>, vector<1x128xf32>
    %c0_3 = arith.constant 0 : index
    %c0_4 = arith.constant 0 : index
    %2 = vector.load %arg3[%c0_3, %c0_4] : memref<1x128xf32, #tpu.memory_space<vmem>>, vector<1x128xf32>
    %cst = arith.constant dense<0.000000e+00> : vector<128xf32>
    %3 = vector.multi_reduction <add>, %0, %cst [1] : vector<128x128xf32> to vector<128xf32>
    %4 = vector.shape_cast %3 : vector<128xf32> to vector<128x1xf32>
    %cst_5 = arith.constant 1.280000e+02 : f32
    %5 = vector.broadcast %cst_5 : f32 to vector<128x1xf32>
    %6 = arith.divf %4, %5 : vector<128x1xf32>
    %7 = vector.broadcast %6 : vector<128x1xf32> to vector<128x128xf32>
    %8 = arith.subf %0, %7 : vector<128x128xf32>
    %9 = arith.mulf %8, %8 : vector<128x128xf32>
    %cst_6 = arith.constant dense<0.000000e+00> : vector<128xf32>
    %10 = vector.multi_reduction <add>, %9, %cst_6 [1] : vector<128x128xf32> to vector<128xf32>
    %11 = vector.shape_cast %10 : vector<128xf32> to vector<128x1xf32>
    %cst_7 = arith.constant 1.280000e+02 : f32
    %12 = vector.broadcast %cst_7 : f32 to vector<128x1xf32>
    %13 = arith.divf %11, %12 : vector<128x1xf32>
    %cst_8 = arith.constant 9.99999974E-6 : f32
    %14 = vector.broadcast %cst_8 : f32 to vector<128x1xf32>
    %15 = arith.addf %13, %14 : vector<128x1xf32>
    %16 = math.rsqrt %15 : vector<128x1xf32>
    %17 = vector.broadcast %16 : vector<128x1xf32> to vector<128x128xf32>
    %18 = arith.mulf %8, %17 : vector<128x128xf32>
    %19 = vector.broadcast %1 : vector<1x128xf32> to vector<128x128xf32>
    %20 = arith.mulf %18, %19 : vector<128x128xf32>
    %21 = vector.broadcast %2 : vector<1x128xf32> to vector<128x128xf32>
    %22 = arith.addf %20, %21 : vector<128x128xf32>
    %23 = arith.truncf %22 : vector<128x128xf32> to vector<128x128xbf16>
    %c0_9 = arith.constant 0 : index
    %c0_10 = arith.constant 0 : index
    %24 = vector.load %arg4[%c0_9, %c0_10] : memref<128x384xbf16, #tpu.memory_space<vmem>>, vector<128x384xbf16>
    %cst_11 = arith.constant dense<0.000000e+00> : vector<128x384xf32>
    %25 = tpu.matmul %23, %24, %cst_11 {dimension_numbers = #tpu.dot_dimension_numbers<[1], [0], [0], [1], [0, 0, 1, 1], [], []>} : vector<128x128xbf16>, vector<128x384xbf16>, vector<128x384xf32> -> vector<128x384xf32>
    %26 = arith.truncf %25 : vector<128x384xf32> to vector<128x384xbf16>
    %27 = vector.extract_strided_slice %26 {offsets = [0, 0], sizes = [128, 32], strides = [1, 1]} : vector<128x384xbf16> to vector<128x32xbf16>
    %28 = vector.extract_strided_slice %26 {offsets = [0, 128], sizes = [128, 32], strides = [1, 1]} : vector<128x384xbf16> to vector<128x32xbf16>
    %29 = vector.extract_strided_slice %26 {offsets = [0, 256], sizes = [128, 32], strides = [1, 1]} : vector<128x384xbf16> to vector<128x32xbf16>
    %cst_12 = arith.constant dense<0.000000e+00> : vector<128x128xf32>
    %30 = tpu.matmul %27, %28, %cst_12 {dimension_numbers = #tpu.dot_dimension_numbers<[1], [1], [0], [0], [0, 0, 1, 0], [], []>} : vector<128x32xbf16>, vector<128x32xbf16>, vector<128x128xf32> -> vector<128x128xf32>
    %cst_13 = arith.constant 0.176776692 : f32
    %31 = vector.broadcast %cst_13 : f32 to vector<128x128xf32>
    %32 = arith.mulf %30, %31 : vector<128x128xf32>
    %cst_14 = arith.constant dense<0xFF800000> : vector<128xf32>
    %33 = vector.multi_reduction <maximumf>, %32, %cst_14 [1] : vector<128x128xf32> to vector<128xf32>
    %34 = vector.shape_cast %33 : vector<128xf32> to vector<128x1xf32>
    %35 = vector.broadcast %34 : vector<128x1xf32> to vector<128x128xf32>
    %36 = arith.subf %32, %35 : vector<128x128xf32>
    %37 = math.exp %36 : vector<128x128xf32>
    %cst_15 = arith.constant dense<0.000000e+00> : vector<128xf32>
    %38 = vector.multi_reduction <add>, %37, %cst_15 [1] : vector<128x128xf32> to vector<128xf32>
    %39 = vector.shape_cast %38 : vector<128xf32> to vector<128x1xf32>
    %40 = vector.broadcast %39 : vector<128x1xf32> to vector<128x128xf32>
    %41 = arith.divf %37, %40 : vector<128x128xf32>
    %42 = arith.truncf %41 : vector<128x128xf32> to vector<128x128xbf16>
    %cst_16 = arith.constant dense<0.000000e+00> : vector<128x32xf32>
    %43 = tpu.matmul %42, %29, %cst_16 {dimension_numbers = #tpu.dot_dimension_numbers<[1], [0], [0], [1], [0, 0, 1, 1], [], []>} : vector<128x128xbf16>, vector<128x32xbf16>, vector<128x32xf32> -> vector<128x32xf32>
    %44 = vector.extract_strided_slice %26 {offsets = [0, 32], sizes = [128, 32], strides = [1, 1]} : vector<128x384xbf16> to vector<128x32xbf16>
    %45 = vector.extract_strided_slice %26 {offsets = [0, 160], sizes = [128, 32], strides = [1, 1]} : vector<128x384xbf16> to vector<128x32xbf16>
    %46 = vector.extract_strided_slice %26 {offsets = [0, 288], sizes = [128, 32], strides = [1, 1]} : vector<128x384xbf16> to vector<128x32xbf16>
    %cst_17 = arith.constant dense<0.000000e+00> : vector<128x128xf32>
    %47 = tpu.matmul %44, %45, %cst_17 {dimension_numbers = #tpu.dot_dimension_numbers<[1], [1], [0], [0], [0, 0, 1, 0], [], []>} : vector<128x32xbf16>, vector<128x32xbf16>, vector<128x128xf32> -> vector<128x128xf32>
    %cst_18 = arith.constant 0.176776692 : f32
    %48 = vector.broadcast %cst_18 : f32 to vector<128x128xf32>
    %49 = arith.mulf %47, %48 : vector<128x128xf32>
    %cst_19 = arith.constant dense<0xFF800000> : vector<128xf32>
    %50 = vector.multi_reduction <maximumf>, %49, %cst_19 [1] : vector<128x128xf32> to vector<128xf32>
    %51 = vector.shape_cast %50 : vector<128xf32> to vector<128x1xf32>
    %52 = vector.broadcast %51 : vector<128x1xf32> to vector<128x128xf32>
    %53 = arith.subf %49, %52 : vector<128x128xf32>
    %54 = math.exp %53 : vector<128x128xf32>
    %cst_20 = arith.constant dense<0.000000e+00> : vector<128xf32>
    %55 = vector.multi_reduction <add>, %54, %cst_20 [1] : vector<128x128xf32> to vector<128xf32>
    %56 = vector.shape_cast %55 : vector<128xf32> to vector<128x1xf32>
    %57 = vector.broadcast %56 : vector<128x1xf32> to vector<128x128xf32>
    %58 = arith.divf %54, %57 : vector<128x128xf32>
    %59 = arith.truncf %58 : vector<128x128xf32> to vector<128x128xbf16>
    %cst_21 = arith.constant dense<0.000000e+00> : vector<128x32xf32>
    %60 = tpu.matmul %59, %46, %cst_21 {dimension_numbers = #tpu.dot_dimension_numbers<[1], [0], [0], [1], [0, 0, 1, 1], [], []>} : vector<128x128xbf16>, vector<128x32xbf16>, vector<128x32xf32> -> vector<128x32xf32>
    %61 = vector.extract_strided_slice %26 {offsets = [0, 64], sizes = [128, 32], strides = [1, 1]} : vector<128x384xbf16> to vector<128x32xbf16>
    %62 = vector.extract_strided_slice %26 {offsets = [0, 192], sizes = [128, 32], strides = [1, 1]} : vector<128x384xbf16> to vector<128x32xbf16>
    %63 = vector.extract_strided_slice %26 {offsets = [0, 320], sizes = [128, 32], strides = [1, 1]} : vector<128x384xbf16> to vector<128x32xbf16>
    %cst_22 = arith.constant dense<0.000000e+00> : vector<128x128xf32>
    %64 = tpu.matmul %61, %62, %cst_22 {dimension_numbers = #tpu.dot_dimension_numbers<[1], [1], [0], [0], [0, 0, 1, 0], [], []>} : vector<128x32xbf16>, vector<128x32xbf16>, vector<128x128xf32> -> vector<128x128xf32>
    %cst_23 = arith.constant 0.176776692 : f32
    %65 = vector.broadcast %cst_23 : f32 to vector<128x128xf32>
    %66 = arith.mulf %64, %65 : vector<128x128xf32>
    %cst_24 = arith.constant dense<0xFF800000> : vector<128xf32>
    %67 = vector.multi_reduction <maximumf>, %66, %cst_24 [1] : vector<128x128xf32> to vector<128xf32>
    %68 = vector.shape_cast %67 : vector<128xf32> to vector<128x1xf32>
    %69 = vector.broadcast %68 : vector<128x1xf32> to vector<128x128xf32>
    %70 = arith.subf %66, %69 : vector<128x128xf32>
    %71 = math.exp %70 : vector<128x128xf32>
    %cst_25 = arith.constant dense<0.000000e+00> : vector<128xf32>
    %72 = vector.multi_reduction <add>, %71, %cst_25 [1] : vector<128x128xf32> to vector<128xf32>
    %73 = vector.shape_cast %72 : vector<128xf32> to vector<128x1xf32>
    %74 = vector.broadcast %73 : vector<128x1xf32> to vector<128x128xf32>
    %75 = arith.divf %71, %74 : vector<128x128xf32>
    %76 = arith.truncf %75 : vector<128x128xf32> to vector<128x128xbf16>
    %cst_26 = arith.constant dense<0.000000e+00> : vector<128x32xf32>
    %77 = tpu.matmul %76, %63, %cst_26 {dimension_numbers = #tpu.dot_dimension_numbers<[1], [0], [0], [1], [0, 0, 1, 1], [], []>} : vector<128x128xbf16>, vector<128x32xbf16>, vector<128x32xf32> -> vector<128x32xf32>
    %78 = vector.extract_strided_slice %26 {offsets = [0, 96], sizes = [128, 32], strides = [1, 1]} : vector<128x384xbf16> to vector<128x32xbf16>
    %79 = vector.extract_strided_slice %26 {offsets = [0, 224], sizes = [128, 32], strides = [1, 1]} : vector<128x384xbf16> to vector<128x32xbf16>
    %80 = vector.extract_strided_slice %26 {offsets = [0, 352], sizes = [128, 32], strides = [1, 1]} : vector<128x384xbf16> to vector<128x32xbf16>
    %cst_27 = arith.constant dense<0.000000e+00> : vector<128x128xf32>
    %81 = tpu.matmul %78, %79, %cst_27 {dimension_numbers = #tpu.dot_dimension_numbers<[1], [1], [0], [0], [0, 0, 1, 0], [], []>} : vector<128x32xbf16>, vector<128x32xbf16>, vector<128x128xf32> -> vector<128x128xf32>
    %cst_28 = arith.constant 0.176776692 : f32
    %82 = vector.broadcast %cst_28 : f32 to vector<128x128xf32>
    %83 = arith.mulf %81, %82 : vector<128x128xf32>
    %cst_29 = arith.constant dense<0xFF800000> : vector<128xf32>
    %84 = vector.multi_reduction <maximumf>, %83, %cst_29 [1] : vector<128x128xf32> to vector<128xf32>
    %85 = vector.shape_cast %84 : vector<128xf32> to vector<128x1xf32>
    %86 = vector.broadcast %85 : vector<128x1xf32> to vector<128x128xf32>
    %87 = arith.subf %83, %86 : vector<128x128xf32>
    %88 = math.exp %87 : vector<128x128xf32>
    %cst_30 = arith.constant dense<0.000000e+00> : vector<128xf32>
    %89 = vector.multi_reduction <add>, %88, %cst_30 [1] : vector<128x128xf32> to vector<128xf32>
    %90 = vector.shape_cast %89 : vector<128xf32> to vector<128x1xf32>
    %91 = vector.broadcast %90 : vector<128x1xf32> to vector<128x128xf32>
    %92 = arith.divf %88, %91 : vector<128x128xf32>
    %93 = arith.truncf %92 : vector<128x128xf32> to vector<128x128xbf16>
    %cst_31 = arith.constant dense<0.000000e+00> : vector<128x32xf32>
    %94 = tpu.matmul %93, %80, %cst_31 {dimension_numbers = #tpu.dot_dimension_numbers<[1], [0], [0], [1], [0, 0, 1, 1], [], []>} : vector<128x128xbf16>, vector<128x32xbf16>, vector<128x32xf32> -> vector<128x32xf32>
    %95 = tpu.concatenate %43, %60, %77, %94 in 1 : vector<128x32xf32>, vector<128x32xf32>, vector<128x32xf32>, vector<128x32xf32> -> vector<128x128xf32>
    %96 = arith.truncf %95 : vector<128x128xf32> to vector<128x128xbf16>
    %c0_32 = arith.constant 0 : index
    %c0_33 = arith.constant 0 : index
    %97 = vector.load %arg5[%c0_32, %c0_33] : memref<128x128xbf16, #tpu.memory_space<vmem>>, vector<128x128xbf16>
    %cst_34 = arith.constant dense<0.000000e+00> : vector<128x128xf32>
    %98 = tpu.matmul %96, %97, %cst_34 {dimension_numbers = #tpu.dot_dimension_numbers<[1], [0], [0], [1], [0, 0, 1, 1], [], []>} : vector<128x128xbf16>, vector<128x128xbf16>, vector<128x128xf32> -> vector<128x128xf32>
    %c0_35 = arith.constant 0 : index
    %c0_36 = arith.constant 0 : index
    %99 = vector.load %arg6[%c0_35, %c0_36] : memref<1x128xf32, #tpu.memory_space<vmem>>, vector<1x128xf32>
    %100 = vector.broadcast %99 : vector<1x128xf32> to vector<128x128xf32>
    %101 = arith.addf %98, %100 : vector<128x128xf32>
    %102 = arith.addf %101, %0 : vector<128x128xf32>
    %c0_37 = arith.constant 0 : index
    %c0_38 = arith.constant 0 : index
    %103 = vector.load %arg7[%c0_37, %c0_38] : memref<1x128xf32, #tpu.memory_space<vmem>>, vector<1x128xf32>
    %c0_39 = arith.constant 0 : index
    %c0_40 = arith.constant 0 : index
    %104 = vector.load %arg8[%c0_39, %c0_40] : memref<1x128xf32, #tpu.memory_space<vmem>>, vector<1x128xf32>
    %cst_41 = arith.constant dense<0.000000e+00> : vector<128xf32>
    %105 = vector.multi_reduction <add>, %102, %cst_41 [1] : vector<128x128xf32> to vector<128xf32>
    %106 = vector.shape_cast %105 : vector<128xf32> to vector<128x1xf32>
    %cst_42 = arith.constant 1.280000e+02 : f32
    %107 = vector.broadcast %cst_42 : f32 to vector<128x1xf32>
    %108 = arith.divf %106, %107 : vector<128x1xf32>
    %109 = vector.broadcast %108 : vector<128x1xf32> to vector<128x128xf32>
    %110 = arith.subf %102, %109 : vector<128x128xf32>
    %111 = arith.mulf %110, %110 : vector<128x128xf32>
    %cst_43 = arith.constant dense<0.000000e+00> : vector<128xf32>
    %112 = vector.multi_reduction <add>, %111, %cst_43 [1] : vector<128x128xf32> to vector<128xf32>
    %113 = vector.shape_cast %112 : vector<128xf32> to vector<128x1xf32>
    %cst_44 = arith.constant 1.280000e+02 : f32
    %114 = vector.broadcast %cst_44 : f32 to vector<128x1xf32>
    %115 = arith.divf %113, %114 : vector<128x1xf32>
    %cst_45 = arith.constant 9.99999974E-6 : f32
    %116 = vector.broadcast %cst_45 : f32 to vector<128x1xf32>
    %117 = arith.addf %115, %116 : vector<128x1xf32>
    %118 = math.rsqrt %117 : vector<128x1xf32>
    %119 = vector.broadcast %118 : vector<128x1xf32> to vector<128x128xf32>
    %120 = arith.mulf %110, %119 : vector<128x128xf32>
    %121 = vector.broadcast %103 : vector<1x128xf32> to vector<128x128xf32>
    %122 = arith.mulf %120, %121 : vector<128x128xf32>
    %123 = vector.broadcast %104 : vector<1x128xf32> to vector<128x128xf32>
    %124 = arith.addf %122, %123 : vector<128x128xf32>
    %125 = arith.truncf %124 : vector<128x128xf32> to vector<128x128xbf16>
    %c0_46 = arith.constant 0 : index
    %c0_47 = arith.constant 0 : index
    %126 = vector.load %arg9[%c0_46, %c0_47] : memref<128x256xbf16, #tpu.memory_space<vmem>>, vector<128x256xbf16>
    %cst_48 = arith.constant dense<0.000000e+00> : vector<128x256xf32>
    %127 = tpu.matmul %125, %126, %cst_48 {dimension_numbers = #tpu.dot_dimension_numbers<[1], [0], [0], [1], [0, 0, 1, 1], [], []>} : vector<128x128xbf16>, vector<128x256xbf16>, vector<128x256xf32> -> vector<128x256xf32>
    %c0_49 = arith.constant 0 : index
    %c0_50 = arith.constant 0 : index
    %128 = vector.load %arg10[%c0_49, %c0_50] : memref<1x256xf32, #tpu.memory_space<vmem>>, vector<1x256xf32>
    %129 = vector.broadcast %128 : vector<1x256xf32> to vector<128x256xf32>
    %130 = arith.addf %127, %129 : vector<128x256xf32>
    %131 = vector.extract_strided_slice %130 {offsets = [0, 0], sizes = [128, 128], strides = [1, 1]} : vector<128x256xf32> to vector<128x128xf32>
    %132 = arith.negf %131 : vector<128x128xf32>
    %133 = math.exp %132 : vector<128x128xf32>
    %cst_51 = arith.constant 1.000000e+00 : f32
    %134 = vector.broadcast %cst_51 : f32 to vector<128x128xf32>
    %135 = arith.addf %134, %133 : vector<128x128xf32>
    %136 = arith.divf %134, %135 : vector<128x128xf32>
    %137 = arith.mulf %131, %136 : vector<128x128xf32>
    %138 = vector.extract_strided_slice %130 {offsets = [0, 128], sizes = [128, 128], strides = [1, 1]} : vector<128x256xf32> to vector<128x128xf32>
    %139 = arith.mulf %137, %138 : vector<128x128xf32>
    %140 = arith.truncf %139 : vector<128x128xf32> to vector<128x128xbf16>
    %c0_52 = arith.constant 0 : index
    %c0_53 = arith.constant 0 : index
    %141 = vector.load %arg11[%c0_52, %c0_53] : memref<128x128xbf16, #tpu.memory_space<vmem>>, vector<128x128xbf16>
    %cst_54 = arith.constant dense<0.000000e+00> : vector<128x128xf32>
    %142 = tpu.matmul %140, %141, %cst_54 {dimension_numbers = #tpu.dot_dimension_numbers<[1], [0], [0], [1], [0, 0, 1, 1], [], []>} : vector<128x128xbf16>, vector<128x128xbf16>, vector<128x128xf32> -> vector<128x128xf32>
    %c0_55 = arith.constant 0 : index
    %c0_56 = arith.constant 0 : index
    %143 = vector.load %arg12[%c0_55, %c0_56] : memref<1x128xf32, #tpu.memory_space<vmem>>, vector<1x128xf32>
    %144 = vector.broadcast %143 : vector<1x128xf32> to vector<128x128xf32>
    %145 = arith.addf %142, %144 : vector<128x128xf32>
    %146 = arith.addf %145, %102 : vector<128x128xf32>
    %c0_57 = arith.constant 0 : index
    %c0_58 = arith.constant 0 : index
    %147 = vector.load %arg13[%c0_57, %c0_58] : memref<128x128xf32, #tpu.memory_space<vmem>>, vector<128x128xf32>
    tpu.vector_store %arg13[%c0_57, %c0_58], %146 {strides = array<i32>} : memref<128x128xf32, #tpu.memory_space<vmem>>, vector<128x128xf32>,
    return
  }
  func.func @transform_0(%arg0: i32) -> (i32, i32) {
    %c0_i32 = arith.constant 0 : i32
    %c0_i32_0 = arith.constant 0 : i32
    return %arg0, %c0_i32 : i32, i32
  }
  func.func @transform_1(%arg0: i32) -> (i32, i32) {
    %c0_i32 = arith.constant 0 : i32
    %c0_i32_0 = arith.constant 0 : i32
    %c0_i32_1 = arith.constant 0 : i32
    return %c0_i32, %c0_i32_0 : i32, i32
  }
  func.func @transform_2(%arg0: i32) -> (i32, i32) {
    %c0_i32 = arith.constant 0 : i32
    %c0_i32_0 = arith.constant 0 : i32
    %c0_i32_1 = arith.constant 0 : i32
    return %c0_i32, %c0_i32_0 : i32, i32
  }
  func.func @transform_3(%arg0: i32) -> (i32, i32) {
    %c0_i32 = arith.constant 0 : i32
    %c0_i32_0 = arith.constant 0 : i32
    %c0_i32_1 = arith.constant 0 : i32
    return %c0_i32, %c0_i32_0 : i32, i32
  }
  func.func @transform_4(%arg0: i32) -> (i32, i32) {
    %c0_i32 = arith.constant 0 : i32
    %c0_i32_0 = arith.constant 0 : i32
    %c0_i32_1 = arith.constant 0 : i32
    return %c0_i32, %c0_i32_0 : i32, i32
  }
  func.func @transform_5(%arg0: i32) -> (i32, i32) {
    %c0_i32 = arith.constant 0 : i32
    %c0_i32_0 = arith.constant 0 : i32
    %c0_i32_1 = arith.constant 0 : i32
    return %c0_i32, %c0_i32_0 : i32, i32
  }
  func.func @transform_6(%arg0: i32) -> (i32, i32) {
    %c0_i32 = arith.constant 0 : i32
    %c0_i32_0 = arith.constant 0 : i32
    %c0_i32_1 = arith.constant 0 : i32
    return %c0_i32, %c0_i32_0 : i32, i32
  }
  func.func @transform_7(%arg0: i32) -> (i32, i32) {
    %c0_i32 = arith.constant 0 : i32
    %c0_i32_0 = arith.constant 0 : i32
    %c0_i32_1 = arith.constant 0 : i32
    return %c0_i32, %c0_i32_0 : i32, i32
  }
  func.func @transform_8(%arg0: i32) -> (i32, i32) {
    %c0_i32 = arith.constant 0 : i32
    %c0_i32_0 = arith.constant 0 : i32
    %c0_i32_1 = arith.constant 0 : i32
    return %c0_i32, %c0_i32_0 : i32, i32
  }
  func.func @transform_9(%arg0: i32) -> (i32, i32) {
    %c0_i32 = arith.constant 0 : i32
    %c0_i32_0 = arith.constant 0 : i32
    %c0_i32_1 = arith.constant 0 : i32
    return %c0_i32, %c0_i32_0 : i32, i32
  }
  func.func @transform_10(%arg0: i32) -> (i32, i32) {
    %c0_i32 = arith.constant 0 : i32
    %c0_i32_0 = arith.constant 0 : i32
    %c0_i32_1 = arith.constant 0 : i32
    return %c0_i32, %c0_i32_0 : i32, i32
  }
  func.func @transform_11(%arg0: i32) -> (i32, i32) {
    %c0_i32 = arith.constant 0 : i32
    %c0_i32_0 = arith.constant 0 : i32
    %c0_i32_1 = arith.constant 0 : i32
    return %c0_i32, %c0_i32_0 : i32, i32
  }
  func.func @transform_12(%arg0: i32) -> (i32, i32) {
    %c0_i32 = arith.constant 0 : i32
    %c0_i32_0 = arith.constant 0 : i32
    return %arg0, %c0_i32 : i32, i32
  }
}

</mosaic_0001>

<bundles_post_ra>
// kernel: tpu_custom_call.1
= control target key start
LH: loop header
LB: loop body
LE: loop exit
PB: predicated region body
PF: predicated region fallthrough
CT: control target
= control target key end

     0   :  { %s7843_s0 = inlined_call_operand.hbm [shape: f32[256,128], index: 0, kind: input, shape index: {}]   ;;  %s7844_s1 = inlined_call_operand.vmem [shape: f32[1,128], index: 1, kind: input, shape index: {}]   ;;  %s7845_s2 = inlined_call_operand.vmem [shape: f32[1,128], index: 2, kind: input, shape index: {}]   ;;  %s7846_s3 = inlined_call_operand.hbm [shape: bf16[128,384], index: 3, kind: input, shape index: {}]   ;;  %s7847_s4 = inlined_call_operand.hbm [shape: bf16[128,128], index: 4, kind: input, shape index: {}]   ;;  %s7848_s5 = inlined_call_operand.vmem [shape: f32[1,128], index: 5, kind: input, shape index: {}]   ;;  %s7849_s6 = inlined_call_operand.vmem [shape: f32[1,128], index: 6, kind: input, shape index: {}]   ;;  %s7850_s7 = inlined_call_operand.vmem [shape: f32[1,128], index: 7, kind: input, shape index: {}]   ;;  %s7851_s8 = inlined_call_operand.hbm [shape: bf16[128,256], index: 8, kind: input, shape index: {}]   ;;  %s7852_s9 = inlined_call_operand.vmem [shape: f32[1,256], index: 9, kind: input, shape index: {}]   ;;  %s7853_s10 = inlined_call_operand.hbm [shape: bf16[128,128], index: 10, kind: input, shape index: {}]   ;;  %s7854_s11 = inlined_call_operand.vmem [shape: f32[1,128], index: 11, kind: input, shape index: {}]   ;;  %s7855_s12 = inlined_call_operand.hbm [shape: f32[256,128], index: 12, kind: output, shape index: {}]  }
   0x1   :  { %7872 = sst [smem:[#allocation40_spill]] %s7846_s3 }
   0x2   :  { %7873 = sst [smem:[#allocation41_spill]] %s7852_s9 }
   0x3   :  { %7874 = sst [smem:[#allocation42_spill]] %s7854_s11 }
   0x4   :  { %7875 = sst [smem:[#allocation43_spill]] %s7855_s12 }
   0x5   :  { %17 = vsyncpa [#allocation3], 0 }
   0x6   :  { %19 = vsyncpa [#allocation3 + $0x1], 0 }
   0x7   :  { %20 = vsyncpa [#allocation6], 0 }
   0x8   :  { %21 = vsyncpa [#allocation9], 0 }
   0x9   :  { %22 = vsyncpa [#allocation4], 0 }
   0xa   :  { %24 = vsyncpa [#allocation4 + $0x1], 0  ;;  %s5999_s21 = smov 0   ;;  %s6001_s22 = smov 0  }
   0xb   :  { %s6003_s23 = smov 0   ;;  %s6005_s24 = smov 0  }
   0xc LB: > { %7876 = sst [smem:[#allocation16_spill]] %s5902_s21  ;;  %s6020_s25 = sadd.s32 4294967295, %s5914_s24   ;;  %s5914_s24 = sphi %s6005_s24, %s7965_s24   ;;  %s5910_s23 = sphi %s6003_s23, %s7964_s23   ;;  %s5906_s22 = sphi %s6001_s22, %s7963_s22   ;;  %s5902_s21 = sphi %s5999_s21, %s7962_s21  }
   0xd   : > { %s4313_s26 = sadd.s32 4294967294, %s5914_s24   ;;  %p50_p0 = scmp.ne.s32.totalorder %s5906_s22, %s5902_s21 }
   0xe   : > { %p7857_p1 = scmp.eq.s32.totalorder %s6020_s25, 0  ;;  %p311_p3 = scmp.eq.s32.totalorder %s4313_s26, 1 }
   0xf   : > { %p4314_p5 = scmp.ge.s32.totalorder %s5914_s24, 1  ;;  %p318_p7 = scmp.lt.s32.totalorder %s5914_s24, 3 }
  0x10   : > { %p6029_p4 = por %p7857_p1, %p50_p0  ;;  %p6034_p6 = por %p311_p3, %p50_p0 }
  0x11   : > { %p6039_p8 = pnand %p4314_p5, %p318_p7  ;;  %s5916_s30 = smov [#allocation5]  }
  0x12   : > { %s7877_s27 = scalar_select %p6029_p4, 1, 0 }
  0x13   : > { %s7878_s28 = scalar_select %p6034_p6, 1, 0 }
  0x14   : > { %s7880_s29 = scalar_select %p6039_p8, 1, 0 }
  0x15   : > { %7879 = sst [smem:[#allocation17_spill]] %s7878_s28  ;;  %s336_s13 = sshll.u32 %s5916_s30, 4  ;;  %s6043_s13 = int_to_ptr.vmem [resolvable:$true] %s336_s13 }
  0x16   : > { %p5027_p9 = pneg %p6039_p8  ;;  %s5917_s15 = smov [#allocation8]  }
  0x17   : > { %s371_s16 = sshll.u32 %s5917_s15, 4  ;;  %s7882_s3 = sld [smem:[#allocation40_spill]]  ;;  %s6054_s16 = int_to_ptr.vmem [resolvable:$true] %s371_s16 }
  0x18   : > { %p6050_p11 = pnand %p5027_p9, %p7857_p1 }
  0x1a   : > { %p6064_p13 = pneg %p6050_p11 }
  0x1d   : > { %s5698_s19 = scalar_lea.hbm %s7882_s3, 3072 }
  0x1e   : > { %p5699_p12 = scmp.ne.s32.totalorder %s7882_s3, %s5698_s19  ;;  %p5705_p5 = scmp.lt.u32.totalorder %s5698_s19, %s7882_s3 }
  0x20   : > { %p5701_p0 = pnand %p6064_p13, %p5699_p12 }
  0x22   : > { %p5702_p3 = pneg %p5701_p0 }
  0x24   : > { %p5707_p7 = pnand %p5705_p5, %p5702_p3 }
  0x26   : > { %5710 = shalt.err (!%p5707_p7)
}
  0x27   : > { %s5711_s17 = scalar_lea.vmem %s6043_s13, 3072  ;;  %p5719_p2 = scmp.lt.s32.totalorder %s6043_s13, %s6043_s13 }
  0x28   : > { %p5712_p9 = scmp.ne.s32.totalorder %s6043_s13, %s5711_s17  ;;  %p5720_p6 = scmp.lt.s32.totalorder %s5711_s17, %s5711_s17 }
  0x2a   : > { %p5714_p10 = pnand %p5712_p9, %p6064_p13  ;;  %p5721_p12 = por %p5720_p6, %p5719_p2 }
  0x2c   : > { %p5715_p1 = pneg %p5714_p10 }
  0x2e   : > { %p5722_p0 = pnand %p5721_p12, %p5715_p1 }
  0x30   : > { %5725 = shalt.err (!%p5722_p0)
}
  0x31   : > { %s5918_s18 = smov 192   ;;  %s5919_s28 = smov 12  }
  0x32   : > { %5030 = dma.hbm_to_vmem [thread:$0]  (!%p6050_p11), %s7882_s3, 3072, %s6043_s13, [#allocation6], %s5918_s18, %s5918_s18, %s5919_s28  }
  0x33   : > { %s5726_s21 = scalar_lea.hbm %s7851_s8, 2048 }
  0x34   : > { %p5727_p2 = scmp.ne.s32.totalorder %s7851_s8, %s5726_s21  ;;  %p5733_p10 = scmp.lt.u32.totalorder %s5726_s21, %s7851_s8 }
  0x36   : > { %p5729_p1 = pnand %p5727_p2, %p6064_p13 }
  0x38   : > { %p5730_p6 = pneg %p5729_p1 }
  0x3a   : > { %p5735_p3 = pnand %p5733_p10, %p5730_p6 }
  0x3c   : > { %5738 = shalt.err (!%p5735_p3)
}
  0x3d   : > { %s5739_s13 = scalar_lea.vmem %s6054_s16, 2048  ;;  %p5747_p12 = scmp.lt.s32.totalorder %s6054_s16, %s6054_s16 }
  0x3e   : > { %p5740_p5 = scmp.ne.s32.totalorder %s6054_s16, %s5739_s13  ;;  %p5748_p0 = scmp.lt.s32.totalorder %s5739_s13, %s5739_s13 }
  0x40   : > { %p5742_p7 = pnand %p5740_p5, %p6064_p13  ;;  %p5749_p2 = por %p5748_p0, %p5747_p12 }
  0x42   : > { %p5743_p9 = pneg %p5742_p7 }
  0x44   : > { %p5750_p1 = pnand %p5749_p2, %p5743_p9 }
  0x46   : > { %5753 = shalt.err (!%p5750_p1)
}
  0x47   : > { %s7862_s11 = smov 128   ;;  %s7863_s9 = smov 8  }
  0x48   : > { %5036 = dma.hbm_to_vmem [thread:$0]  (!%p6050_p11), %s7851_s8, 2048, %s6054_s16, [#allocation9], %s7862_s11, %s7862_s11, %s7863_s9  }
  0x49   : > { %s5922_s18 = smov [#allocation7]   ;;  %s5754_s26 = scalar_lea.hbm %s7847_s4, 1024 }
  0x4a   : > { %s349_s28 = sshll.u32 %s5922_s18, 4  ;;  %p5755_p6 = scmp.ne.s32.totalorder %s7847_s4, %s5754_s26  ;;  %s350_s28 = int_to_ptr.vmem [resolvable:$true] %s349_s28 }
  0x4b   : > { %p5761_p5 = scmp.lt.u32.totalorder %s5754_s26, %s7847_s4 }
  0x4c   : > { %p5757_p10 = pnand %p5755_p6, %p6064_p13 }
  0x4e   : > { %p5758_p3 = pneg %p5757_p10 }
  0x50   : > { %p5763_p7 = pnand %p5761_p5, %p5758_p3 }
  0x52   : > { %5766 = shalt.err (!%p5763_p7)
}
  0x53   : > { %s5767_s16 = scalar_lea.vmem %s350_s28, 1024  ;;  %p5775_p2 = scmp.lt.s32.totalorder %s350_s28, %s350_s28 }
  0x54   : > { %p5768_p9 = scmp.ne.s32.totalorder %s350_s28, %s5767_s16  ;;  %p5776_p1 = scmp.lt.s32.totalorder %s5767_s16, %s5767_s16 }
  0x56   : > { %p5770_p12 = pnand %p5768_p9, %p6064_p13  ;;  %p5777_p4 = por %p5776_p1, %p5775_p2 }
  0x58   : > { %p5771_p0 = pneg %p5770_p12 }
  0x5a   : > { %p5778_p8 = pnand %p5777_p4, %p5771_p0 }
  0x5c   : > { %5781 = shalt.err (!%p5778_p8)
}
  0x5d   : > { %s5923_s12 = smov 64   ;;  %s5924_s21 = smov 4  }
  0x5e   : > { %5033 = dma.hbm_to_vmem [thread:$0]  (!%p6050_p11), %s7847_s4, 1024, %s350_s28, [#allocation6], %s5923_s12, %s5923_s12, %s5924_s21  }
  0x5f   : > { %s5925_s19 = smov [#allocation10]   ;;  %s5782_s17 = scalar_lea.hbm %s7853_s10, 1024 }
  0x60   : > { %s387_s20 = sshll.u32 %s5925_s19, 4  ;;  %p5783_p4 = scmp.ne.s32.totalorder %s7853_s10, %s5782_s17  ;;  %s388_s20 = int_to_ptr.vmem [resolvable:$true] %s387_s20 }
  0x61   : > { %p5789_p10 = scmp.lt.u32.totalorder %s5782_s17, %s7853_s10 }
  0x62   : > { %p5785_p8 = pnand %p5783_p4, %p6064_p13 }
  0x64   : > { %p5786_p6 = pneg %p5785_p8 }
  0x66   : > { %p5791_p3 = pnand %p5789_p10, %p5786_p6 }
  0x68   : > { %5794 = shalt.err (!%p5791_p3)
}
  0x69   : > { %s5795_s28 = scalar_lea.vmem %s388_s20, 1024  ;;  %p5803_p12 = scmp.lt.s32.totalorder %s388_s20, %s388_s20 }
  0x6a   : > { %p5796_p5 = scmp.ne.s32.totalorder %s388_s20, %s5795_s28  ;;  %p5804_p0 = scmp.lt.s32.totalorder %s5795_s28, %s5795_s28 }
  0x6c   : > { %p5798_p7 = pnand %p5796_p5, %p6064_p13  ;;  %p5805_p2 = por %p5804_p0, %p5803_p12 }
  0x6e   : > { %p5799_p9 = pneg %p5798_p7 }
  0x70   : > { %p5806_p1 = pnand %p5805_p2, %p5799_p9 }
  0x72   : > { %5809 = shalt.err (!%p5806_p1)
}
  0x73   : > { %5039 = dma.hbm_to_vmem [thread:$0]  (!%p6050_p11), %s7853_s10, 1024, %s388_s20, [#allocation9], %s5923_s12, %s5923_s12, %s5924_s21  }
  0x74   : > { %s6148_s30 = sadd.s32 1, %s5914_s24   ;;  %s37_s11 = sadd.s32 1, %s5910_s23 }
  0x75   : > { %s34_s14 = ssub.s32 %s5914_s24, %s6148_s30  ;;  %p44_p13 = scmp.ne.s32.totalorder %s5910_s23, %s5906_s22 }
  0x76   : > { %p35_p4 = scmp.eq.s32.totalorder %s34_s14, 0  ;;  %p45_p8 = scmp.eq.s32.totalorder %s5914_s24, 0 }
  0x77   : > { %p7884_p6 = scmp.eq.s32.totalorder %s6020_s25, 1  ;;  %p5052_p3 = scmp.lt.s32.totalorder %s5914_s24, 2 }
  0x78   : > { %s6164_s19 = scalar_select %p35_p4, %s5910_s23, %s37_s11  }
  0x79   : > { %p6158_p10 = por %p7884_p6, %p44_p13  ;;  %p46_p5 = por %p45_p8, %p44_p13 }
  0x7a   : > { %s404_s26 = sand.u32 1, %s5910_s23   ;;  %s4445_s12 = sshll.u32 %s5914_s24, 11 }
  0x7b   : > { %s4320_s15 = sshll.u32 %s404_s26, 7  ;;  %s6171_s17 = scalar_lea.hbm %s7843_s0, %s4445_s12 }
  0x7c   : > { %s408_s13 = scalar_lea.vmem [#allocation2], %s4320_s15  ;;  %p6175_p11 = pnand %p5052_p3, %p46_p5 }
  0x7d   : > { %s415_s16 = sshll.u32 %s408_s13, 4  ;;  %s6179_s3 = scalar_lea.sflag [#allocation3], %s404_s26  ;;  %s6173_s16 = int_to_ptr.vmem [resolvable:$true] %s415_s16 }
  0x7e   : > { %s5810_s18 = scalar_lea.hbm %s6171_s17, 2048  ;;  %p5812_p9 = pneg %p6175_p11 }
  0x7f   : > { %p5811_p7 = scmp.ne.s32.totalorder %s6171_s17, %s5810_s18  ;;  %s5815_s15 = scalar_lea.hbm %s7843_s0, 4096 }
  0x80   : > { %p5816_p2 = scmp.lt.u32.totalorder %s6171_s17, %s7843_s0  ;;  %p5817_p1 = scmp.lt.u32.totalorder %s5815_s15, %s5810_s18 }
  0x81   : > { %p5813_p12 = pnand %p5812_p9, %p5811_p7  ;;  %p5819_p4 = scmp.lt.u32.totalorder %s5810_s18, %s6171_s17 }
  0x82   : > { %p5818_p13 = por %p5817_p1, %p5816_p2 }
  0x83   : > { %p5814_p0 = pneg %p5813_p12 }
  0x84   : > { %p5820_p8 = por %p5819_p4, %p5818_p13 }
  0x86   : > { %p5821_p6 = pnand %p5820_p8, %p5814_p0 }
  0x88   : > { %5824 = shalt.err (!%p5821_p6)
}
  0x89   : > { %s5825_s26 = scalar_lea.vmem %s6173_s16, 2048  ;;  %s5926_s20 = smov [#allocation2]  }
  0x8a   : > { %p5826_p3 = scmp.ne.s32.totalorder %s6173_s16, %s5825_s26  ;;  %s5830_s13 = sshll.u32 %s5926_s20, 4  ;;  %s5831_s13 = int_to_ptr.vmem [resolvable:$false] %s5830_s13 }
  0x8b   : > { %s5832_s11 = scalar_lea.vmem %s5831_s13, 4096  ;;  %p5833_p12 = scmp.lt.s32.totalorder %s6173_s16, %s5831_s13 }
  0x8c   : > { %p5828_p5 = pnand %p5826_p3, %p5812_p9  ;;  %p5834_p2 = scmp.lt.s32.totalorder %s5832_s11, %s5825_s26 }
  0x8e   : > { %p5829_p7 = pneg %p5828_p5  ;;  %p5835_p1 = por %p5834_p2, %p5833_p12 }
  0x90   : > { %p5836_p13 = pnand %p5835_p1, %p5829_p7 }
  0x92   : > { %5839 = shalt.err (!%p5836_p13)
}
  0x93   : > { %s7887_s18 = smov 8   ;;  %s7888_s14 = smov 128  }
  0x94   : > { %5043 = dma.hbm_to_vmem [thread:$0]  (!%p6175_p11), %s6171_s17, 2048, %s6173_s16, %s6179_s3, %s7888_s14, %s7888_s14, %s7887_s18  }
  0x95   : > { %p7889_p9 = scmp.ne.s32.totalorder %s7880_s29, 0 }
  0x97   : > { %427 = sbr.rel (%p7889_p9) target bundleno = 4617 (0x1209), region = 68 }
  0x9e   : > { %s6213_s15 = sand.u32 1, %s5906_s22   ;;  %p7890_p0 = scmp.ne.s32.totalorder %s7877_s27, 0 }
  0x9f   : > { %s4324_s12 = sshll.u32 %s6213_s15, 7  ;;  %s430_s21 = scalar_lea.sflag [#allocation3], %s6213_s15 }
  0xa0   : > { %s6219_s28 = scalar_lea.vmem [#allocation2], %s4324_s12 }
  0xa1   : > { %5885 = dma.done.wait (%p7890_p0), %s430_s21, 2048  }
  0xa2   : > { %5887 = vsyncadd (%p7890_p0), %s430_s21, 4294965248  ;;  %p7891_p11 = scmp.eq.s32.totalorder %s6020_s25, 0 }
  0xa4   : > { %5889 = dma.done.wait (%p7891_p11), [#allocation6], 4096   ;;  %p7892_p4 = pmov %p7891_p11 }
  0xa6   : > { %5891 = vsyncadd (%p7892_p4), [#allocation6], 4294963200  ;;  %p7893_p8 = pmov %p7892_p4 }
  0xa7   : > { %p7894_p6 = pmov %p7892_p4 }
  0xa8   : > { %5893 = dma.done.wait (%p7893_p8), [#allocation9], 3072  }
  0xa9   : > { %5895 = vsyncadd (%p7894_p6), [#allocation9], 4294964224  ;;  %v493_v0 = vld [vmem:[%s6219_s28] sm:$0xff]  ;;  %v495_v1 = vld [vmem:[%s6219_s28 + $0x10] sm:$0xff]  ;;  %vm1134_vm0 = vcmask 261120   ;;  %s5928_s3 = smov 96  }
  0xaa   : > { %511 = vadd.xlane.f32.xlu0 %v493_v0  ;;  %515 = vadd.xlane.f32.xlu1 %v495_v1  ;;  %v494_v2 = vld [vmem:[%s6219_s28 + $0x8] sm:$0xff]  ;;  %v496_v3 = vld [vmem:[%s6219_s28 + $0x18] sm:$0xff]  ;;  %v497_v4 = vld [vmem:[%s6219_s28 + $0x20] sm:$0xff]  ;;  %s5929_s26 = smov 64   ;;  %s5930_s20 = smov 32   ;;  %vm3175_vm1 = vcmask 523264  }
  0xab   : > { %v498_v5 = vld [vmem:[%s6219_s28 + $0x28] sm:$0xff]  ;;  %v6240_v6 = vld [vmem:[%s6219_s28 + $0x30] sm:$0xff]  ;;  %v6243_v7 = vld [vmem:[%s6219_s28 + $0x38] sm:$0xff]  ;;  %vm3192_vm2 = vcmask 785408   ;;  %s7955_s17 = sld [smem:[#allocation41_spill]]  ;;  %s7957_s14 = sld [smem:[#allocation43_spill]] }
  0xac   : > { %v6246_v8 = vld [vmem:[%s6219_s28 + $0x40] sm:$0xff]  ;;  %v6249_v9 = vld [vmem:[%s6219_s28 + $0x48] sm:$0xff]  ;;  %v6254_v10 = vld [vmem:[%s6219_s28 + $0x50] sm:$0xff]  ;;  %s5931_s27 = smov [#allocation11]  }
  0xad   : > { %v6257_v11 = vld [vmem:[%s6219_s28 + $0x58] sm:$0xff]  ;;  %v6262_v12 = vld [vmem:[%s6219_s28 + $0x60] sm:$0xff]  ;;  %v6265_v13 = vld [vmem:[%s6219_s28 + $0x68] sm:$0xff]  ;;  %s5844_s29 = sshll.u32 %s5931_s27, 4  ;;  %s5845_s29 = int_to_ptr.vmem [resolvable:$false] %s5844_s29 }
  0xae   : > { %513 = vadd.xlane.f32.xlu0 %v494_v2  ;;  %517 = vadd.xlane.f32.xlu1 %v496_v3  ;;  %v6270_v14 = vld [vmem:[%s6219_s28 + $0x70] sm:$0xff]  ;;  %v6273_v15 = vld [vmem:[%s6219_s28 + $0x78] sm:$0xff]  ;;  %v5228_v17 = vld [vmem:[#allocation5] ss:$12 sps:$4 sm:$0xff]  }
  0xaf   : > { %v5226_v16 = vld [vmem:[#allocation5 + $0x4] ss:$12 sps:$4 sm:$0xff]   ;;  %v5229_v18 = vld [vmem:[#allocation5 + $0x1c] ss:$12 sps:$4 sm:$0xff]  }
  0xb0   : > { %v5231_v19 = vld [vmem:[#allocation5 + $0x8] ss:$12 sps:$4 sm:$0xff]   ;;  %900 = vmatprep.subr.bf16.mxu0 %v5226_v16  ;;  %v5232_v58 = vld [vmem:[#allocation5 + $0x18] ss:$12 sps:$4 sm:$0xff]  }
  0xb1   : > { %901 = vmatpush1.bf16.msra.mxu0 %v5228_v17  ;;  %4623 = vmatprep.subr.bf16.mxu1 %v5231_v19 }
  0xb2   : > { %519 = vadd.xlane.f32.xlu0 %v497_v4  ;;  %521 = vadd.xlane.f32.xlu1 %v498_v5 }
  0xb3   : > { %902 = vmatprep.subr.bf16.mxu0 %v5229_v18  ;;  %4624 = vmatpush3.bf16.msra.mxu1 %v5231_v19  ;;  %v5237_v18 = vld [vmem:[#allocation5 + $0x4c] ss:$12 sps:$4 sm:$0xff]  }
  0xb4   : > { %v5239_v19 = vld [vmem:[#allocation5 + $0x38] ss:$12 sps:$4 sm:$0xff]  }
  0xb5   : > { %903 = vmatpush1.bf16.msra.mxu0 %v5232_v58 }
  0xb6   : > { %523 = vadd.xlane.f32.xlu0 %v6240_v6  ;;  %525 = vadd.xlane.f32.xlu1 %v6243_v7 }
  0xba   : > { %527 = vadd.xlane.f32.xlu0 %v6246_v8  ;;  %529 = vadd.xlane.f32.xlu1 %v6249_v9 }
  0xbe   : > { %531 = vadd.xlane.f32.xlu0 %v6254_v10  ;;  %533 = vadd.xlane.f32.xlu1 %v6257_v11 }
  0xc2   : > { %535 = vadd.xlane.f32.xlu0 %v6262_v12  ;;  %537 = vadd.xlane.f32.xlu1 %v6265_v13 }
  0xc6   : > { %539 = vadd.xlane.f32.xlu0 %v6270_v14  ;;  %541 = vadd.xlane.f32.xlu1 %v6273_v15 }
 0x137   : > { %v512_v20 = vpop.xlane.xlu0 %511  ;;  %v516_v21 = vpop.xlane.xlu1 %515 }
 0x138   : > { %v544_v22 = vmul.f32 0.0078125, %v512_v20  ;;  %v546_v23 = vmul.f32 0.0078125, %v516_v21 }
 0x13a   : > { %v6279_v24 = vsub.f32 %v493_v0, %v544_v22  ;;  %v6281_v25 = vsub.f32 %v495_v1, %v546_v23  ;;  %v5233_v0 = vld [vmem:[#allocation5 + $0x34] ss:$12 sps:$4 sm:$0xff]  }
 0x13b   : > { %v514_v26 = vpop.xlane.xlu0 %513  ;;  %v518_v27 = vpop.xlane.xlu1 %517  ;;  %v5235_v1 = vld [vmem:[#allocation5 + $0x20] ss:$12 sps:$4 sm:$0xff]   ;;  %904 = vmatprep.subr.bf16.mxu0 %v5233_v0  ;;  %v5240_v22 = vld [vmem:[#allocation5 + $0x48] ss:$12 sps:$4 sm:$0xff]  }
 0x13c   : > { %v545_v28 = vmul.f32 0.0078125, %v514_v26  ;;  %v576_v29 = vmul.f32 %v6279_v24, %v6279_v24  ;;  %v547_v30 = vmul.f32 0.0078125, %v518_v27  ;;  %v578_v31 = vmul.f32 %v6281_v25, %v6281_v25  ;;  %4625 = vmatprep.subr.bf16.mxu1 %v5235_v1 }
 0x13d   : > { %4626 = vmatpush3.bf16.msra.mxu1 %v5235_v1 }
 0x13e   : > { %592 = vadd.xlane.f32.xlu0 %v576_v29  ;;  %v6287_v32 = vsub.f32 %v494_v2, %v545_v28  ;;  %v6289_v33 = vsub.f32 %v496_v3, %v547_v30  ;;  %4627 = vmatprep.subr.bf16.mxu1 %v5239_v19  ;;  %v5241_v29 = vld [vmem:[#allocation5 + $0x64] ss:$12 sps:$4 sm:$0xff]  }
 0x13f   : > { %v520_v34 = vpop.xlane.xlu0 %519  ;;  %v522_v35 = vpop.xlane.xlu1 %521  ;;  %v5243_v30 = vld [vmem:[#allocation5 + $0x50] ss:$12 sps:$4 sm:$0xff]  }
 0x140   : > { %v548_v36 = vmul.f32 0.0078125, %v520_v34  ;;  %v577_v37 = vmul.f32 %v6287_v32, %v6287_v32  ;;  %v549_v38 = vmul.f32 0.0078125, %v522_v35  ;;  %v579_v39 = vmul.f32 %v6289_v33, %v6289_v33 }
 0x141   : > { %4628 = vmatpush3.bf16.msra.mxu1 %v5239_v19 }
 0x142   : > { %596 = vadd.xlane.f32.xlu0 %v578_v31  ;;  %594 = vadd.xlane.f32.xlu1 %v577_v37  ;;  %v6295_v40 = vsub.f32 %v497_v4, %v548_v36  ;;  %v6297_v41 = vsub.f32 %v498_v5, %v549_v38  ;;  %v5244_v31 = vld [vmem:[#allocation5 + $0x60] ss:$12 sps:$4 sm:$0xff]   ;;  %v5247_v36 = vld [vmem:[#allocation5 + $0x68] ss:$12 sps:$4 sm:$0xff]   ;;  %v5248_v37 = vld [vmem:[#allocation5 + $0x78] ss:$12 sps:$4 sm:$0xff]  }
 0x143   : > { %v524_v42 = vpop.xlane.xlu0 %523  ;;  %v526_v43 = vpop.xlane.xlu1 %525  ;;  %4629 = vmatprep.subr.bf16.mxu1 %v5243_v30  ;;  %v5251_v38 = vld [vmem:[#allocation5 + $0x80] ss:$12 sps:$4 sm:$0xff]  }
 0x144   : > { %v550_v44 = vmul.f32 0.0078125, %v524_v42  ;;  %v580_v45 = vmul.f32 %v6295_v40, %v6295_v40  ;;  %v551_v46 = vmul.f32 0.0078125, %v526_v43  ;;  %v581_v47 = vmul.f32 %v6297_v41, %v6297_v41  ;;  %v5253_v42 = vld [vmem:[#allocation5 + $0xac] ss:$12 sps:$4 sm:$0xff]  }
 0x145   : > { %4630 = vmatpush3.bf16.msra.mxu1 %v5243_v30  ;;  %v5255_v43 = vld [vmem:[#allocation5 + $0x98] ss:$12 sps:$4 sm:$0xff]  }
 0x146   : > { %598 = vadd.xlane.f32.xlu1 %v579_v39  ;;  %600 = vadd.xlane.f32.xlu0 %v580_v45  ;;  %v6304_v48 = vsub.f32 %v6240_v6, %v550_v44  ;;  %v6307_v49 = vsub.f32 %v6243_v7, %v551_v46  ;;  %v5236_v7 = vld [vmem:[#allocation5 + $0x30] ss:$12 sps:$4 sm:$0xff]   ;;  %v5256_v44 = vld [vmem:[#allocation5 + $0xa8] ss:$12 sps:$4 sm:$0xff]   ;;  %v7864_v46 = vmov 0  }
 0x147   : > { %v528_v50 = vpop.xlane.xlu0 %527  ;;  %v530_v51 = vpop.xlane.xlu1 %529  ;;  %905 = vmatpush1.bf16.msra.mxu0 %v5236_v7  ;;  %4631 = vmatprep.subr.bf16.mxu1 %v5247_v36  ;;  %v5252_v39 = vld [vmem:[#allocation5 + $0x90] ss:$12 sps:$4 sm:$0xff]  }
 0x148   : > { %v552_v52 = vmul.f32 0.0078125, %v528_v50  ;;  %v582_v53 = vmul.f32 %v6304_v48, %v6304_v48  ;;  %v553_v54 = vmul.f32 0.0078125, %v530_v51  ;;  %v583_v55 = vmul.f32 %v6307_v49, %v6307_v49  ;;  %906 = vmatprep.subr.bf16.mxu0 %v5237_v18  ;;  %v5257_v45 = vld [vmem:[#allocation5 + $0xb0] ss:$12 sps:$4 sm:$0xff]   ;;  %932 = vmatprep.mubr.bf16.mxu0 %v7864_v46 }
 0x149   : > { %4632 = vmatpush3.bf16.msra.mxu1 %v5247_v36 }
 0x14a   : > { %602 = vadd.xlane.f32.xlu1 %v581_v47  ;;  %604 = vadd.xlane.f32.xlu0 %v582_v53  ;;  %v6314_v56 = vsub.f32 %v6246_v8, %v552_v52  ;;  %v6317_v57 = vsub.f32 %v6249_v9, %v553_v54 }
 0x14b   : > { %v532_v59 = vpop.xlane.xlu0 %531  ;;  %v534_v60 = vpop.xlane.xlu1 %533  ;;  %907 = vmatpush1.bf16.msra.mxu0 %v5240_v22  ;;  %4633 = vmatprep.subr.bf16.mxu1 %v5251_v38  ;;  %v6358_v22 = vld [vmem:[%s7844_s1] ss:$0 sm:$0xff] }
 0x14c   : > { %v554_v61 = vmul.f32 0.0078125, %v532_v59  ;;  %v584_v62 = vmul.f32 %v6314_v56, %v6314_v56  ;;  %v555_v63 = vmul.f32 0.0078125, %v534_v60  ;;  %v585_v2 = vmul.f32 %v6317_v57, %v6317_v57  ;;  %908 = vmatprep.subr.bf16.mxu0 %v5241_v29 }
 0x14d   : > { %4634 = vmatpush3.bf16.msra.mxu1 %v5251_v38 }
 0x14e   : > { %606 = vadd.xlane.f32.xlu1 %v583_v55  ;;  %608 = vadd.xlane.f32.xlu0 %v584_v62  ;;  %v6324_v3 = vsub.f32 %v6254_v10, %v554_v61  ;;  %v6327_v4 = vsub.f32 %v6257_v11, %v555_v63 }
 0x14f   : > { %v536_v5 = vpop.xlane.xlu0 %535  ;;  %v538_v6 = vpop.xlane.xlu1 %537  ;;  %909 = vmatpush1.bf16.msra.mxu0 %v5244_v31  ;;  %4635 = vmatprep.subr.bf16.mxu1 %v5255_v43 }
 0x150   : > { %v556_v8 = vmul.f32 0.0078125, %v536_v5  ;;  %v586_v9 = vmul.f32 %v6324_v3, %v6324_v3  ;;  %v557_v16 = vmul.f32 0.0078125, %v538_v6  ;;  %v587_v10 = vmul.f32 %v6327_v4, %v6327_v4 }
 0x151   : > { %4636 = vmatpush3.bf16.msra.mxu1 %v5255_v43 }
 0x152   : > { %610 = vadd.xlane.f32.xlu1 %v585_v2  ;;  %612 = vadd.xlane.f32.xlu0 %v586_v9  ;;  %v6334_v11 = vsub.f32 %v6262_v12, %v556_v8  ;;  %v6337_v17 = vsub.f32 %v6265_v13, %v557_v16 }
 0x153   : > { %v540_v20 = vpop.xlane.xlu0 %539  ;;  %v542_v21 = vpop.xlane.xlu1 %541  ;;  %4637 = vmatprep.subr.bf16.mxu1 %v5257_v45 }
 0x154   : > { %v558_v23 = vmul.f32 0.0078125, %v540_v20  ;;  %v588_v26 = vmul.f32 %v6334_v11, %v6334_v11  ;;  %v559_v27 = vmul.f32 0.0078125, %v542_v21  ;;  %v589_v12 = vmul.f32 %v6337_v17, %v6337_v17 }
 0x155   : > { %4638 = vmatpush3.bf16.msra.mxu1 %v5257_v45 }
 0x156   : > { %614 = vadd.xlane.f32.xlu1 %v587_v10  ;;  %616 = vadd.xlane.f32.xlu0 %v588_v26  ;;  %v6344_v13 = vsub.f32 %v6270_v14, %v558_v23  ;;  %v6347_v28 = vsub.f32 %v6273_v15, %v559_v27  ;;  %v5245_v14 = vld [vmem:[#allocation5 + $0x7c] ss:$12 sps:$4 sm:$0xff]   ;;  %v5249_v15 = vld [vmem:[#allocation5 + $0x94] ss:$12 sps:$4 sm:$0xff]  }
 0x157   : > { %910 = vmatprep.subr.bf16.mxu0 %v5245_v14  ;;  %v6365_v14 = vld [vmem:[%s7845_s2] ss:$0 sm:$0xff] }
 0x158   : > { %v590_v34 = vmul.f32 %v6344_v13, %v6344_v13  ;;  %v591_v35 = vmul.f32 %v6347_v28, %v6347_v28  ;;  %911 = vmatpush1.bf16.msra.mxu0 %v5248_v37 }
 0x159   : > { %912 = vmatprep.subr.bf16.mxu0 %v5249_v15 }
 0x15a   : > { %618 = vadd.xlane.f32.xlu1 %v589_v12  ;;  %620 = vadd.xlane.f32.xlu0 %v590_v34 }
 0x15c   : > { %913 = vmatpush1.bf16.msra.mxu0 %v5252_v39 }
 0x15d   : > { %914 = vmatprep.subr.bf16.mxu0 %v5253_v42 }
 0x15e   : > { %622 = vadd.xlane.f32.xlu1 %v591_v35 }
 0x160   : > { %915 = vmatpush1.bf16.msra.mxu0 %v5256_v44 }
 0x1cb   : > { %v593_v47 = vpop.xlane.xlu0 %592 }
 0x1cc   : > { %v624_v50 = vmul.f32 0.0078125, %v593_v47 }
 0x1ce   : > { %v640_v51 = vadd.f32 1e-05, %v624_v50 }
 0x1cf   : > { %v595_v52 = vpop.xlane.xlu1 %594  ;;  %v597_v53 = vpop.xlane.xlu0 %596 }
 0x1d0   : > { %5298 = vrsqrt.f32 %v640_v51  ;;  %v625_v54 = vmul.f32 0.0078125, %v595_v52  ;;  %v626_v55 = vmul.f32 0.0078125, %v597_v53 }
 0x1d2   : > { %v641_v58 = vadd.f32 1e-05, %v625_v54  ;;  %v642_v59 = vadd.f32 1e-05, %v626_v55 }
 0x1d3   : > { %v599_v60 = vpop.xlane.xlu1 %598  ;;  %v601_v61 = vpop.xlane.xlu0 %600 }
 0x1d4   : > { %5300 = vrsqrt.f32 %v641_v58  ;;  %v627_v62 = vmul.f32 0.0078125, %v599_v60  ;;  %v628_v63 = vmul.f32 0.0078125, %v601_v61 }
 0x1d5   : > { %5302 = vrsqrt.f32 %v642_v59 }
 0x1d6   : > { %v643_v0 = vadd.f32 1e-05, %v627_v62  ;;  %v644_v1 = vadd.f32 1e-05, %v628_v63 }
 0x1d7   : > { %v603_v2 = vpop.xlane.xlu1 %602  ;;  %v605_v5 = vpop.xlane.xlu0 %604 }
 0x1d8   : > { %5304 = vrsqrt.f32 %v643_v0  ;;  %v629_v6 = vmul.f32 0.0078125, %v603_v2  ;;  %v630_v7 = vmul.f32 0.0078125, %v605_v5 }
 0x1d9   : > { %5306 = vrsqrt.f32 %v644_v1 }
 0x1da   : > { %v5299_v8 = vpop.eup %5298  ;;  %v645_v9 = vadd.f32 1e-05, %v629_v6  ;;  %v646_v16 = vadd.f32 1e-05, %v630_v7 }
 0x1db   : > { %v607_v10 = vpop.xlane.xlu1 %606  ;;  %v609_v18 = vpop.xlane.xlu0 %608  ;;  %v672_v19 = vmul.f32 %v5299_v8, %v6279_v24 }
 0x1dc   : > { %5308 = vrsqrt.f32 %v645_v9  ;;  %v631_v20 = vmul.f32 0.0078125, %v607_v10  ;;  %v632_v21 = vmul.f32 0.0078125, %v609_v18 }
 0x1dd   : > { %5310 = vrsqrt.f32 %v646_v16  ;;  %v694_v34 = vmul.f32 %v6358_v22, %v672_v19 }
 0x1de   : > { %v5301_v23 = vpop.eup %5300  ;;  %v647_v26 = vadd.f32 1e-05, %v631_v20  ;;  %v648_v27 = vadd.f32 1e-05, %v632_v21 }
 0x1df   : > { %v5303_v12 = vpop.eup %5302  ;;  %v611_v29 = vpop.xlane.xlu1 %610  ;;  %v673_v31 = vmul.f32 %v5301_v23, %v6287_v32  ;;  %v716_v45 = vadd.f32 %v6365_v14, %v694_v34 }
 0x1e0   : > { %v613_v30 = vpop.xlane.xlu0 %612  ;;  %5312 = vrsqrt.f32 %v647_v26  ;;  %v633_v24 = vmul.f32 0.0078125, %v611_v29  ;;  %v674_v36 = vmul.f32 %v5303_v12, %v6281_v25 }
 0x1e1   : > { %v634_v35 = vmul.f32 0.0078125, %v613_v30  ;;  %5314 = vrsqrt.f32 %v648_v27  ;;  %v695_v37 = vmul.f32 %v6358_v22, %v673_v31 }
 0x1e2   : > { %v5305_v15 = vpop.eup %5304  ;;  %v649_v38 = vadd.f32 1e-05, %v633_v24  ;;  %v696_v32 = vmul.f32 %v6358_v22, %v674_v36 }
 0x1e3   : > { %v650_v39 = vadd.f32 1e-05, %v634_v35  ;;  %v5307_v42 = vpop.eup %5306  ;;  %v615_v43 = vpop.xlane.xlu1 %614  ;;  %v717_v47 = vadd.f32 %v6365_v14, %v695_v37  ;;  %v675_v50 = vmul.f32 %v5305_v15, %v6289_v33 }
 0x1e4   : > { %v617_v44 = vpop.xlane.xlu0 %616  ;;  %5316 = vrsqrt.f32 %v649_v38  ;;  %v635_v51 = vmul.f32 0.0078125, %v615_v43  ;;  %v676_v54 = vmul.f32 %v5307_v42, %v6295_v40  ;;  %v718_v60 = vadd.f32 %v6365_v14, %v696_v32 }
 0x1e5   : > { %v636_v25 = vmul.f32 0.0078125, %v617_v44  ;;  %5318 = vrsqrt.f32 %v650_v39  ;;  %v732_v52 = vpack.c.bf16 %v717_v47, %v716_v45  ;;  %v697_v53 = vmul.f32 %v6358_v22, %v675_v50 }
 0x1e6   : > { %v5309_v55 = vpop.eup %5308  ;;  %v651_v58 = vadd.f32 1e-05, %v635_v51  ;;  %v698_v1 = vmul.f32 %v6358_v22, %v676_v54 }
 0x1e7   : > { %v652_v59 = vadd.f32 1e-05, %v636_v25  ;;  %v5311_v61 = vpop.eup %5310  ;;  %v619_v62 = vpop.xlane.xlu1 %618  ;;  %933 = vmatmul.mubr.bf16.vlgmr.msra.gmra.mrb[0].mxu0 %v732_v52  ;;  %4639 = vmatprep.mubr.bf16.mxu1 %v732_v52  ;;  %v719_v33 = vadd.f32 %v6365_v14, %v697_v53  ;;  %v677_v0 = vmul.f32 %v5309_v55, %v6297_v41 }
 0x1e8   : > { %v621_v63 = vpop.xlane.xlu0 %620  ;;  %5320 = vrsqrt.f32 %v651_v58  ;;  %v637_v2 = vmul.f32 0.0078125, %v619_v62  ;;  %942 = vmatprep.mubr.bf16.mxu0 %v7864_v46  ;;  %v678_v40 = vmul.f32 %v5311_v61, %v6304_v48  ;;  %v720_v19 = vadd.f32 %v6365_v14, %v698_v1 }
 0x1e9   : > { %v638_v5 = vmul.f32 0.0078125, %v621_v63  ;;  %5322 = vrsqrt.f32 %v652_v59  ;;  %v733_v6 = vpack.c.bf16 %v719_v33, %v718_v60  ;;  %v699_v7 = vmul.f32 %v6358_v22, %v677_v0 }
 0x1ea   : > { %v5313_v8 = vpop.eup %5312  ;;  %v653_v9 = vadd.f32 1e-05, %v637_v2  ;;  %v700_v10 = vmul.f32 %v6358_v22, %v678_v40 }
 0x1eb   : > { %v654_v16 = vadd.f32 1e-05, %v638_v5  ;;  %v5315_v18 = vpop.eup %5314  ;;  %v623_v41 = vpop.xlane.xlu1 %622  ;;  %4640 = vmatmul.mubr.bf16.vlgmr.msra.gmra.mrb[0].mxu1 %v733_v6  ;;  %v721_v20 = vadd.f32 %v6365_v14, %v699_v7  ;;  %v679_v21 = vmul.f32 %v5313_v8, %v6307_v49 }
 0x1ec   : > { %5324 = vrsqrt.f32 %v653_v9  ;;  %v639_v48 = vmul.f32 0.0078125, %v623_v41  ;;  %v680_v23 = vmul.f32 %v5315_v18, %v6314_v56  ;;  %v722_v30 = vadd.f32 %v6365_v14, %v700_v10 }
 0x1ed   : > { %5326 = vrsqrt.f32 %v654_v16  ;;  %v734_v26 = vpack.c.bf16 %v721_v20, %v720_v19  ;;  %v701_v27 = vmul.f32 %v6358_v22, %v679_v21 }
 0x1ee   : > { %v5317_v12 = vpop.eup %5316  ;;  %v655_v29 = vadd.f32 1e-05, %v639_v48  ;;  %v702_v49 = vmul.f32 %v6358_v22, %v680_v23 }
 0x1ef   : > { %v5319_v31 = vpop.eup %5318  ;;  %943 = vmatmul.mubr.bf16.gmra.mrb[4].mxu0 %v733_v6  ;;  %4643 = vmatprep.mubr.bf16.mxu1 %v734_v26  ;;  %v723_v34 = vadd.f32 %v6365_v14, %v701_v27  ;;  %v681_v24 = vmul.f32 %v5317_v12, %v6317_v57 }
 0x1f0   : > { %5328 = vrsqrt.f32 %v655_v29  ;;  %952 = vmatprep.mubr.bf16.mxu0 %v7864_v46  ;;  %v682_v56 = vmul.f32 %v5319_v31, %v6324_v3  ;;  %v724_v39 = vadd.f32 %v6365_v14, %v702_v49 }
 0x1f1   : > { %v735_v35 = vpack.c.bf16 %v723_v34, %v722_v30  ;;  %v703_v36 = vmul.f32 %v6358_v22, %v681_v24 }
 0x1f2   : > { %v5321_v37 = vpop.eup %5320  ;;  %v704_v15 = vmul.f32 %v6358_v22, %v682_v56 }
 0x1f3   : > { %v5323_v38 = vpop.eup %5322  ;;  %4644 = vmatmul.mubr.bf16.gmra.mrb[4].mxu1 %v735_v35  ;;  %v725_v32 = vadd.f32 %v6365_v14, %v703_v36  ;;  %v683_v57 = vmul.f32 %v5321_v37, %v6327_v4 }
 0x1f4   : > { %v684_v42 = vmul.f32 %v5323_v38, %v6334_v11  ;;  %v726_v45 = vadd.f32 %v6365_v14, %v704_v15 }
 0x1f5   : > { %v736_v43 = vpack.c.bf16 %v725_v32, %v724_v39  ;;  %v705_v44 = vmul.f32 %v6358_v22, %v683_v57 }
 0x1f6   : > { %v5325_v3 = vpop.eup %5324  ;;  %v706_v25 = vmul.f32 %v6358_v22, %v684_v42 }
 0x1f7   : > { %v5327_v47 = vpop.eup %5326  ;;  %953 = vmatmul.mubr.bf16.gmra.mrb[8].mxu0 %v734_v26  ;;  %4647 = vmatprep.mubr.bf16.mxu1 %v736_v43  ;;  %v727_v50 = vadd.f32 %v6365_v14, %v705_v44  ;;  %v685_v51 = vmul.f32 %v5325_v3, %v6337_v17 }
 0x1f8   : > { %962 = vmatprep.mubr.bf16.mxu0 %v7864_v46  ;;  %v686_v4 = vmul.f32 %v5327_v47, %v6344_v13  ;;  %v728_v54 = vadd.f32 %v6365_v14, %v706_v25 }
 0x1f9   : > { %v737_v11 = vpack.c.bf16 %v727_v50, %v726_v45  ;;  %v707_v52 = vmul.f32 %v6358_v22, %v685_v51 }
 0x1fa   : > { %v5329_v53 = vpop.eup %5328  ;;  %v708_v59 = vmul.f32 %v6358_v22, %v686_v4 }
 0x1fb   : > { %4648 = vmatmul.mubr.bf16.gmra.mrb[8].mxu1 %v737_v11  ;;  %v729_v55 = vadd.f32 %v6365_v14, %v707_v52  ;;  %v687_v58 = vmul.f32 %v5329_v53, %v6347_v28 }
 0x1fc   : > { %v730_v13 = vadd.f32 %v6365_v14, %v708_v59 }
 0x1fd   : > { %v738_v17 = vpack.c.bf16 %v729_v55, %v728_v54  ;;  %v709_v60 = vmul.f32 %v6358_v22, %v687_v58 }
 0x1ff   : > { %963 = vmatmul.mubr.bf16.gmra.mrb[12].mxu0 %v735_v35  ;;  %4651 = vmatprep.mubr.bf16.mxu1 %v738_v17  ;;  %v731_v61 = vadd.f32 %v6365_v14, %v709_v60 }
 0x200   : > { %972 = vmatprep.mubr.bf16.mxu0 %v7864_v46 }
 0x201   : > { %v739_v62 = vpack.c.bf16 %v731_v61, %v730_v13 }
 0x203   : > { %4652 = vmatmul.mubr.bf16.gmra.mrb[12].mxu1 %v739_v62 }
 0x207   : > { %973 = vmatmul.mubr.bf16.gmra.mrb[16].mxu0 %v736_v43 }
 0x208   : > { %982 = vmatprep.mubr.bf16.mxu0 %v7864_v46 }
 0x20f   : > { %983 = vmatmul.mubr.bf16.gmra.mrb[20].mxu0 %v737_v11 }
 0x210   : > { %992 = vmatprep.mubr.bf16.mxu0 %v7864_v46 }
 0x217   : > { %993 = vmatmul.mubr.bf16.gmra.mrb[24].mxu0 %v738_v17 }
 0x218   : > { %1002 = vmatprep.mubr.bf16.mxu0 %v7864_v46 }
 0x21f   : > { %1003 = vmatmul.mubr.bf16.gmra.mrb[28].mxu0 %v739_v62 }
 0x2ba   : > { %v934_v28 = vpop.f32.mrb[0].mxu0 }
 0x2bb   : > { %v936_v22 = vpop.f32.mrb[1].mxu0 }
 0x2bc   : > { %v938_v63 = vpop.f32.mrb[2].mxu0 }
 0x2bd   : > { %v6419_v33 = vpack.c.bf16 %v938_v63, %v934_v28  ;;  %v940_v14 = vpop.f32.mrb[3].mxu0 }
 0x2be   : > { %v6421_v0 = vpack.c.bf16 %v940_v14, %v936_v22  ;;  %v4641_v1 = vpop.f32.mrb[0].mxu1 }
 0x2bf   : > { %v1047_v2 = vpop.f32.mrb[1].mxu1  ;;  %4671 = vmatprep.mubr.msk.bf16.mxu0 %vm1134_vm0, %v6419_v33 }
 0x2c0   : > { %1577 = vrot.lane.b32.xlu0 %v6421_v0, %s5928_s3  ;;  %v4642_v5 = vpop.f32.mrb[2].mxu1  ;;  %4975 = vmatprep.subr.msk.bf16.mxu0 %vm1134_vm0, %v6421_v0  ;;  %v1160_v40 = vsel %vm1134_vm0, %v6421_v0, 0 }
 0x2c1   : > { %v6431_v6 = vpack.c.bf16 %v4642_v5, %v4641_v1  ;;  %v1050_v7 = vpop.f32.mrb[3].mxu1  ;;  %4656 = vmatpush3.bf16.xpose.msra.mxu0 %v1160_v40 }
 0x2c2   : > { %v6433_v8 = vpack.c.bf16 %v1050_v7, %v1047_v2  ;;  %v944_v9 = vpop.f32.mrb[4].mxu0 }
 0x2c3   : > { %v946_v16 = vpop.f32.mrb[5].mxu0 }
 0x2c4   : > { %v948_v10 = vpop.f32.mrb[6].mxu0  ;;  %4687 = vmatprep.subr.bf16.mxu1 %v6433_v8 }
 0x2c5   : > { %v6436_v18 = vpack.c.bf16 %v948_v10, %v944_v9  ;;  %v950_v41 = vpop.f32.mrb[7].mxu0  ;;  %4688 = vmatpush3.bf16.msra.mxu1 %v6433_v8 }
 0x2c6   : > { %v6439_v19 = vpack.c.bf16 %v950_v41, %v946_v16  ;;  %v4645_v20 = vpop.f32.mrb[4].mxu1  ;;  %4689 = vmatprep.subr.bf16.mxu1 %v6431_v6 }
 0x2c7   : > { %v1063_v21 = vpop.f32.mrb[5].mxu1 }
 0x2c8   : > { %1579 = vrot.lane.b32.xlu1 %v6439_v19, %s5928_s3  ;;  %v4646_v48 = vpop.f32.mrb[6].mxu1  ;;  %4976 = vmatprep.subr.msk.bf16.mxu0 %vm1134_vm0, %v6439_v19  ;;  %v1163_v23 = vsel %vm1134_vm0, %v6439_v19, 0 }
 0x2c9   : > { %v6448_v26 = vpack.c.bf16 %v4646_v48, %v4645_v20  ;;  %v1066_v27 = vpop.f32.mrb[7].mxu1  ;;  %4658 = vmatpush3.bf16.xpose.msra.mxu0 %v1163_v23  ;;  %4690 = vmatpush3.bf16.msra.mxu1 %v6431_v6 }
 0x2ca   : > { %v6451_v12 = vpack.c.bf16 %v1066_v27, %v1063_v21  ;;  %v954_v29 = vpop.f32.mrb[8].mxu0 }
 0x2cb   : > { %v956_v30 = vpop.f32.mrb[9].mxu0 }
 0x2cc   : > { %v958_v31 = vpop.f32.mrb[10].mxu0  ;;  %4691 = vmatprep.subr.bf16.mxu1 %v6451_v12 }
 0x2cd   : > { %v6454_v34 = vpack.c.bf16 %v958_v31, %v954_v29  ;;  %v960_v24 = vpop.f32.mrb[11].mxu0  ;;  %4692 = vmatpush3.bf16.msra.mxu1 %v6451_v12 }
 0x2ce   : > { %v6457_v49 = vpack.c.bf16 %v960_v24, %v956_v30  ;;  %v4649_v56 = vpop.f32.mrb[8].mxu1  ;;  %4693 = vmatprep.subr.bf16.mxu1 %v6448_v26 }
 0x2cf   : > { %v1079_v35 = vpop.f32.mrb[9].mxu1 }
 0x2d0   : > { %v4650_v36 = vpop.f32.mrb[10].mxu1  ;;  %4977 = vmatprep.subr.msk.bf16.mxu0 %vm1134_vm0, %v6457_v49  ;;  %v1166_v37 = vsel %vm1134_vm0, %v6457_v49, 0 }
 0x2d1   : > { %v6464_v15 = vpack.c.bf16 %v4650_v36, %v4649_v56  ;;  %v1082_v38 = vpop.f32.mrb[11].mxu1  ;;  %4660 = vmatpush3.bf16.xpose.msra.mxu0 %v1166_v37  ;;  %4694 = vmatpush3.bf16.msra.mxu1 %v6448_v26 }
 0x2d2   : > { %v6467_v39 = vpack.c.bf16 %v1082_v38, %v1079_v35  ;;  %v964_v32 = vpop.f32.mrb[12].mxu0 }
 0x2d3   : > { %v966_v57 = vpop.f32.mrb[13].mxu0 }
 0x2d4   : > { %v968_v42 = vpop.f32.mrb[14].mxu0  ;;  %4695 = vmatprep.subr.bf16.mxu1 %v6467_v39 }
 0x2d5   : > { %v6470_v43 = vpack.c.bf16 %v968_v42, %v964_v32  ;;  %v970_v44 = vpop.f32.mrb[15].mxu0  ;;  %4696 = vmatpush3.bf16.msra.mxu1 %v6467_v39 }
 0x2d6   : > { %v6473_v3 = vpack.c.bf16 %v970_v44, %v966_v57  ;;  %v4653_v45 = vpop.f32.mrb[12].mxu1  ;;  %4697 = vmatprep.subr.bf16.mxu1 %v6464_v15 }
 0x2d7   : > { %v1095_v47 = vpop.f32.mrb[13].mxu1 }
 0x2d8   : > { %v4654_v50 = vpop.f32.mrb[14].mxu1  ;;  %4978 = vmatprep.subr.msk.bf16.mxu0 %vm1134_vm0, %v6473_v3  ;;  %v1169_v51 = vsel %vm1134_vm0, %v6473_v3, 0 }
 0x2d9   : > { %v6480_v25 = vpack.c.bf16 %v4654_v50, %v4653_v45  ;;  %v1098_v4 = vpop.f32.mrb[15].mxu1  ;;  %4662 = vmatpush3.bf16.xpose.msra.mxu0 %v1169_v51  ;;  %4698 = vmatpush3.bf16.msra.mxu1 %v6464_v15 }
 0x2da   : > { %v6483_v11 = vpack.c.bf16 %v1098_v4, %v1095_v47  ;;  %v974_v52 = vpop.f32.mrb[16].mxu0 }
 0x2db   : > { %v976_v53 = vpop.f32.mrb[17].mxu0 }
 0x2dc   : > { %v978_v54 = vpop.f32.mrb[18].mxu0  ;;  %4699 = vmatprep.subr.bf16.mxu1 %v6483_v11 }
 0x2dd   : > { %v6486_v55 = vpack.c.bf16 %v978_v54, %v974_v52  ;;  %v980_v58 = vpop.f32.mrb[19].mxu0  ;;  %4700 = vmatpush3.bf16.msra.mxu1 %v6483_v11 }
 0x2de   : > { %v6489_v59 = vpack.c.bf16 %v980_v58, %v976_v53  ;;  %4701 = vmatprep.subr.bf16.mxu1 %v6480_v25 }
 0x2e0   : > { %4979 = vmatprep.subr.msk.bf16.mxu0 %vm1134_vm0, %v6489_v59  ;;  %v1172_v17 = vsel %vm1134_vm0, %v6489_v59, 0 }
 0x2e1   : > { %4664 = vmatpush3.bf16.xpose.msra.mxu0 %v1172_v17  ;;  %4702 = vmatpush3.bf16.msra.mxu1 %v6480_v25 }
 0x2e2   : > { %v984_v60 = vpop.f32.mrb[20].mxu0 }
 0x2e3   : > { %v986_v13 = vpop.f32.mrb[21].mxu0 }
 0x2e4   : > { %v988_v61 = vpop.f32.mrb[22].mxu0 }
 0x2e5   : > { %v6497_v62 = vpack.c.bf16 %v988_v61, %v984_v60  ;;  %v990_v28 = vpop.f32.mrb[23].mxu0 }
 0x2e6   : > { %v6499_v22 = vpack.c.bf16 %v990_v28, %v986_v13 }
 0x2e8   : > { %4980 = vmatprep.subr.msk.bf16.mxu0 %vm1134_vm0, %v6499_v22  ;;  %v1175_v63 = vsel %vm1134_vm0, %v6499_v22, 0 }
 0x2e9   : > { %4666 = vmatpush3.bf16.xpose.msra.mxu0 %v1175_v63 }
 0x2ea   : > { %v994_v14 = vpop.f32.mrb[24].mxu0 }
 0x2eb   : > { %v996_v1 = vpop.f32.mrb[25].mxu0 }
 0x2ec   : > { %v998_v2 = vpop.f32.mrb[26].mxu0 }
 0x2ed   : > { %v6505_v5 = vpack.c.bf16 %v998_v2, %v994_v14  ;;  %v1000_v40 = vpop.f32.mrb[27].mxu0 }
 0x2ee   : > { %v6507_v7 = vpack.c.bf16 %v1000_v40, %v996_v1 }
 0x2f0   : > { %4981 = vmatprep.subr.msk.bf16.mxu0 %vm1134_vm0, %v6507_v7  ;;  %v1178_v9 = vsel %vm1134_vm0, %v6507_v7, 0 }
 0x2f1   : > { %4668 = vmatpush3.bf16.xpose.msra.mxu0 %v1178_v9 }
 0x2f2   : > { %v1004_v16 = vpop.f32.mrb[28].mxu0 }
 0x2f3   : > { %v1006_v10 = vpop.f32.mrb[29].mxu0 }
 0x2f4   : > { %v1008_v41 = vpop.f32.mrb[30].mxu0 }
 0x2f5   : > { %v6513_v20 = vpack.c.bf16 %v1008_v41, %v1004_v16  ;;  %v1010_v21 = vpop.f32.mrb[31].mxu0 }
 0x2f6   : > { %v6515_v48 = vpack.c.bf16 %v1010_v21, %v1006_v10 }
 0x2f8   : > { %4982 = vmatprep.subr.msk.bf16.mxu0 %vm1134_vm0, %v6515_v48  ;;  %v1181_v23 = vsel %vm1134_vm0, %v6515_v48, 0 }
 0x2f9   : > { %4670 = vmatpush3.bf16.xpose.msra.mxu0 %v1181_v23 }
 0x300   : > { %4672 = vmatmul.mubr.msk.bf16.vlgmr.msra.gmra.mrb[32].mxu0 %vm1134_vm0, %v6436_v18 }
 0x301   : > { %4675 = vmatprep.mubr.msk.bf16.mxu0 %vm1134_vm0, %v6454_v34 }
 0x308   : > { %4676 = vmatmul.mubr.msk.bf16.gmra.mrb[36].mxu0 %vm1134_vm0, %v6470_v43 }
 0x309   : > { %4679 = vmatprep.mubr.msk.bf16.mxu0 %vm1134_vm0, %v6486_v55 }
 0x310   : > { %4680 = vmatmul.mubr.msk.bf16.gmra.mrb[40].mxu0 %vm1134_vm0, %v6497_v62 }
 0x311   : > { %4683 = vmatprep.mubr.msk.bf16.mxu0 %vm1134_vm0, %v6505_v5 }
 0x318   : > { %4684 = vmatmul.mubr.msk.bf16.gmra.mrb[44].mxu0 %vm1134_vm0, %v6513_v20 }
 0x332   : > { %v6535_v27 = vpop.permute.xlu0 %1577 }
 0x333   : > { %4983 = vmatprep.subr.msk.bf16.mxu1 %vm1134_vm0, %v6535_v27 }
 0x33a   : > { %v6579_v9 = vpop.permute.xlu1 %1579 }
 0x3d3   : > { %v4673_v29 = vpop.f32.mrb[32].mxu0 }
 0x3d4   : > { %v1282_v30 = vmul.f32 0.17677669, %v4673_v29  ;;  %v1217_v31 = vpop.f32.mrb[33].mxu0 }
 0x3d5   : > { %v4674_v24 = vpop.f32.mrb[34].mxu0  ;;  %v1280_v36 = vmul.f32 0.17677669, %v1217_v31 }
 0x3d6   : > { %v1283_v56 = vmul.f32 0.17677669, %v4674_v24  ;;  %1300 = vmax.xlane.f32.xlu0 %v1282_v30  ;;  %v1220_v35 = vpop.f32.mrb[35].mxu0 }
 0x3d7   : > { %v1281_v37 = vmul.f32 0.17677669, %v1220_v35 }
 0x3d8   : > { %1302 = vmax.xlane.f32.xlu1 %v1283_v56 }
 0x3da   : > { %1296 = vmax.xlane.f32.xlu0 %v1280_v36 }
 0x3db   : > { %v4677_v38 = vpop.f32.mrb[36].mxu0 }
 0x3dc   : > { %v6539_v32 = vmul.f32 0.17677669, %v4677_v38  ;;  %1298 = vmax.xlane.f32.xlu1 %v1281_v37  ;;  %v1233_v57 = vpop.f32.mrb[37].mxu0 }
 0x3dd   : > { %v4678_v42 = vpop.f32.mrb[38].mxu0  ;;  %v6544_v47 = vmul.f32 0.17677669, %v1233_v57 }
 0x3de   : > { %v6541_v44 = vmul.f32 0.17677669, %v4678_v42  ;;  %1308 = vmax.xlane.f32.xlu0 %v6539_v32  ;;  %v1236_v45 = vpop.f32.mrb[39].mxu0 }
 0x3df   : > { %v6547_v50 = vmul.f32 0.17677669, %v1236_v45 }
 0x3e0   : > { %1310 = vmax.xlane.f32.xlu1 %v6541_v44 }
 0x3e2   : > { %1304 = vmax.xlane.f32.xlu0 %v6544_v47 }
 0x3e3   : > { %v4681_v51 = vpop.f32.mrb[40].mxu0 }
 0x3e4   : > { %v6550_v4 = vmul.f32 0.17677669, %v4681_v51  ;;  %1306 = vmax.xlane.f32.xlu1 %v6547_v50  ;;  %v1249_v52 = vpop.f32.mrb[41].mxu0 }
 0x3e5   : > { %v4682_v53 = vpop.f32.mrb[42].mxu0  ;;  %v6556_v17 = vmul.f32 0.17677669, %v1249_v52 }
 0x3e6   : > { %v6553_v54 = vmul.f32 0.17677669, %v4682_v53  ;;  %1316 = vmax.xlane.f32.xlu0 %v6550_v4  ;;  %v1252_v58 = vpop.f32.mrb[43].mxu0 }
 0x3e7   : > { %v6559_v60 = vmul.f32 0.17677669, %v1252_v58 }
 0x3e8   : > { %1318 = vmax.xlane.f32.xlu1 %v6553_v54 }
 0x3ea   : > { %1312 = vmax.xlane.f32.xlu0 %v6556_v17 }
 0x3eb   : > { %v4685_v13 = vpop.f32.mrb[44].mxu0 }
 0x3ec   : > { %v6562_v61 = vmul.f32 0.17677669, %v4685_v13  ;;  %1314 = vmax.xlane.f32.xlu1 %v6559_v60  ;;  %v1265_v28 = vpop.f32.mrb[45].mxu0 }
 0x3ed   : > { %v4686_v63 = vpop.f32.mrb[46].mxu0  ;;  %v6566_v1 = vmul.f32 0.17677669, %v1265_v28 }
 0x3ee   : > { %1324 = vmax.xlane.f32.xlu0 %v6562_v61  ;;  %v1268_v14 = vpop.f32.mrb[47].mxu0  ;;  %v6573_v2 = vmul.f32 0.17677669, %v4686_v63 }
 0x3ef   : > { %v6576_v40 = vmul.f32 0.17677669, %v1268_v14 }
 0x3f2   : > { %1320 = vmax.xlane.f32.xlu0 %v6566_v1 }
 0x3fd   : > { %1583 = vrot.lane.b32.xlu1 %v6473_v3, %s5928_s3 }
 0x408   : > { %1581 = vrot.lane.b32.xlu0 %v6457_v49, %s5928_s3 }
 0x421   : > { %1326 = vmax.xlane.f32.xlu1 %v6573_v2 }
 0x425   : > { %1322 = vmax.xlane.f32.xlu1 %v6576_v40 }
 0x463   : > { %v1301_v16 = vpop.xlane.xlu0 %1300 }
 0x464   : > { %v1330_v10 = vsub.f32 %v1282_v30, %v1301_v16 }
 0x465   : > { %v1303_v41 = vpop.xlane.xlu1 %1302 }
 0x466   : > { %v1348_v21 = vmul.f32 1.442695, %v1330_v10  ;;  %v1331_v23 = vsub.f32 %v1283_v56, %v1303_v41 }
 0x467   : > { %v1297_v29 = vpop.xlane.xlu0 %1296 }
 0x468   : > { %5330 = vpow2.f32 %v1348_v21  ;;  %v1350_v31 = vmul.f32 1.442695, %v1331_v23  ;;  %v1328_v24 = vsub.f32 %v1280_v36, %v1297_v29 }
 0x469   : > { %v1299_v35 = vpop.xlane.xlu1 %1298 }
 0x46a   : > { %5332 = vpow2.f32 %v1350_v31  ;;  %v1344_v38 = vmul.f32 1.442695, %v1328_v24  ;;  %v1329_v57 = vsub.f32 %v1281_v37, %v1299_v35 }
 0x46b   : > { %v1309_v36 = vpop.xlane.xlu0 %1308 }
 0x46c   : > { %5334 = vpow2.f32 %v1344_v38  ;;  %v1346_v42 = vmul.f32 1.442695, %v1329_v57  ;;  %v1334_v28 = vsub.f32 %v6539_v32, %v1309_v36 }
 0x46d   : > { %v1311_v53 = vpop.xlane.xlu1 %1310 }
 0x46e   : > { %5336 = vpow2.f32 %v1346_v42  ;;  %v1356_v16 = vmul.f32 1.442695, %v1334_v28  ;;  %v1335_v21 = vsub.f32 %v6541_v44, %v1311_v53 }
 0x46f   : > { %v1305_v37 = vpop.xlane.xlu0 %1304 }
 0x470   : > { %v1332_v63 = vsub.f32 %v6544_v47, %v1305_v37  ;;  %5338 = vpow2.f32 %v1356_v16  ;;  %v1358_v35 = vmul.f32 1.442695, %v1335_v21 }
 0x471   : > { %v1307_v13 = vpop.xlane.xlu1 %1306 }
 0x472   : > { %v6581_v45 = vpop.eup %5330  ;;  %v1333_v10 = vsub.f32 %v6547_v50, %v1307_v13  ;;  %v1352_v23 = vmul.f32 1.442695, %v1332_v63 }
 0x473   : > { %1380 = vadd.xlane.f32.xlu0 %v6581_v45  ;;  %v1317_v52 = vpop.xlane.xlu0 %1316 }
 0x474   : > { %v6584_v51 = vpop.eup %5332  ;;  %v1354_v29 = vmul.f32 1.442695, %v1333_v10  ;;  %5340 = vpow2.f32 %v1352_v23  ;;  %v1338_v38 = vsub.f32 %v6550_v4, %v1317_v52 }
 0x475   : > { %1382 = vadd.xlane.f32.xlu1 %v6584_v51  ;;  %v1319_v41 = vpop.xlane.xlu1 %1318 }
 0x476   : > { %v6587_v30 = vpop.eup %5334  ;;  %5342 = vpow2.f32 %v1354_v29  ;;  %v1364_v50 = vmul.f32 1.442695, %v1338_v38  ;;  %v1339_v36 = vsub.f32 %v6553_v54, %v1319_v41 }
 0x477   : > { %1376 = vadd.xlane.f32.xlu0 %v6587_v30  ;;  %v1313_v58 = vpop.xlane.xlu0 %1312  ;;  %5344 = vpow2.f32 %v1358_v35 }
 0x478   : > { %v6590_v56 = vpop.eup %5336  ;;  %v1336_v42 = vsub.f32 %v6556_v17, %v1313_v58 }
 0x479   : > { %1378 = vadd.xlane.f32.xlu1 %v6590_v56  ;;  %v1315_v32 = vpop.xlane.xlu1 %1314 }
 0x47a   : > { %v1360_v53 = vmul.f32 1.442695, %v1336_v42  ;;  %v1337_v54 = vsub.f32 %v6559_v60, %v1315_v32 }
 0x47b   : > { %v1325_v14 = vpop.xlane.xlu0 %1324 }
 0x47c   : > { %v1342_v31 = vsub.f32 %v6562_v61, %v1325_v14  ;;  %v6608_v61 = vpop.eup %5338  ;;  %v1362_v16 = vmul.f32 1.442695, %v1337_v54 }
 0x47d   : > { %v6606_v37 = vpop.permute.xlu1 %1583 }
 0x47e   : > { %v1372_v47 = vmul.f32 1.442695, %v1342_v31  ;;  %v6611_v4 = vpop.eup %5340 }
 0x47f   : > { %v1321_v24 = vpop.xlane.xlu0 %1320 }
 0x480   : > { %v1340_v57 = vsub.f32 %v6566_v1, %v1321_v24  ;;  %5346 = vpow2.f32 %v1372_v47  ;;  %v1366_v1 = vmul.f32 1.442695, %v1339_v36  ;;  %v6614_v17 = vpop.eup %5342 }
 0x481   : > { %5348 = vpow2.f32 %v1364_v50  ;;  %v6619_v13 = vpop.eup %5344 }
 0x482   : > { %v1368_v44 = vmul.f32 1.442695, %v1340_v57 }
 0x483   : > { %v1582_v24 = vpop.permute.xlu0 %1581 }
 0x484   : > { %5350 = vpow2.f32 %v1368_v44 }
 0x485   : > { %5352 = vpow2.f32 %v1360_v53 }
 0x486   : > { %5354 = vpow2.f32 %v1366_v1 }
 0x48a   : > { %1587 = vrot.lane.b32.xlu1 %v6499_v22, %s5928_s3  ;;  %v6622_v14 = vpop.eup %5346 }
 0x48b   : > { %v6626_v60 = vpop.eup %5348 }
 0x48d   : > { %1585 = vrot.lane.b32.xlu0 %v6489_v59, %s5928_s3 }
 0x4ac   : > { %1388 = vadd.xlane.f32.xlu0 %v6608_v61 }
 0x4ae   : > { %v1327_v52 = vpop.xlane.xlu1 %1326  ;;  %1384 = vadd.xlane.f32.xlu1 %v6611_v4 }
 0x4af   : > { %v1343_v58 = vsub.f32 %v6573_v2, %v1327_v52  ;;  %v6629_v2 = vpop.eup %5350 }
 0x4b0   : > { %1386 = vadd.xlane.f32.xlu0 %v6614_v17  ;;  %v6632_v21 = vpop.eup %5352 }
 0x4b1   : > { %v1374_v28 = vmul.f32 1.442695, %v1343_v58  ;;  %v6635_v23 = vpop.eup %5354 }
 0x4b2   : > { %v1323_v63 = vpop.xlane.xlu1 %1322  ;;  %1390 = vadd.xlane.f32.xlu1 %v6619_v13 }
 0x4b3   : > { %5356 = vpow2.f32 %v1374_v28  ;;  %v1341_v10 = vsub.f32 %v6576_v40, %v1323_v63  ;;  %v1618_v28 = vsel %vm1134_vm0, %v6535_v27, 0 }
 0x4b4   : > { %1404 = vadd.xlane.f32.xlu0 %v6622_v14  ;;  %5358 = vpow2.f32 %v1362_v16 }
 0x4b5   : > { %v1370_v41 = vmul.f32 1.442695, %v1341_v10 }
 0x4b6   : > { %1396 = vadd.xlane.f32.xlu1 %v6626_v60 }
 0x4b7   : > { %5360 = vpow2.f32 %v1370_v41 }
 0x4b8   : > { %1400 = vadd.xlane.f32.xlu0 %v6629_v2 }
 0x4ba   : > { %1392 = vadd.xlane.f32.xlu1 %v6632_v21 }
 0x4bd   : > { %v6637_v40 = vpop.eup %5356 }
 0x4be   : > { %1398 = vadd.xlane.f32.xlu1 %v6635_v23  ;;  %1406 = vadd.xlane.f32.xlu0 %v6637_v40  ;;  %v6641_v29 = vpop.eup %5358 }
 0x4c1   : > { %v6644_v31 = vpop.eup %5360 }
 0x4c2   : > { %1394 = vadd.xlane.f32.xlu1 %v6641_v29 }
 0x4c6   : > { %1402 = vadd.xlane.f32.xlu1 %v6644_v31 }
 0x4d4   : > { %1589 = vrot.lane.b32.xlu0 %v6507_v7, %s5928_s3 }
 0x4d7   : > { %1591 = vrot.lane.b32.xlu1 %v6515_v48, %s5928_s3 }
 0x4d8   : > { %1553 = vrot.lane.b32.xlu0 %v6419_v33, %s5928_s3 }
 0x4db   : > { %1555 = vrot.lane.b32.xlu1 %v6436_v18, %s5928_s3 }
 0x4dc   : > { %1557 = vrot.lane.b32.xlu0 %v6454_v34, %s5928_s3 }
 0x4df   : > { %1559 = vrot.lane.b32.xlu1 %v6470_v43, %s5928_s3 }
 0x4e0   : > { %1561 = vrot.lane.b32.xlu0 %v6486_v55, %s5928_s3 }
 0x4e3   : > { %1563 = vrot.lane.b32.xlu1 %v6497_v62, %s5928_s3 }
 0x4e4   : > { %1565 = vrot.lane.b32.xlu0 %v6505_v5, %s5928_s3 }
 0x4e7   : > { %1567 = vrot.lane.b32.xlu1 %v6513_v20, %s5928_s3 }
 0x4e8   : > { %1914 = vrot.lane.b32.xlu0 %v6433_v8, %s5928_s3 }
 0x4eb   : > { %1916 = vrot.lane.b32.xlu1 %v6431_v6, %s5928_s3 }
 0x4ec   : > { %1918 = vrot.lane.b32.xlu0 %v6451_v12, %s5928_s3 }
 0x4ef   : > { %1920 = vrot.lane.b32.xlu1 %v6448_v26, %s5928_s3 }
 0x4f0   : > { %1922 = vrot.lane.b32.xlu0 %v6467_v39, %s5928_s3 }
 0x4f3   : > { %1924 = vrot.lane.b32.xlu1 %v6464_v15, %s5928_s3 }
 0x4f4   : > { %1926 = vrot.lane.b32.xlu0 %v6483_v11, %s5928_s3 }
 0x4f7   : > { %1928 = vrot.lane.b32.xlu1 %v6480_v25, %s5928_s3 }
 0x4f8   : > { %2051 = vrot.lane.b32.xlu0 %v6421_v0, %s5929_s26 }
 0x4fb   : > { %2053 = vrot.lane.b32.xlu1 %v6439_v19, %s5929_s26 }
 0x500   : > { %v1381_v35 = vpop.xlane.xlu0 %1380 }
 0x502   : > { %v1383_v38 = vpop.xlane.xlu1 %1382 }
 0x503   : > { %5362 = vrcp.f32 %v1383_v38 }
 0x504   : > { %v1377_v32 = vpop.xlane.xlu0 %1376 }
 0x505   : > { %5364 = vrcp.f32 %v1377_v32 }
 0x506   : > { %5366 = vrcp.f32 %v1381_v35  ;;  %v1379_v47 = vpop.xlane.xlu1 %1378 }
 0x507   : > { %5368 = vrcp.f32 %v1379_v47 }
 0x508   : > { %v1586_v27 = vpop.permute.xlu0 %1585 }
 0x509   : > { %v1630_v63 = vsel %vm1134_vm0, %v1586_v27, 0 }
 0x50d   : > { %v5363_v57 = vpop.eup %5362 }
 0x50e   : > { %v1415_v36 = vmul.f32 %v5363_v57, %v6584_v51  ;;  %v1621_v51 = vsel %vm1134_vm0, %v6579_v9, 0 }
 0x50f   : > { %v5365_v50 = vpop.eup %5364 }
 0x510   : > { %v5367_v42 = vpop.eup %5366  ;;  %v1409_v53 = vmul.f32 %v5365_v50, %v6587_v30  ;;  %v1624_v30 = vsel %vm1134_vm0, %v1582_v24, 0 }
 0x511   : > { %v5369_v44 = vpop.eup %5368  ;;  %v1413_v52 = vmul.f32 %v5367_v42, %v6581_v45  ;;  %v1627_v45 = vsel %vm1134_vm0, %v6606_v37, 0 }
 0x512   : > { %v1411_v1 = vmul.f32 %v5369_v44, %v6590_v56  ;;  %v1588_v56 = vpop.permute.xlu1 %1587 }
 0x513   : > { %v1441_v58 = vpack.c.bf16 %v1415_v36, %v1413_v52 }
 0x514   : > { %v1440_v54 = vpack.c.bf16 %v1411_v1, %v1409_v53 }
 0x516   : > { %4703 = vmatprep.mubr.bf16.mxu1 %v1440_v54 }
 0x517   : > { %4704 = vmatmul.mubr.bf16.vlgmr.msra.gmra.mrb[16].mxu1 %v1441_v58 }
 0x518   : > { %4720 = vmatpush3.bf16.xpose.msra.mxu1 %v1618_v28 }
 0x519   : > { %4984 = vmatprep.subr.msk.bf16.mxu1 %vm1134_vm0, %v6579_v9 }
 0x520   : > { %4722 = vmatpush3.bf16.xpose.msra.mxu1 %v1621_v51 }
 0x521   : > { %4985 = vmatprep.subr.msk.bf16.mxu1 %vm1134_vm0, %v1582_v24  ;;  %v1633_v24 = vsel %vm1134_vm0, %v1588_v56, 0 }
 0x528   : > { %4724 = vmatpush3.bf16.xpose.msra.mxu1 %v1624_v30 }
 0x529   : > { %4986 = vmatprep.subr.msk.bf16.mxu1 %vm1134_vm0, %v6606_v37 }
 0x530   : > { %4726 = vmatpush3.bf16.xpose.msra.mxu1 %v1627_v45 }
 0x531   : > { %4987 = vmatprep.subr.msk.bf16.mxu1 %vm1134_vm0, %v1586_v27 }
 0x538   : > { %4728 = vmatpush3.bf16.xpose.msra.mxu1 %v1630_v63 }
 0x539   : > { %4988 = vmatprep.subr.msk.bf16.mxu1 %vm1134_vm0, %v1588_v56  ;;  %v1389_v9 = vpop.xlane.xlu0 %1388 }
 0x53b   : > { %v1385_v16 = vpop.xlane.xlu1 %1384 }
 0x53c   : > { %5370 = vrcp.f32 %v1385_v16 }
 0x53d   : > { %5372 = vrcp.f32 %v1389_v9  ;;  %v1387_v10 = vpop.xlane.xlu0 %1386 }
 0x53e   : > { %5374 = vrcp.f32 %v1387_v10 }
 0x53f   : > { %v1391_v41 = vpop.xlane.xlu1 %1390 }
 0x540   : > { %5376 = vrcp.f32 %v1391_v41  ;;  %4730 = vmatpush3.bf16.xpose.msra.mxu1 %v1633_v24 }
 0x541   : > { %v1405_v37 = vpop.xlane.xlu0 %1404 }
 0x543   : > { %v1397_v35 = vpop.xlane.xlu1 %1396 }
 0x545   : > { %v1401_v47 = vpop.xlane.xlu0 %1400 }
 0x546   : > { %v5371_v38 = vpop.eup %5370 }
 0x547   : > { %v5373_v32 = vpop.eup %5372  ;;  %v1393_v57 = vpop.xlane.xlu1 %1392  ;;  %v1417_v42 = vmul.f32 %v5371_v38, %v6611_v4 }
 0x548   : > { %v5375_v50 = vpop.eup %5374  ;;  %v1421_v54 = vmul.f32 %v5373_v32, %v6608_v61 }
 0x549   : > { %v1419_v44 = vmul.f32 %v5375_v50, %v6614_v17 }
 0x54a   : > { %v5377_v36 = vpop.eup %5376 }
 0x54b   : > { %v1399_v53 = vpop.xlane.xlu1 %1398  ;;  %v1407_v1 = vpop.xlane.xlu0 %1406  ;;  %v1442_v52 = vpack.c.bf16 %v1419_v44, %v1417_v42  ;;  %v1423_v58 = vmul.f32 %v5377_v36, %v6619_v13 }
 0x54c   : > { %5378 = vrcp.f32 %v1399_v53 }
 0x54d   : > { %4707 = vmatprep.mubr.bf16.mxu1 %v1442_v52  ;;  %v1443_v28 = vpack.c.bf16 %v1423_v58, %v1421_v54  ;;  %5380 = vrcp.f32 %v1393_v57 }
 0x54e   : > { %5382 = vrcp.f32 %v1397_v35 }
 0x54f   : > { %v1395_v51 = vpop.xlane.xlu1 %1394  ;;  %4708 = vmatmul.mubr.bf16.gmra.mrb[20].mxu1 %v1443_v28  ;;  %v1590_v30 = vpop.permute.xlu0 %1589 }
 0x550   : > { %5384 = vrcp.f32 %v1395_v51  ;;  %4989 = vmatprep.subr.msk.bf16.mxu1 %vm1134_vm0, %v1590_v30  ;;  %v1636_v4 = vsel %vm1134_vm0, %v1590_v30, 0 }
 0x551   : > { %4732 = vmatpush3.bf16.xpose.msra.mxu1 %v1636_v4  ;;  %5386 = vrcp.f32 %v1401_v47 }
 0x553   : > { %v1403_v17 = vpop.xlane.xlu1 %1402  ;;  %v1554_v45 = vpop.permute.xlu0 %1553 }
 0x554   : > { %5388 = vrcp.f32 %v1403_v17 }
 0x555   : > { %5390 = vrcp.f32 %v1407_v1 }
 0x556   : > { %v5379_v61 = vpop.eup %5378  ;;  %5392 = vrcp.f32 %v1405_v37 }
 0x557   : > { %v1592_v13 = vpop.permute.xlu1 %1591  ;;  %v1558_v27 = vpop.permute.xlu0 %1557  ;;  %v1431_v10 = vmul.f32 %v5379_v61, %v6635_v23 }
 0x558   : > { %v5381_v56 = vpop.eup %5380  ;;  %4990 = vmatprep.subr.msk.bf16.mxu1 %vm1134_vm0, %v1592_v13  ;;  %v1639_v63 = vsel %vm1134_vm0, %v1592_v13, 0 }
 0x559   : > { %v5383_v9 = vpop.eup %5382  ;;  %4734 = vmatpush3.bf16.xpose.msra.mxu1 %v1639_v63  ;;  %v1425_v35 = vmul.f32 %v5381_v56, %v6632_v21 }
 0x55a   : > { %v5385_v16 = vpop.eup %5384  ;;  %v1429_v37 = vmul.f32 %v5383_v9, %v6626_v60 }
 0x55b   : > { %v1556_v41 = vpop.permute.xlu1 %1555  ;;  %v1562_v24 = vpop.permute.xlu0 %1561  ;;  %v1427_v38 = vmul.f32 %v5385_v16, %v6641_v29 }
 0x55c   : > { %v5387_v32 = vpop.eup %5386  ;;  %v1445_v50 = vpack.c.bf16 %v1431_v10, %v1429_v37 }
 0x55d   : > { %v1444_v47 = vpack.c.bf16 %v1427_v38, %v1425_v35  ;;  %v1433_v53 = vmul.f32 %v5387_v32, %v6629_v2 }
 0x55e   : > { %v5389_v57 = vpop.eup %5388 }
 0x55f   : > { %v5391_v42 = vpop.eup %5390  ;;  %v1560_v44 = vpop.permute.xlu1 %1559  ;;  %4711 = vmatprep.mubr.bf16.mxu1 %v1444_v47  ;;  %v1435_v23 = vmul.f32 %v5389_v57, %v6644_v31 }
 0x560   : > { %v1566_v36 = vpop.permute.xlu0 %1565  ;;  %4712 = vmatmul.mubr.bf16.gmra.mrb[24].mxu1 %v1445_v50  ;;  %v5393_v1 = vpop.eup %5392  ;;  %v1439_v21 = vmul.f32 %v5391_v42, %v6637_v40 }
 0x561   : > { %v1446_v52 = vpack.c.bf16 %v1435_v23, %v1433_v53  ;;  %v1437_v60 = vmul.f32 %v5393_v1, %v6622_v14 }
 0x563   : > { %v1564_v29 = vpop.permute.xlu1 %1563  ;;  %4715 = vmatprep.mubr.bf16.mxu1 %v1446_v52  ;;  %v1447_v58 = vpack.c.bf16 %v1439_v21, %v1437_v60 }
 0x564   : > { %v1915_v54 = vpop.permute.xlu0 %1914 }
 0x565   : > { %4751 = vmatprep.subr.bf16.mxu0 %v1915_v54 }
 0x566   : > { %4752 = vmatpush3.bf16.msra.mxu0 %v1915_v54 }
 0x567   : > { %v1568_v28 = vpop.permute.xlu1 %1567 }
 0x568   : > { %4716 = vmatmul.mubr.bf16.gmra.mrb[28].mxu1 %v1447_v58  ;;  %v1919_v31 = vpop.permute.xlu0 %1918 }
 0x569   : > { %4735 = vmatprep.mubr.msk.bf16.mxu1 %vm1134_vm0, %v1554_v45 }
 0x56b   : > { %v1917_v2 = vpop.permute.xlu1 %1916 }
 0x56c   : > { %4753 = vmatprep.subr.bf16.mxu0 %v1917_v2  ;;  %v1923_v51 = vpop.permute.xlu0 %1922 }
 0x56d   : > { %4754 = vmatpush3.bf16.msra.mxu0 %v1917_v2 }
 0x56e   : > { %4755 = vmatprep.subr.bf16.mxu0 %v1919_v31 }
 0x56f   : > { %v1921_v40 = vpop.permute.xlu1 %1920 }
 0x570   : > { %4736 = vmatmul.mubr.msk.bf16.vlgmr.msra.gmra.mrb[32].mxu1 %vm1134_vm0, %v1556_v41  ;;  %v1927_v30 = vpop.permute.xlu0 %1926 }
 0x571   : > { %4739 = vmatprep.mubr.msk.bf16.mxu1 %vm1134_vm0, %v1558_v27  ;;  %4756 = vmatpush3.bf16.msra.mxu0 %v1919_v31 }
 0x572   : > { %4757 = vmatprep.subr.bf16.mxu0 %v1921_v40 }
 0x573   : > { %v1925_v14 = vpop.permute.xlu1 %1924 }
 0x574   : > { %v6730_v17 = vpop.permute.xlu0 %2051 }
 0x575   : > { %4758 = vmatpush3.bf16.msra.mxu0 %v1921_v40 }
 0x576   : > { %4759 = vmatprep.subr.bf16.mxu0 %v1923_v51 }
 0x577   : > { %v1929_v4 = vpop.permute.xlu1 %1928 }
 0x578   : > { %4740 = vmatmul.mubr.msk.bf16.gmra.mrb[36].mxu1 %vm1134_vm0, %v1560_v44 }
 0x579   : > { %4743 = vmatprep.mubr.msk.bf16.mxu1 %vm1134_vm0, %v1562_v24  ;;  %4760 = vmatpush3.bf16.msra.mxu0 %v1923_v51 }
 0x57a   : > { %4761 = vmatprep.subr.bf16.mxu0 %v1925_v14 }
 0x57d   : > { %4762 = vmatpush3.bf16.msra.mxu0 %v1925_v14 }
 0x57e   : > { %4763 = vmatprep.subr.bf16.mxu0 %v1927_v30 }
 0x580   : > { %4744 = vmatmul.mubr.msk.bf16.gmra.mrb[40].mxu1 %vm1134_vm0, %v1564_v29 }
 0x581   : > { %4747 = vmatprep.mubr.msk.bf16.mxu1 %vm1134_vm0, %v1566_v36  ;;  %4764 = vmatpush3.bf16.msra.mxu0 %v1927_v30 }
 0x582   : > { %4765 = vmatprep.subr.bf16.mxu0 %v1929_v4 }
 0x585   : > { %4766 = vmatpush3.bf16.msra.mxu0 %v1929_v4 }
 0x586   : > { %4991 = vmatprep.subr.msk.bf16.mxu0 %vm1134_vm0, %v6730_v17 }
 0x588   : > { %4748 = vmatmul.mubr.msk.bf16.gmra.mrb[44].mxu1 %vm1134_vm0, %v1568_v28 }
 0x5ea   : > { %v6735_v45 = vpop.f32.mrb[16].mxu1 }
 0x5eb   : > { %7895 = vst [vmem:[#allocation18_spill] sm:$0xff] %v6735_v45  ;;  %v6737_v61 = vpop.f32.mrb[17].mxu1 }
 0x5ec   : > { %7896 = vst [vmem:[#allocation19_spill] sm:$0xff] %v6737_v61  ;;  %v6739_v13 = vpop.f32.mrb[18].mxu1 }
 0x5ed   : > { %7897 = vst [vmem:[#allocation20_spill] sm:$0xff] %v6739_v13  ;;  %v6741_v27 = vpop.f32.mrb[19].mxu1 }
 0x5ee   : > { %7898 = vst [vmem:[#allocation21_spill] sm:$0xff] %v6741_v27 }
 0x622   : > { %v6743_v56 = vpop.f32.mrb[20].mxu1 }
 0x623   : > { %7899 = vst [vmem:[#allocation22_spill] sm:$0xff] %v6743_v56  ;;  %v6745_v63 = vpop.f32.mrb[21].mxu1 }
 0x624   : > { %7900 = vst [vmem:[#allocation23_spill] sm:$0xff] %v6745_v63  ;;  %v6747_v9 = vpop.f32.mrb[22].mxu1 }
 0x625   : > { %7901 = vst [vmem:[#allocation24_spill] sm:$0xff] %v6747_v9  ;;  %v6749_v16 = vpop.f32.mrb[23].mxu1 }
 0x626   : > { %7902 = vst [vmem:[#allocation25_spill] sm:$0xff] %v6749_v16 }
 0x633   : > { %v6751_v10 = vpop.f32.mrb[24].mxu1 }
 0x634   : > { %7903 = vst [vmem:[#allocation26_spill] sm:$0xff] %v6751_v10  ;;  %v6753_v41 = vpop.f32.mrb[25].mxu1 }
 0x635   : > { %7904 = vst [vmem:[#allocation27_spill] sm:$0xff] %v6753_v41  ;;  %v6755_v24 = vpop.f32.mrb[26].mxu1 }
 0x636   : > { %7905 = vst [vmem:[#allocation28_spill] sm:$0xff] %v6755_v24  ;;  %v6757_v35 = vpop.f32.mrb[27].mxu1 }
 0x637   : > { %7906 = vst [vmem:[#allocation29_spill] sm:$0xff] %v6757_v35 }
 0x63b   : > { %v6759_v38 = vpop.f32.mrb[28].mxu1 }
 0x63c   : > { %7907 = vst [vmem:[#allocation30_spill] sm:$0xff] %v6759_v38  ;;  %v6761_v32 = vpop.f32.mrb[29].mxu1 }
 0x63d   : > { %7908 = vst [vmem:[#allocation31_spill] sm:$0xff] %v6761_v32  ;;  %v6763_v37 = vpop.f32.mrb[30].mxu1 }
 0x63e   : > { %7909 = vst [vmem:[#allocation32_spill] sm:$0xff] %v6763_v37  ;;  %v6765_v47 = vpop.f32.mrb[31].mxu1 }
 0x63f   : > { %7910 = vst [vmem:[#allocation33_spill] sm:$0xff] %v6765_v47 }
 0x643   : > { %v4737_v57 = vpop.f32.mrb[32].mxu1 }
 0x644   : > { %v1740_v50 = vmul.f32 0.17677669, %v4737_v57  ;;  %v1675_v42 = vpop.f32.mrb[33].mxu1 }
 0x645   : > { %v4738_v44 = vpop.f32.mrb[34].mxu1  ;;  %v1738_v23 = vmul.f32 0.17677669, %v1675_v42 }
 0x646   : > { %1758 = vmax.xlane.f32.xlu0 %v1740_v50  ;;  %v1678_v36 = vpop.f32.mrb[35].mxu1  ;;  %v1741_v52 = vmul.f32 0.17677669, %v4738_v44 }
 0x647   : > { %v1739_v53 = vmul.f32 0.17677669, %v1678_v36 }
 0x649   : > { %1756 = vmax.xlane.f32.xlu1 %v1739_v53 }
 0x64a   : > { %1754 = vmax.xlane.f32.xlu0 %v1738_v23 }
 0x64b   : > { %v4741_v1 = vpop.f32.mrb[36].mxu1 }
 0x64c   : > { %v1691_v21 = vpop.f32.mrb[37].mxu1  ;;  %v6769_v58 = vmul.f32 0.17677669, %v4741_v1 }
 0x64d   : > { %v4742_v29 = vpop.f32.mrb[38].mxu1  ;;  %v6775_v31 = vmul.f32 0.17677669, %v1691_v21 }
 0x64e   : > { %v6767_v54 = vmul.f32 0.17677669, %v4742_v29  ;;  %1760 = vmax.xlane.f32.xlu0 %v1741_v52  ;;  %v1694_v60 = vpop.f32.mrb[39].mxu1 }
 0x64f   : > { %v6772_v28 = vmul.f32 0.17677669, %v1694_v60 }
 0x650   : > { %1768 = vmax.xlane.f32.xlu1 %v6767_v54 }
 0x652   : > { %1766 = vmax.xlane.f32.xlu0 %v6769_v58 }
 0x653   : > { %v4745_v2 = vpop.f32.mrb[40].mxu1 }
 0x654   : > { %1764 = vmax.xlane.f32.xlu1 %v6772_v28  ;;  %v1707_v40 = vpop.f32.mrb[41].mxu1  ;;  %v6781_v4 = vmul.f32 0.17677669, %v4745_v2 }
 0x655   : > { %v4746_v51 = vpop.f32.mrb[42].mxu1  ;;  %v6787_v44 = vmul.f32 0.17677669, %v1707_v40 }
 0x656   : > { %v6778_v14 = vmul.f32 0.17677669, %v4746_v51  ;;  %1762 = vmax.xlane.f32.xlu0 %v6775_v31  ;;  %v1710_v30 = vpop.f32.mrb[43].mxu1  ;;  %v6807_v51 = vpop.permute.xlu1 %2053 }
 0x657   : > { %v6784_v57 = vmul.f32 0.17677669, %v1710_v30 }
 0x658   : > { %1776 = vmax.xlane.f32.xlu1 %v6778_v14 }
 0x65a   : > { %1774 = vmax.xlane.f32.xlu0 %v6781_v4 }
 0x65b   : > { %v4749_v42 = vpop.f32.mrb[44].mxu1 }
 0x65c   : > { %1772 = vmax.xlane.f32.xlu1 %v6784_v57  ;;  %v1723_v36 = vpop.f32.mrb[45].mxu1  ;;  %v6791_v29 = vmul.f32 0.17677669, %v4749_v42 }
 0x65d   : > { %v4750_v1 = vpop.f32.mrb[46].mxu1  ;;  %v6794_v60 = vmul.f32 0.17677669, %v1723_v36 }
 0x65e   : > { %1770 = vmax.xlane.f32.xlu0 %v6787_v44  ;;  %v1726_v21 = vpop.f32.mrb[47].mxu1  ;;  %v6801_v2 = vmul.f32 0.17677669, %v4750_v1 }
 0x65f   : > { %v6804_v40 = vmul.f32 0.17677669, %v1726_v21 }
 0x662   : > { %1782 = vmax.xlane.f32.xlu0 %v6791_v29 }
 0x666   : > { %1778 = vmax.xlane.f32.xlu0 %v6794_v60 }
 0x66d   : > { %2057 = vrot.lane.b32.xlu1 %v6473_v3, %s5929_s26 }
 0x67c   : > { %2055 = vrot.lane.b32.xlu0 %v6457_v49, %s5929_s26 }
 0x691   : > { %1784 = vmax.xlane.f32.xlu1 %v6801_v2 }
 0x695   : > { %1780 = vmax.xlane.f32.xlu1 %v6804_v40 }
 0x6d3   : > { %v1759_v30 = vpop.xlane.xlu0 %1758 }
 0x6d4   : > { %v1788_v42 = vsub.f32 %v1740_v50, %v1759_v30 }
 0x6d6   : > { %v1806_v36 = vmul.f32 1.442695, %v1788_v42  ;;  %v1757_v46 = vpop.xlane.xlu1 %1756 }
 0x6d7   : > { %v1787_v32 = vsub.f32 %v1739_v53, %v1757_v46  ;;  %v1755_v47 = vpop.xlane.xlu0 %1754 }
 0x6d8   : > { %5394 = vpow2.f32 %v1806_v36  ;;  %v1786_v38 = vsub.f32 %v1738_v23, %v1755_v47 }
 0x6d9   : > { %v1804_v37 = vmul.f32 1.442695, %v1787_v32 }
 0x6da   : > { %v1802_v41 = vmul.f32 1.442695, %v1786_v38 }
 0x6db   : > { %5396 = vpow2.f32 %v1804_v37  ;;  %v1761_v1 = vpop.xlane.xlu0 %1760 }
 0x6dc   : > { %5398 = vpow2.f32 %v1802_v41  ;;  %v1789_v35 = vsub.f32 %v1741_v52, %v1761_v1 }
 0x6dd   : > { %v1769_v38 = vpop.xlane.xlu1 %1768 }
 0x6de   : > { %v1808_v21 = vmul.f32 1.442695, %v1789_v35  ;;  %v1793_v1 = vsub.f32 %v6767_v54, %v1769_v38 }
 0x6df   : > { %v1767_v41 = vpop.xlane.xlu0 %1766 }
 0x6e0   : > { %5400 = vpow2.f32 %v1808_v21  ;;  %v1792_v37 = vsub.f32 %v6769_v58, %v1767_v41  ;;  %v1816_v56 = vmul.f32 1.442695, %v1793_v1 }
 0x6e1   : > { %v1765_v47 = vpop.xlane.xlu1 %1764 }
 0x6e2   : > { %v6809_v10 = vpop.eup %5394  ;;  %v1814_v23 = vmul.f32 1.442695, %v1792_v37  ;;  %v1791_v30 = vsub.f32 %v6772_v28, %v1765_v47 }
 0x6e3   : > { %1838 = vadd.xlane.f32.xlu1 %v6809_v10  ;;  %v1763_v35 = vpop.xlane.xlu0 %1762 }
 0x6e4   : > { %v1790_v52 = vsub.f32 %v6775_v31, %v1763_v35  ;;  %5402 = vpow2.f32 %v1814_v23  ;;  %v1812_v63 = vmul.f32 1.442695, %v1791_v30 }
 0x6e5   : > { %v6812_v24 = vpop.eup %5396  ;;  %v1777_v42 = vpop.xlane.xlu1 %1776 }
 0x6e6   : > { %v6814_v50 = vpop.eup %5398  ;;  %1836 = vadd.xlane.f32.xlu0 %v6812_v24  ;;  %v1810_v21 = vmul.f32 1.442695, %v1790_v52  ;;  %v1797_v54 = vsub.f32 %v6778_v14, %v1777_v42 }
 0x6e7   : > { %1834 = vadd.xlane.f32.xlu1 %v6814_v50  ;;  %v1775_v32 = vpop.xlane.xlu0 %1774 }
 0x6e8   : > { %v1796_v16 = vsub.f32 %v6781_v4, %v1775_v32  ;;  %5404 = vpow2.f32 %v1810_v21 }
 0x6e9   : > { %v1773_v9 = vpop.xlane.xlu1 %1772  ;;  %5406 = vpow2.f32 %v1812_v63 }
 0x6ea   : > { %v6818_v46 = vpop.eup %5400  ;;  %v1822_v41 = vmul.f32 1.442695, %v1796_v16  ;;  %5408 = vpow2.f32 %v1816_v56  ;;  %v1824_v16 = vmul.f32 1.442695, %v1797_v54 }
 0x6eb   : > { %1840 = vadd.xlane.f32.xlu1 %v6818_v46  ;;  %v1771_v53 = vpop.xlane.xlu0 %1770 }
 0x6ec   : > { %v1794_v31 = vsub.f32 %v6787_v44, %v1771_v53  ;;  %5410 = vpow2.f32 %v1822_v41  ;;  %v1795_v44 = vsub.f32 %v6784_v57, %v1773_v9 }
 0x6ed   : > { %v6836_v4 = vpop.permute.xlu1 %2057 }
 0x6ee   : > { %v1818_v38 = vmul.f32 1.442695, %v1794_v31  ;;  %v6834_v47 = vpop.eup %5402  ;;  %v1820_v32 = vmul.f32 1.442695, %v1795_v44 }
 0x6ef   : > { %v1783_v36 = vpop.xlane.xlu0 %1782 }
 0x6f0   : > { %v1800_v58 = vsub.f32 %v6791_v29, %v1783_v36 }
 0x6f2   : > { %v1830_v28 = vmul.f32 1.442695, %v1800_v58  ;;  %v6840_v56 = vpop.eup %5404 }
 0x6f3   : > { %v1779_v35 = vpop.xlane.xlu0 %1778 }
 0x6f4   : > { %v1798_v37 = vsub.f32 %v6794_v60, %v1779_v35  ;;  %5412 = vpow2.f32 %v1830_v28  ;;  %v6842_v60 = vpop.eup %5406 }
 0x6f5   : > { %5414 = vpow2.f32 %v1818_v38  ;;  %v6847_v23 = vpop.eup %5408 }
 0x6f6   : > { %v1826_v63 = vmul.f32 1.442695, %v1798_v37  ;;  %v6849_v9 = vpop.eup %5410 }
 0x6f7   : > { %v2056_v41 = vpop.permute.xlu0 %2055 }
 0x6f8   : > { %5416 = vpow2.f32 %v1826_v63 }
 0x6f9   : > { %5418 = vpow2.f32 %v1824_v16 }
 0x6fc   : > { %2059 = vrot.lane.b32.xlu0 %v6489_v59, %s5929_s26  ;;  %2061 = vrot.lane.b32.xlu1 %v6499_v22, %s5929_s26 }
 0x6fe   : > { %v6854_v30 = vpop.eup %5412 }
 0x6ff   : > { %v6856_v42 = vpop.eup %5414 }
 0x702   : > { %v6860_v36 = vpop.eup %5416 }
 0x703   : > { %v6862_v1 = vpop.eup %5418 }
 0x71b   : > { %1846 = vadd.xlane.f32.xlu0 %v6834_v47 }
 0x71e   : > { %v1785_v29 = vpop.xlane.xlu1 %1784 }
 0x71f   : > { %v1801_v14 = vsub.f32 %v6801_v2, %v1785_v29  ;;  %1842 = vadd.xlane.f32.xlu0 %v6840_v56 }
 0x720   : > { %1844 = vadd.xlane.f32.xlu1 %v6842_v60 }
 0x721   : > { %v1832_v53 = vmul.f32 1.442695, %v1801_v14 }
 0x722   : > { %v1781_v52 = vpop.xlane.xlu1 %1780 }
 0x723   : > { %5420 = vpow2.f32 %v1832_v53  ;;  %v1799_v57 = vsub.f32 %v6804_v40, %v1781_v52  ;;  %1848 = vadd.xlane.f32.xlu0 %v6847_v23  ;;  %v2092_v53 = vsel %vm1134_vm0, %v6730_v17, 0 }
 0x724   : > { %1854 = vadd.xlane.f32.xlu1 %v6849_v9  ;;  %5422 = vpow2.f32 %v1820_v32 }
 0x725   : > { %v1828_v2 = vmul.f32 1.442695, %v1799_v57 }
 0x727   : > { %1862 = vadd.xlane.f32.xlu0 %v6854_v30  ;;  %5424 = vpow2.f32 %v1828_v2 }
 0x728   : > { %1850 = vadd.xlane.f32.xlu1 %v6856_v42 }
 0x72b   : > { %1858 = vadd.xlane.f32.xlu0 %v6860_v36 }
 0x72c   : > { %1856 = vadd.xlane.f32.xlu1 %v6862_v1 }
 0x72d   : > { %v6866_v40 = vpop.eup %5420 }
 0x72e   : > { %v6868_v21 = vpop.eup %5422 }
 0x72f   : > { %1864 = vadd.xlane.f32.xlu0 %v6866_v40 }
 0x730   : > { %1852 = vadd.xlane.f32.xlu1 %v6868_v21 }
 0x731   : > { %v6872_v58 = vpop.eup %5424 }
 0x734   : > { %1860 = vadd.xlane.f32.xlu1 %v6872_v58 }
 0x745   : > { %2065 = vrot.lane.b32.xlu1 %v6515_v48, %s5929_s26  ;;  %2063 = vrot.lane.b32.xlu0 %v6507_v7, %s5929_s26 }
 0x749   : > { %2037 = vrot.lane.b32.xlu1 %v6436_v18, %s5929_s26  ;;  %2035 = vrot.lane.b32.xlu0 %v6419_v33, %s5929_s26 }
 0x74d   : > { %2041 = vrot.lane.b32.xlu1 %v6470_v43, %s5929_s26  ;;  %2039 = vrot.lane.b32.xlu0 %v6454_v34, %s5929_s26 }
 0x751   : > { %2045 = vrot.lane.b32.xlu1 %v6497_v62, %s5929_s26  ;;  %2043 = vrot.lane.b32.xlu0 %v6486_v55, %s5929_s26 }
 0x755   : > { %2049 = vrot.lane.b32.xlu1 %v6513_v20, %s5929_s26  ;;  %2047 = vrot.lane.b32.xlu0 %v6505_v5, %s5929_s26 }
 0x759   : > { %2382 = vrot.lane.b32.xlu1 %v6431_v6, %s5929_s26  ;;  %2380 = vrot.lane.b32.xlu0 %v6433_v8, %s5929_s26 }
 0x75d   : > { %2386 = vrot.lane.b32.xlu1 %v6448_v26, %s5929_s26  ;;  %2384 = vrot.lane.b32.xlu0 %v6451_v12, %s5929_s26 }
 0x761   : > { %2390 = vrot.lane.b32.xlu1 %v6464_v15, %s5929_s26  ;;  %2388 = vrot.lane.b32.xlu0 %v6467_v39, %s5929_s26 }
 0x765   : > { %2394 = vrot.lane.b32.xlu1 %v6480_v25, %s5929_s26  ;;  %2392 = vrot.lane.b32.xlu0 %v6483_v11, %s5929_s26 }
 0x769   : > { %2519 = vrot.lane.b32.xlu1 %v6439_v19, %s5930_s20  ;;  %2517 = vrot.lane.b32.xlu0 %v6421_v0, %s5930_s20 }
 0x770   : > { %v1839_v31 = vpop.xlane.xlu1 %1838 }
 0x773   : > { %v1837_v35 = vpop.xlane.xlu0 %1836 }
 0x774   : > { %5426 = vrcp.f32 %v1837_v35  ;;  %v1835_v28 = vpop.xlane.xlu1 %1834 }
 0x775   : > { %5428 = vrcp.f32 %v1835_v28 }
 0x776   : > { %5430 = vrcp.f32 %v1839_v31 }
 0x777   : > { %v2060_v17 = vpop.permute.xlu0 %2059 }
 0x778   : > { %v1841_v37 = vpop.xlane.xlu1 %1840 }
 0x779   : > { %5432 = vrcp.f32 %v1841_v37 }
 0x77e   : > { %v5427_v54 = vpop.eup %5426 }
 0x77f   : > { %v5429_v38 = vpop.eup %5428  ;;  %v1869_v63 = vmul.f32 %v5427_v54, %v6812_v24  ;;  %v2095_v24 = vsel %vm1134_vm0, %v6807_v51, 0 }
 0x780   : > { %v1867_v16 = vmul.f32 %v5429_v38, %v6814_v50  ;;  %v5431_v44 = vpop.eup %5430  ;;  %v2101_v50 = vsel %vm1134_vm0, %v6836_v4, 0 }
 0x781   : > { %v1871_v0 = vmul.f32 %v5431_v44, %v6809_v10  ;;  %v2098_v10 = vsel %vm1134_vm0, %v2056_v41, 0 }
 0x782   : > { %v1898_v19 = vpack.c.bf16 %v1869_v63, %v1867_v16 }
 0x783   : > { %v5433_v29 = vpop.eup %5432 }
 0x784   : > { %v1873_v14 = vmul.f32 %v5433_v29, %v6818_v46  ;;  %4767 = vmatprep.mubr.bf16.mxu0 %v1898_v19  ;;  %v2104_v46 = vsel %vm1134_vm0, %v2060_v17, 0 }
 0x786   : > { %v1899_v32 = vpack.c.bf16 %v1873_v14, %v1871_v0 }
 0x788   : > { %4768 = vmatmul.mubr.bf16.vlgmr.msra.gmra.mrb[48].mxu0 %v1899_v32 }
 0x789   : > { %4784 = vmatpush3.bf16.xpose.msra.mxu0 %v2092_v53 }
 0x78a   : > { %4992 = vmatprep.subr.msk.bf16.mxu0 %vm1134_vm0, %v6807_v51  ;;  %v2062_v51 = vpop.permute.xlu1 %2061 }
 0x791   : > { %4786 = vmatpush3.bf16.xpose.msra.mxu0 %v2095_v24 }
 0x792   : > { %4993 = vmatprep.subr.msk.bf16.mxu0 %vm1134_vm0, %v2056_v41  ;;  %v2107_v41 = vsel %vm1134_vm0, %v2062_v51, 0 }
 0x799   : > { %4788 = vmatpush3.bf16.xpose.msra.mxu0 %v2098_v10 }
 0x79a   : > { %4994 = vmatprep.subr.msk.bf16.mxu0 %vm1134_vm0, %v6836_v4 }
 0x7a1   : > { %4790 = vmatpush3.bf16.xpose.msra.mxu0 %v2101_v50 }
 0x7a2   : > { %4995 = vmatprep.subr.msk.bf16.mxu0 %vm1134_vm0, %v2060_v17 }
 0x7a8   : > { %v1847_v52 = vpop.xlane.xlu0 %1846 }
 0x7a9   : > { %4792 = vmatpush3.bf16.xpose.msra.mxu0 %v2104_v46 }
 0x7aa   : > { %4996 = vmatprep.subr.msk.bf16.mxu0 %vm1134_vm0, %v2062_v51 }
 0x7ac   : > { %v1843_v57 = vpop.xlane.xlu0 %1842 }
 0x7ad   : > { %5434 = vrcp.f32 %v1843_v57  ;;  %v1845_v2 = vpop.xlane.xlu1 %1844 }
 0x7ae   : > { %5436 = vrcp.f32 %v1845_v2 }
 0x7af   : > { %5438 = vrcp.f32 %v1847_v52 }
 0x7b0   : > { %v1849_v31 = vpop.xlane.xlu0 %1848 }
 0x7b1   : > { %4794 = vmatpush3.bf16.xpose.msra.mxu0 %v2107_v41  ;;  %5440 = vrcp.f32 %v1849_v31  ;;  %v1855_v4 = vpop.xlane.xlu1 %1854 }
 0x7b4   : > { %v1863_v35 = vpop.xlane.xlu0 %1862 }
 0x7b5   : > { %v1851_v28 = vpop.xlane.xlu1 %1850 }
 0x7b7   : > { %v5435_v37 = vpop.eup %5434 }
 0x7b8   : > { %v5437_v54 = vpop.eup %5436  ;;  %v1859_v38 = vpop.xlane.xlu0 %1858  ;;  %v1875_v63 = vmul.f32 %v5435_v37, %v6840_v56 }
 0x7b9   : > { %v5439_v16 = vpop.eup %5438  ;;  %v1857_v44 = vpop.xlane.xlu1 %1856  ;;  %v1877_v19 = vmul.f32 %v5437_v54, %v6842_v60 }
 0x7ba   : > { %5442 = vrcp.f32 %v1857_v44  ;;  %v1879_v32 = vmul.f32 %v5439_v16, %v6834_v47 }
 0x7bb   : > { %v5441_v29 = vpop.eup %5440  ;;  %v1900_v0 = vpack.c.bf16 %v1877_v19, %v1875_v63  ;;  %5444 = vrcp.f32 %v1851_v28 }
 0x7bc   : > { %v1865_v14 = vpop.xlane.xlu0 %1864  ;;  %v1881_v53 = vmul.f32 %v5441_v29, %v6847_v23  ;;  %5446 = vrcp.f32 %v1855_v4 }
 0x7bd   : > { %v1853_v24 = vpop.xlane.xlu1 %1852  ;;  %4771 = vmatprep.mubr.bf16.mxu0 %v1900_v0 }
 0x7be   : > { %5448 = vrcp.f32 %v1853_v24  ;;  %v1901_v10 = vpack.c.bf16 %v1881_v53, %v1879_v32 }
 0x7bf   : > { %5450 = vrcp.f32 %v1859_v38 }
 0x7c0   : > { %4772 = vmatmul.mubr.bf16.gmra.mrb[52].mxu0 %v1901_v10  ;;  %v2064_v56 = vpop.permute.xlu0 %2063 }
 0x7c1   : > { %v1861_v50 = vpop.xlane.xlu1 %1860  ;;  %4997 = vmatprep.subr.msk.bf16.mxu0 %vm1134_vm0, %v2064_v56  ;;  %v2110_v60 = vsel %vm1134_vm0, %v2064_v56, 0 }
 0x7c2   : > { %5452 = vrcp.f32 %v1861_v50  ;;  %4796 = vmatpush3.bf16.xpose.msra.mxu0 %v2110_v60 }
 0x7c3   : > { %5454 = vrcp.f32 %v1865_v14 }
 0x7c4   : > { %v2036_v17 = vpop.permute.xlu0 %2035  ;;  %v5443_v47 = vpop.eup %5442  ;;  %5456 = vrcp.f32 %v1863_v35 }
 0x7c5   : > { %v2066_v23 = vpop.permute.xlu1 %2065  ;;  %v5445_v46 = vpop.eup %5444  ;;  %v1889_v2 = vmul.f32 %v5443_v47, %v6862_v1 }
 0x7c6   : > { %4998 = vmatprep.subr.msk.bf16.mxu0 %vm1134_vm0, %v2066_v23  ;;  %v5447_v52 = vpop.eup %5446  ;;  %v2113_v31 = vsel %vm1134_vm0, %v2066_v23, 0  ;;  %v1883_v4 = vmul.f32 %v5445_v46, %v6856_v42 }
 0x7c7   : > { %v1887_v35 = vmul.f32 %v5447_v52, %v6849_v9 }
 0x7c8   : > { %v5449_v51 = vpop.eup %5448  ;;  %v2040_v57 = vpop.permute.xlu0 %2039 }
 0x7c9   : > { %v2038_v41 = vpop.permute.xlu1 %2037  ;;  %v1885_v28 = vmul.f32 %v5449_v51, %v6868_v21  ;;  %v5451_v37 = vpop.eup %5450  ;;  %v1903_v16 = vpack.c.bf16 %v1889_v2, %v1887_v35 }
 0x7ca   : > { %4798 = vmatpush3.bf16.xpose.msra.mxu0 %v2113_v31  ;;  %v1891_v1 = vmul.f32 %v5451_v37, %v6860_v36 }
 0x7cb   : > { %v1902_v54 = vpack.c.bf16 %v1885_v28, %v1883_v4 }
 0x7cc   : > { %v5453_v38 = vpop.eup %5452  ;;  %v2044_v63 = vpop.permute.xlu0 %2043 }
 0x7cd   : > { %v5455_v44 = vpop.eup %5454  ;;  %v2042_v19 = vpop.permute.xlu1 %2041  ;;  %4775 = vmatprep.mubr.bf16.mxu0 %v1902_v54  ;;  %v1893_v29 = vmul.f32 %v5453_v38, %v6872_v58 }
 0x7ce   : > { %4776 = vmatmul.mubr.bf16.gmra.mrb[56].mxu0 %v1903_v16  ;;  %v5457_v0 = vpop.eup %5456  ;;  %v1897_v21 = vmul.f32 %v5455_v44, %v6866_v40 }
 0x7cf   : > { %v1904_v42 = vpack.c.bf16 %v1893_v29, %v1891_v1  ;;  %v1895_v9 = vmul.f32 %v5457_v0, %v6854_v30 }
 0x7d0   : > { %v2048_v14 = vpop.permute.xlu0 %2047 }
 0x7d1   : > { %v2046_v32 = vpop.permute.xlu1 %2045  ;;  %4779 = vmatprep.mubr.bf16.mxu0 %v1904_v42  ;;  %v1905_v24 = vpack.c.bf16 %v1897_v21, %v1895_v9 }
 0x7d4   : > { %v2381_v53 = vpop.permute.xlu0 %2380 }
 0x7d5   : > { %v2050_v10 = vpop.permute.xlu1 %2049  ;;  %4815 = vmatprep.subr.bf16.mxu1 %v2381_v53 }
 0x7d6   : > { %4780 = vmatmul.mubr.bf16.gmra.mrb[60].mxu0 %v1905_v24  ;;  %4816 = vmatpush3.bf16.msra.mxu1 %v2381_v53 }
 0x7d7   : > { %4799 = vmatprep.mubr.msk.bf16.mxu0 %vm1134_vm0, %v2036_v17 }
 0x7d8   : > { %v2385_v58 = vpop.permute.xlu0 %2384 }
 0x7d9   : > { %v2383_v36 = vpop.permute.xlu1 %2382 }
 0x7da   : > { %4817 = vmatprep.subr.bf16.mxu1 %v2383_v36 }
 0x7db   : > { %4818 = vmatpush3.bf16.msra.mxu1 %v2383_v36 }
 0x7dc   : > { %4819 = vmatprep.subr.bf16.mxu1 %v2385_v58  ;;  %v2389_v30 = vpop.permute.xlu0 %2388 }
 0x7dd   : > { %v2387_v40 = vpop.permute.xlu1 %2386 }
 0x7de   : > { %4800 = vmatmul.mubr.msk.bf16.vlgmr.msra.gmra.mrb[64].mxu0 %vm1134_vm0, %v2038_v41 }
 0x7df   : > { %4803 = vmatprep.mubr.msk.bf16.mxu0 %vm1134_vm0, %v2040_v57  ;;  %4820 = vmatpush3.bf16.msra.mxu1 %v2385_v58 }
 0x7e0   : > { %4821 = vmatprep.subr.bf16.mxu1 %v2387_v40  ;;  %v2393_v50 = vpop.permute.xlu0 %2392 }
 0x7e1   : > { %v2391_v56 = vpop.permute.xlu1 %2390 }
 0x7e3   : > { %4822 = vmatpush3.bf16.msra.mxu1 %v2387_v40 }
 0x7e4   : > { %4823 = vmatprep.subr.bf16.mxu1 %v2389_v30  ;;  %v6958_v17 = vpop.permute.xlu0 %2517 }
 0x7e5   : > { %v2395_v60 = vpop.permute.xlu1 %2394 }
 0x7e6   : > { %4804 = vmatmul.mubr.msk.bf16.gmra.mrb[68].mxu0 %vm1134_vm0, %v2042_v19 }
 0x7e7   : > { %4807 = vmatprep.mubr.msk.bf16.mxu0 %vm1134_vm0, %v2044_v63  ;;  %4824 = vmatpush3.bf16.msra.mxu1 %v2389_v30 }
 0x7e8   : > { %4825 = vmatprep.subr.bf16.mxu1 %v2391_v56 }
 0x7eb   : > { %4826 = vmatpush3.bf16.msra.mxu1 %v2391_v56 }
 0x7ec   : > { %4827 = vmatprep.subr.bf16.mxu1 %v2393_v50 }
 0x7ee   : > { %4808 = vmatmul.mubr.msk.bf16.gmra.mrb[72].mxu0 %vm1134_vm0, %v2046_v32 }
 0x7ef   : > { %4811 = vmatprep.mubr.msk.bf16.mxu0 %vm1134_vm0, %v2048_v14  ;;  %4828 = vmatpush3.bf16.msra.mxu1 %v2393_v50 }
 0x7f0   : > { %4829 = vmatprep.subr.bf16.mxu1 %v2395_v60 }
 0x7f3   : > { %4830 = vmatpush3.bf16.msra.mxu1 %v2395_v60 }
 0x7f4   : > { %4999 = vmatprep.subr.msk.bf16.mxu1 %vm1134_vm0, %v6958_v17 }
 0x7f6   : > { %4812 = vmatmul.mubr.msk.bf16.gmra.mrb[76].mxu0 %vm1134_vm0, %v2050_v10 }
 0x85b   : > { %v6963_v47 = vpop.f32.mrb[48].mxu0 }
 0x85c   : > { %v6965_v23 = vpop.f32.mrb[49].mxu0 }
 0x85d   : > { %v6967_v46 = vpop.f32.mrb[50].mxu0 }
 0x85e   : > { %v6971_v51 = vpop.f32.mrb[51].mxu0 }
 0x893   : > { %v6975_v2 = vpop.f32.mrb[52].mxu0 }
 0x894   : > { %v6977_v41 = vpop.f32.mrb[53].mxu0 }
 0x895   : > { %v6979_v31 = vpop.f32.mrb[54].mxu0 }
 0x896   : > { %v6983_v28 = vpop.f32.mrb[55].mxu0 }
 0x8a1   : > { %v6987_v35 = vpop.f32.mrb[56].mxu0 }
 0x8a2   : > { %v6989_v54 = vpop.f32.mrb[57].mxu0 }
 0x8a3   : > { %7911 = vst [vmem:[#allocation34_spill] sm:$0xff] %v6989_v54  ;;  %v6991_v38 = vpop.f32.mrb[58].mxu0 }
 0x8a4   : > { %v6995_v16 = vpop.f32.mrb[59].mxu0 }
 0x8a5   : > { %7912 = vst [vmem:[#allocation35_spill] sm:$0xff] %v6995_v16 }
 0x8a9   : > { %v6999_v19 = vpop.f32.mrb[60].mxu0 }
 0x8aa   : > { %7913 = vst [vmem:[#allocation36_spill] sm:$0xff] %v6999_v19  ;;  %v7001_v1 = vpop.f32.mrb[61].mxu0 }
 0x8ab   : > { %7914 = vst [vmem:[#allocation37_spill] sm:$0xff] %v7001_v1  ;;  %v7003_v29 = vpop.f32.mrb[62].mxu0 }
 0x8ac   : > { %7915 = vst [vmem:[#allocation38_spill] sm:$0xff] %v7003_v29  ;;  %v7007_v42 = vpop.f32.mrb[63].mxu0 }
 0x8ad   : > { %7916 = vst [vmem:[#allocation39_spill] sm:$0xff] %v7007_v42 }
 0x8b1   : > { %v4801_v21 = vpop.f32.mrb[64].mxu0 }
 0x8b2   : > { %v2214_v32 = vmul.f32 0.17677669, %v4801_v21  ;;  %v2149_v9 = vpop.f32.mrb[65].mxu0 }
 0x8b3   : > { %v4802_v53 = vpop.f32.mrb[66].mxu0  ;;  %v2212_v36 = vmul.f32 0.17677669, %v2149_v9 }
 0x8b4   : > { %2232 = vmax.xlane.f32.xlu0 %v2214_v32  ;;  %v2152_v24 = vpop.f32.mrb[67].mxu0  ;;  %v2215_v40 = vmul.f32 0.17677669, %v4802_v53 }
 0x8b5   : > { %v2213_v10 = vmul.f32 0.17677669, %v2152_v24 }
 0x8b7   : > { %2230 = vmax.xlane.f32.xlu1 %v2213_v10 }
 0x8b8   : > { %2228 = vmax.xlane.f32.xlu0 %v2212_v36 }
 0x8b9   : > { %v4805_v58 = vpop.f32.mrb[68].mxu0 }
 0x8ba   : > { %v2165_v30 = vpop.f32.mrb[69].mxu0  ;;  %v7013_v0 = vmul.f32 0.17677669, %v4805_v58 }
 0x8bb   : > { %v4806_v56 = vpop.f32.mrb[70].mxu0  ;;  %v7019_v9 = vmul.f32 0.17677669, %v2165_v30 }
 0x8bc   : > { %v7011_v50 = vmul.f32 0.17677669, %v4806_v56  ;;  %2234 = vmax.xlane.f32.xlu0 %v2215_v40  ;;  %v2168_v60 = vpop.f32.mrb[71].mxu0 }
 0x8bd   : > { %v7016_v21 = vmul.f32 0.17677669, %v2168_v60 }
 0x8be   : > { %2242 = vmax.xlane.f32.xlu1 %v7011_v50 }
 0x8c0   : > { %2240 = vmax.xlane.f32.xlu0 %v7013_v0 }
 0x8c1   : > { %v4809_v24 = vpop.f32.mrb[72].mxu0 }
 0x8c2   : > { %2238 = vmax.xlane.f32.xlu1 %v7016_v21  ;;  %v2181_v53 = vpop.f32.mrb[73].mxu0  ;;  %v7025_v58 = vmul.f32 0.17677669, %v4809_v24 }
 0x8c3   : > { %v4810_v14 = vpop.f32.mrb[74].mxu0  ;;  %v7031_v30 = vmul.f32 0.17677669, %v2181_v53 }
 0x8c4   : > { %v7022_v44 = vmul.f32 0.17677669, %v4810_v14  ;;  %2236 = vmax.xlane.f32.xlu0 %v7019_v9  ;;  %v2184_v56 = vpop.f32.mrb[75].mxu0 }
 0x8c5   : > { %v7028_v60 = vmul.f32 0.17677669, %v2184_v56 }
 0x8c6   : > { %2250 = vmax.xlane.f32.xlu1 %v7022_v44 }
 0x8c8   : > { %2248 = vmax.xlane.f32.xlu0 %v7025_v58 }
 0x8c9   : > { %v4813_v63 = vpop.f32.mrb[76].mxu0 }
 0x8ca   : > { %2246 = vmax.xlane.f32.xlu1 %v7028_v60  ;;  %v2197_v37 = vpop.f32.mrb[77].mxu0  ;;  %v7035_v57 = vmul.f32 0.17677669, %v4813_v63  ;;  %v7051_v63 = vpop.permute.xlu1 %2519 }
 0x8cb   : > { %v4814_v4 = vpop.f32.mrb[78].mxu0  ;;  %v7038_v24 = vmul.f32 0.17677669, %v2197_v37 }
 0x8cc   : > { %2244 = vmax.xlane.f32.xlu0 %v7031_v30  ;;  %v2200_v14 = vpop.f32.mrb[79].mxu0  ;;  %v7045_v53 = vmul.f32 0.17677669, %v4814_v4 }
 0x8cd   : > { %v7048_v56 = vmul.f32 0.17677669, %v2200_v14 }
 0x8d0   : > { %2256 = vmax.xlane.f32.xlu0 %v7035_v57 }
 0x8d4   : > { %2252 = vmax.xlane.f32.xlu0 %v7038_v24 }
 0x8db   : > { %2523 = vrot.lane.b32.xlu1 %v6473_v3, %s5930_s20 }
 0x8ea   : > { %2521 = vrot.lane.b32.xlu0 %v6457_v49, %s5930_s20 }
 0x8ff   : > { %2258 = vmax.xlane.f32.xlu1 %v7045_v53 }
 0x903   : > { %2254 = vmax.xlane.f32.xlu1 %v7048_v56 }
 0x941   : > { %v2233_v37 = vpop.xlane.xlu0 %2232 }
 0x942   : > { %v2262_v52 = vsub.f32 %v2214_v32, %v2233_v37 }
 0x944   : > { %v2280_v45 = vmul.f32 1.442695, %v2262_v52  ;;  %v2231_v13 = vpop.xlane.xlu1 %2230 }
 0x945   : > { %v2261_v61 = vsub.f32 %v2213_v10, %v2231_v13  ;;  %v2229_v27 = vpop.xlane.xlu0 %2228 }
 0x946   : > { %5458 = vpow2.f32 %v2280_v45  ;;  %v2260_v3 = vsub.f32 %v2212_v36, %v2229_v27 }
 0x947   : > { %v2278_v1 = vmul.f32 1.442695, %v2261_v61 }
 0x948   : > { %v2276_v49 = vmul.f32 1.442695, %v2260_v3 }
 0x949   : > { %5460 = vpow2.f32 %v2278_v1  ;;  %v2235_v4 = vpop.xlane.xlu0 %2234 }
 0x94a   : > { %5462 = vpow2.f32 %v2276_v49  ;;  %v2263_v42 = vsub.f32 %v2215_v40, %v2235_v4 }
 0x94b   : > { %v2243_v27 = vpop.xlane.xlu1 %2242 }
 0x94c   : > { %v2282_v14 = vmul.f32 1.442695, %v2263_v42  ;;  %v2267_v4 = vsub.f32 %v7011_v50, %v2243_v27 }
 0x94d   : > { %v2241_v61 = vpop.xlane.xlu0 %2240 }
 0x94e   : > { %5464 = vpow2.f32 %v2282_v14  ;;  %v2266_v42 = vsub.f32 %v7013_v0, %v2241_v61  ;;  %v2290_v54 = vmul.f32 1.442695, %v2267_v4 }
 0x94f   : > { %v2239_v32 = vpop.xlane.xlu1 %2238 }
 0x950   : > { %v7053_v19 = vpop.eup %5458  ;;  %v2288_v36 = vmul.f32 1.442695, %v2266_v42  ;;  %v2265_v37 = vsub.f32 %v7016_v21, %v2239_v32 }
 0x951   : > { %2312 = vadd.xlane.f32.xlu1 %v7053_v19  ;;  %v2237_v13 = vpop.xlane.xlu0 %2236 }
 0x952   : > { %v2264_v40 = vsub.f32 %v7019_v9, %v2237_v13  ;;  %5466 = vpow2.f32 %v2288_v36  ;;  %v2286_v14 = vmul.f32 1.442695, %v2265_v37 }
 0x953   : > { %v7056_v29 = vpop.eup %5460  ;;  %v2251_v3 = vpop.xlane.xlu1 %2250 }
 0x954   : > { %v7058_v52 = vpop.eup %5462  ;;  %2310 = vadd.xlane.f32.xlu0 %v7056_v29  ;;  %v2271_v50 = vsub.f32 %v7022_v44, %v2251_v3 }
 0x955   : > { %2308 = vadd.xlane.f32.xlu1 %v7058_v52  ;;  %v2249_v1 = vpop.xlane.xlu0 %2248 }
 0x957   : > { %v2247_v16 = vpop.xlane.xlu1 %2246 }
 0x958   : > { %v7062_v45 = vpop.eup %5464 }
 0x959   : > { %2314 = vadd.xlane.f32.xlu1 %v7062_v45  ;;  %v2245_v10 = vpop.xlane.xlu0 %2244 }
 0x95a   : > { %v2268_v9 = vsub.f32 %v7031_v30, %v2245_v10  ;;  %v2269_v30 = vsub.f32 %v7028_v60, %v2247_v16 }
 0x95c   : > { %v2292_v27 = vmul.f32 1.442695, %v2268_v9  ;;  %v7078_v32 = vpop.eup %5466  ;;  %v2294_v36 = vmul.f32 1.442695, %v2269_v30  ;;  %v2558_v9 = vsel %vm1134_vm0, %v6958_v17, 0 }
 0x95d   : > { %v2257_v49 = vpop.xlane.xlu0 %2256 }
 0x95e   : > { %v2274_v0 = vsub.f32 %v7035_v57, %v2257_v49 }
 0x960   : > { %v2304_v21 = vmul.f32 1.442695, %v2274_v0 }
 0x961   : > { %v2253_v13 = vpop.xlane.xlu0 %2252 }
 0x962   : > { %v2272_v42 = vsub.f32 %v7038_v24, %v2253_v13 }
 0x964   : > { %v2300_v57 = vmul.f32 1.442695, %v2272_v42 }
 0x96a   : > { %2525 = vrot.lane.b32.xlu0 %v6489_v59, %s5930_s20  ;;  %2527 = vrot.lane.b32.xlu1 %v6499_v22, %s5930_s20  ;;  %v2284_v59 = vmul.f32 1.442695, %v2264_v40  ;;  %v2270_v22 = vsub.f32 %v7025_v58, %v2249_v1  ;;  %v7080_v58 = vpop.permute.xlu1 %2523  ;;  %v2298_v1 = vmul.f32 1.442695, %v2271_v50 }
 0x96c   : > { %5468 = vpow2.f32 %v2284_v59  ;;  %v2296_v61 = vmul.f32 1.442695, %v2270_v22 }
 0x96d   : > { %5470 = vpow2.f32 %v2286_v14 }
 0x96e   : > { %5472 = vpow2.f32 %v2290_v54 }
 0x96f   : > { %5474 = vpow2.f32 %v2296_v61 }
 0x970   : > { %5476 = vpow2.f32 %v2304_v21 }
 0x971   : > { %5478 = vpow2.f32 %v2292_v27 }
 0x972   : > { %5480 = vpow2.f32 %v2300_v57 }
 0x973   : > { %5482 = vpow2.f32 %v2298_v1 }
 0x976   : > { %v7084_v54 = vpop.eup %5468 }
 0x977   : > { %v7086_v24 = vpop.eup %5470 }
 0x978   : > { %v7091_v37 = vpop.eup %5472 }
 0x979   : > { %v7093_v16 = vpop.eup %5474 }
 0x97a   : > { %v7098_v49 = vpop.eup %5476 }
 0x97b   : > { %v7100_v4 = vpop.eup %5478 }
 0x97c   : > { %v7104_v59 = vpop.eup %5480 }
 0x97d   : > { %v7106_v14 = vpop.eup %5482 }
 0x989   : > { %2320 = vadd.xlane.f32.xlu0 %v7078_v32 }
 0x98c   : > { %v2259_v10 = vpop.xlane.xlu1 %2258 }
 0x98d   : > { %v2275_v44 = vsub.f32 %v7045_v53, %v2259_v10  ;;  %2316 = vadd.xlane.f32.xlu0 %v7084_v54 }
 0x98e   : > { %2318 = vadd.xlane.f32.xlu1 %v7086_v24 }
 0x98f   : > { %v2306_v40 = vmul.f32 1.442695, %v2275_v44 }
 0x990   : > { %v2255_v3 = vpop.xlane.xlu1 %2254 }
 0x991   : > { %5484 = vpow2.f32 %v2306_v40  ;;  %v2273_v60 = vsub.f32 %v7048_v56, %v2255_v3  ;;  %2322 = vadd.xlane.f32.xlu0 %v7091_v37 }
 0x992   : > { %2328 = vadd.xlane.f32.xlu1 %v7093_v16  ;;  %5486 = vpow2.f32 %v2294_v36 }
 0x993   : > { %v2302_v53 = vmul.f32 1.442695, %v2273_v60 }
 0x995   : > { %2336 = vadd.xlane.f32.xlu0 %v7098_v49  ;;  %5488 = vpow2.f32 %v2302_v53 }
 0x996   : > { %2324 = vadd.xlane.f32.xlu1 %v7100_v4 }
 0x999   : > { %2332 = vadd.xlane.f32.xlu0 %v7104_v59 }
 0x99a   : > { %2330 = vadd.xlane.f32.xlu1 %v7106_v14 }
 0x99b   : > { %v7110_v56 = vpop.eup %5484 }
 0x99c   : > { %v7112_v22 = vpop.eup %5486 }
 0x99d   : > { %2338 = vadd.xlane.f32.xlu0 %v7110_v56 }
 0x99e   : > { %2326 = vadd.xlane.f32.xlu1 %v7112_v22 }
 0x99f   : > { %v7116_v0 = vpop.eup %5488 }
 0x9a2   : > { %2334 = vadd.xlane.f32.xlu1 %v7116_v0 }
 0x9b3   : > { %2531 = vrot.lane.b32.xlu1 %v6515_v48, %s5930_s20  ;;  %2529 = vrot.lane.b32.xlu0 %v6507_v7, %s5930_s20 }
 0x9b7   : > { %2503 = vrot.lane.b32.xlu1 %v6436_v18, %s5930_s20  ;;  %2501 = vrot.lane.b32.xlu0 %v6419_v33, %s5930_s20  ;;  %v2522_v33 = vpop.permute.xlu0 %2521 }
 0x9bb   : > { %2507 = vrot.lane.b32.xlu1 %v6470_v43, %s5930_s20  ;;  %2505 = vrot.lane.b32.xlu0 %v6454_v34, %s5930_s20 }
 0x9bf   : > { %2511 = vrot.lane.b32.xlu1 %v6497_v62, %s5930_s20  ;;  %2509 = vrot.lane.b32.xlu0 %v6486_v55, %s5930_s20 }
 0x9c3   : > { %2515 = vrot.lane.b32.xlu1 %v6513_v20, %s5930_s20  ;;  %2513 = vrot.lane.b32.xlu0 %v6505_v5, %s5930_s20 }
 0x9c7   : > { %2848 = vrot.lane.b32.xlu1 %v6431_v6, %s5930_s20  ;;  %2846 = vrot.lane.b32.xlu0 %v6433_v8, %s5930_s20 }
 0x9cb   : > { %2850 = vrot.lane.b32.xlu0 %v6451_v12, %s5930_s20 }
 0x9cf   : > { %2852 = vrot.lane.b32.xlu0 %v6448_v26, %s5930_s20 }
 0x9de   : > { %v2313_v18 = vpop.xlane.xlu1 %2312 }
 0x9e1   : > { %v2311_v34 = vpop.xlane.xlu0 %2310 }
 0x9e2   : > { %5490 = vrcp.f32 %v2311_v34  ;;  %v2309_v43 = vpop.xlane.xlu1 %2308 }
 0x9e3   : > { %5492 = vrcp.f32 %v2309_v43 }
 0x9e4   : > { %5494 = vrcp.f32 %v2313_v18 }
 0x9e5   : > { %v2526_v17 = vpop.permute.xlu0 %2525 }
 0x9e6   : > { %v2315_v55 = vpop.xlane.xlu1 %2314 }
 0x9e7   : > { %5496 = vrcp.f32 %v2315_v55 }
 0x9ec   : > { %v5491_v62 = vpop.eup %5490 }
 0x9ed   : > { %v5493_v6 = vpop.eup %5492  ;;  %v2343_v5 = vmul.f32 %v5491_v62, %v7056_v29  ;;  %v2561_v29 = vsel %vm1134_vm0, %v7051_v63, 0 }
 0x9ee   : > { %v2341_v8 = vmul.f32 %v5493_v6, %v7058_v52  ;;  %v5495_v7 = vpop.eup %5494  ;;  %v2567_v52 = vsel %vm1134_vm0, %v7080_v58, 0 }
 0x9ef   : > { %v2345_v26 = vmul.f32 %v5495_v7, %v7053_v19  ;;  %v2564_v19 = vsel %vm1134_vm0, %v2522_v33, 0 }
 0x9f0   : > { %v2372_v12 = vpack.c.bf16 %v2343_v5, %v2341_v8 }
 0x9f1   : > { %v5497_v20 = vpop.eup %5496 }
 0x9f2   : > { %v2347_v48 = vmul.f32 %v5497_v20, %v7062_v45  ;;  %4831 = vmatprep.mubr.bf16.mxu1 %v2372_v12  ;;  %v2570_v45 = vsel %vm1134_vm0, %v2526_v17, 0 }
 0x9f4   : > { %v2373_v61 = vpack.c.bf16 %v2347_v48, %v2345_v26 }
 0x9f6   : > { %4832 = vmatmul.mubr.bf16.vlgmr.msra.gmra.mrb[48].mxu1 %v2373_v61 }
 0x9f7   : > { %4848 = vmatpush3.bf16.xpose.msra.mxu1 %v2558_v9 }
 0x9f8   : > { %5000 = vmatprep.subr.msk.bf16.mxu1 %vm1134_vm0, %v7051_v63  ;;  %v2528_v63 = vpop.permute.xlu1 %2527 }
 0x9f9   : > { %v2573_v50 = vsel %vm1134_vm0, %v2528_v63, 0 }
 0x9ff   : > { %4850 = vmatpush3.bf16.xpose.msra.mxu1 %v2561_v29 }
 0xa00   : > { %5001 = vmatprep.subr.msk.bf16.mxu1 %vm1134_vm0, %v2522_v33 }
 0xa07   : > { %4852 = vmatpush3.bf16.xpose.msra.mxu1 %v2564_v19 }
 0xa08   : > { %5002 = vmatprep.subr.msk.bf16.mxu1 %vm1134_vm0, %v7080_v58 }
 0xa0f   : > { %4854 = vmatpush3.bf16.xpose.msra.mxu1 %v2567_v52 }
 0xa10   : > { %5003 = vmatprep.subr.msk.bf16.mxu1 %vm1134_vm0, %v2526_v17 }
 0xa16   : > { %v2321_v13 = vpop.xlane.xlu0 %2320 }
 0xa17   : > { %4856 = vmatpush3.bf16.xpose.msra.mxu1 %v2570_v45 }
 0xa18   : > { %5004 = vmatprep.subr.msk.bf16.mxu1 %vm1134_vm0, %v2528_v63 }
 0xa1a   : > { %v2317_v21 = vpop.xlane.xlu0 %2316 }
 0xa1b   : > { %5498 = vrcp.f32 %v2317_v21  ;;  %v2319_v42 = vpop.xlane.xlu1 %2318 }
 0xa1c   : > { %5500 = vrcp.f32 %v2319_v42 }
 0xa1d   : > { %5502 = vrcp.f32 %v2321_v13 }
 0xa1e   : > { %v2323_v27 = vpop.xlane.xlu0 %2322 }
 0xa1f   : > { %4858 = vmatpush3.bf16.xpose.msra.mxu1 %v2573_v50  ;;  %5504 = vrcp.f32 %v2323_v27  ;;  %v2329_v58 = vpop.xlane.xlu1 %2328 }
 0xa22   : > { %v2337_v57 = vpop.xlane.xlu0 %2336 }
 0xa23   : > { %v2325_v1 = vpop.xlane.xlu1 %2324 }
 0xa25   : > { %v5499_v30 = vpop.eup %5498 }
 0xa26   : > { %v5501_v10 = vpop.eup %5500  ;;  %v2333_v44 = vpop.xlane.xlu0 %2332  ;;  %v2349_v36 = vmul.f32 %v5499_v30, %v7084_v54 }
 0xa27   : > { %v5503_v40 = vpop.eup %5502  ;;  %v2331_v3 = vpop.xlane.xlu1 %2330  ;;  %v2351_v60 = vmul.f32 %v5501_v10, %v7086_v24 }
 0xa28   : > { %5506 = vrcp.f32 %v2331_v3  ;;  %v2353_v34 = vmul.f32 %v5503_v40, %v7078_v32 }
 0xa29   : > { %v5505_v53 = vpop.eup %5504  ;;  %v2374_v33 = vpack.c.bf16 %v2351_v60, %v2349_v36  ;;  %5508 = vrcp.f32 %v2325_v1 }
 0xa2a   : > { %v2339_v18 = vpop.xlane.xlu0 %2338  ;;  %v2355_v43 = vmul.f32 %v5505_v53, %v7091_v37  ;;  %5510 = vrcp.f32 %v2329_v58 }
 0xa2b   : > { %v2327_v55 = vpop.xlane.xlu1 %2326  ;;  %4835 = vmatprep.mubr.bf16.mxu1 %v2374_v33 }
 0xa2c   : > { %5512 = vrcp.f32 %v2327_v55  ;;  %v2375_v62 = vpack.c.bf16 %v2355_v43, %v2353_v34 }
 0xa2d   : > { %5514 = vrcp.f32 %v2333_v44 }
 0xa2e   : > { %4836 = vmatmul.mubr.bf16.gmra.mrb[52].mxu1 %v2375_v62  ;;  %v2530_v54 = vpop.permute.xlu0 %2529 }
 0xa2f   : > { %v2335_v6 = vpop.xlane.xlu1 %2334  ;;  %5005 = vmatprep.subr.msk.bf16.mxu1 %vm1134_vm0, %v2530_v54  ;;  %v2576_v24 = vsel %vm1134_vm0, %v2530_v54, 0 }
 0xa30   : > { %5516 = vrcp.f32 %v2335_v6  ;;  %4860 = vmatpush3.bf16.xpose.msra.mxu1 %v2576_v24 }
 0xa31   : > { %5518 = vrcp.f32 %v2339_v18 }
 0xa32   : > { %v2502_v5 = vpop.permute.xlu0 %2501  ;;  %v5507_v32 = vpop.eup %5506  ;;  %5520 = vrcp.f32 %v2337_v57 }
 0xa33   : > { %v2532_v37 = vpop.permute.xlu1 %2531  ;;  %v5509_v8 = vpop.eup %5508  ;;  %v2363_v26 = vmul.f32 %v5507_v32, %v7106_v14 }
 0xa34   : > { %5006 = vmatprep.subr.msk.bf16.mxu1 %vm1134_vm0, %v2532_v37  ;;  %v5511_v7 = vpop.eup %5510  ;;  %v2579_v61 = vsel %vm1134_vm0, %v2532_v37, 0  ;;  %v2357_v9 = vmul.f32 %v5509_v8, %v7100_v4 }
 0xa35   : > { %v2361_v52 = vmul.f32 %v5511_v7, %v7093_v16 }
 0xa36   : > { %v5513_v12 = vpop.eup %5512  ;;  %v2506_v20 = vpop.permute.xlu0 %2505 }
 0xa37   : > { %v2504_v48 = vpop.permute.xlu1 %2503  ;;  %v2359_v29 = vmul.f32 %v5513_v12, %v7112_v22  ;;  %v5515_v19 = vpop.eup %5514  ;;  %v2377_v63 = vpack.c.bf16 %v2363_v26, %v2361_v52 }
 0xa38   : > { %4862 = vmatpush3.bf16.xpose.msra.mxu1 %v2579_v61  ;;  %v2365_v14 = vmul.f32 %v5515_v19, %v7104_v59 }
 0xa39   : > { %v2376_v17 = vpack.c.bf16 %v2359_v29, %v2357_v9 }
 0xa3a   : > { %v5517_v45 = vpop.eup %5516  ;;  %v2510_v13 = vpop.permute.xlu0 %2509 }
 0xa3b   : > { %v5519_v21 = vpop.eup %5518  ;;  %v2508_v42 = vpop.permute.xlu1 %2507  ;;  %4839 = vmatprep.mubr.bf16.mxu1 %v2376_v17  ;;  %v2367_v50 = vmul.f32 %v5517_v45, %v7116_v0 }
 0xa3c   : > { %4840 = vmatmul.mubr.bf16.gmra.mrb[56].mxu1 %v2377_v63  ;;  %v5521_v27 = vpop.eup %5520  ;;  %v2371_v22 = vmul.f32 %v5519_v21, %v7110_v56 }
 0xa3d   : > { %v2378_v4 = vpack.c.bf16 %v2367_v50, %v2365_v14  ;;  %v2369_v16 = vmul.f32 %v5521_v27, %v7098_v49  ;;  %v7917_v49 = vmov 0  }
 0xa3e   : > { %v2514_v58 = vpop.permute.xlu0 %2513 }
 0xa3f   : > { %v2512_v57 = vpop.permute.xlu1 %2511  ;;  %4843 = vmatprep.mubr.bf16.mxu1 %v2378_v4  ;;  %v2379_v30 = vpack.c.bf16 %v2371_v22, %v2369_v16 }
 0xa42   : > { %v2847_v1 = vpop.permute.xlu0 %2846 }
 0xa43   : > { %v2516_v10 = vpop.permute.xlu1 %2515  ;;  %4879 = vmatprep.subr.bf16.mxu0 %v2847_v1 }
 0xa44   : > { %4844 = vmatmul.mubr.bf16.gmra.mrb[60].mxu1 %v2379_v30  ;;  %4880 = vmatpush3.bf16.msra.mxu0 %v2847_v1 }
 0xa45   : > { %4863 = vmatprep.mubr.msk.bf16.mxu1 %vm1134_vm0, %v2502_v5 }
 0xa46   : > { %v2851_v59 = vpop.permute.xlu0 %2850 }
 0xa47   : > { %v2849_v0 = vpop.permute.xlu1 %2848 }
 0xa48   : > { %4881 = vmatprep.subr.bf16.mxu0 %v2849_v0 }
 0xa49   : > { %4882 = vmatpush3.bf16.msra.mxu0 %v2849_v0 }
 0xa4a   : > { %4883 = vmatprep.subr.bf16.mxu0 %v2851_v59  ;;  %v2853_v56 = vpop.permute.xlu0 %2852 }
 0xa4c   : > { %4864 = vmatmul.mubr.msk.bf16.vlgmr.msra.gmra.mrb[64].mxu1 %vm1134_vm0, %v2504_v48 }
 0xa4d   : > { %4867 = vmatprep.mubr.msk.bf16.mxu1 %vm1134_vm0, %v2506_v20  ;;  %4884 = vmatpush3.bf16.msra.mxu0 %v2851_v59 }
 0xa4e   : > { %4885 = vmatprep.subr.bf16.mxu0 %v2853_v56 }
 0xa51   : > { %4886 = vmatpush3.bf16.msra.mxu0 %v2853_v56 }
 0xa54   : > { %4868 = vmatmul.mubr.msk.bf16.gmra.mrb[68].mxu1 %vm1134_vm0, %v2508_v42 }
 0xa55   : > { %4871 = vmatprep.mubr.msk.bf16.mxu1 %vm1134_vm0, %v2510_v13 }
 0xa5c   : > { %4872 = vmatmul.mubr.msk.bf16.gmra.mrb[72].mxu1 %vm1134_vm0, %v2512_v57 }
 0xa5d   : > { %4875 = vmatprep.mubr.msk.bf16.mxu1 %vm1134_vm0, %v2514_v58 }
 0xa64   : > { %4876 = vmatmul.mubr.msk.bf16.gmra.mrb[76].mxu1 %vm1134_vm0, %v2516_v10 }
 0xa65   : > { %3771 = vmatprep.mubr.bf16.mxu1 %v7917_v49 }
 0xac9   : > { %v7192_v44 = vpop.f32.mrb[48].mxu1 }
 0xaca   : > { %v7194_v36 = vpop.f32.mrb[49].mxu1 }
 0xacb   : > { %v7196_v40 = vpop.f32.mrb[50].mxu1 }
 0xacc   : > { %v7200_v60 = vpop.f32.mrb[51].mxu1 }
 0xacd   : > { %v5116_v53 = vpack.i.bf16 %v7200_v60, %v7194_v36 }
 0xb01   : > { %v7204_v33 = vpop.f32.mrb[52].mxu1 }
 0xb02   : > { %v7206_v18 = vpop.f32.mrb[53].mxu1 }
 0xb03   : > { %v7208_v34 = vpop.f32.mrb[54].mxu1 }
 0xb04   : > { %v7212_v55 = vpop.f32.mrb[55].mxu1 }
 0xb0f   : > { %v7216_v54 = vpop.f32.mrb[56].mxu1 }
 0xb10   : > { %v7218_v6 = vpop.f32.mrb[57].mxu1 }
 0xb11   : > { %v7220_v24 = vpop.f32.mrb[58].mxu1 }
 0xb12   : > { %v7224_v32 = vpop.f32.mrb[59].mxu1 }
 0xb17   : > { %v7228_v8 = vpop.f32.mrb[60].mxu1 }
 0xb18   : > { %v7230_v7 = vpop.f32.mrb[61].mxu1 }
 0xb19   : > { %v7232_v12 = vpop.f32.mrb[62].mxu1 }
 0xb1a   : > { %v7236_v26 = vpop.f32.mrb[63].mxu1 }
 0xb1f   : > { %v4865_v61 = vpop.f32.mrb[64].mxu1 }
 0xb20   : > { %v2680_v9 = vmul.f32 0.17677669, %v4865_v61  ;;  %v2615_v29 = vpop.f32.mrb[65].mxu1 }
 0xb21   : > { %v4866_v19 = vpop.f32.mrb[66].mxu1  ;;  %v2678_v45 = vmul.f32 0.17677669, %v2615_v29 }
 0xb22   : > { %2698 = vmax.xlane.f32.xlu0 %v2680_v9  ;;  %v2618_v52 = vpop.f32.mrb[67].mxu1  ;;  %v2681_v63 = vmul.f32 0.17677669, %v4866_v19 }
 0xb23   : > { %v2679_v17 = vmul.f32 0.17677669, %v2618_v52 }
 0xb25   : > { %2696 = vmax.xlane.f32.xlu1 %v2679_v17 }
 0xb26   : > { %2694 = vmax.xlane.f32.xlu0 %v2678_v45 }
 0xb27   : > { %v4869_v13 = vpop.f32.mrb[68].mxu1 }
 0xb28   : > { %v2631_v21 = vpop.f32.mrb[69].mxu1  ;;  %v2684_v27 = vmul.f32 0.17677669, %v4869_v13 }
 0xb29   : > { %v4870_v42 = vpop.f32.mrb[70].mxu1  ;;  %v2682_v22 = vmul.f32 0.17677669, %v2631_v21 }
 0xb2a   : > { %v2685_v14 = vmul.f32 0.17677669, %v4870_v42  ;;  %2700 = vmax.xlane.f32.xlu0 %v2681_v63  ;;  %v2634_v50 = vpop.f32.mrb[71].mxu1 }
 0xb2b   : > { %v7240_v4 = vmul.f32 0.17677669, %v2634_v50 }
 0xb2c   : > { %2708 = vmax.xlane.f32.xlu1 %v2685_v14 }
 0xb2e   : > { %2706 = vmax.xlane.f32.xlu0 %v2684_v27 }
 0xb2f   : > { %v4873_v58 = vpop.f32.mrb[72].mxu1 }
 0xb30   : > { %2704 = vmax.xlane.f32.xlu1 %v7240_v4  ;;  %v2647_v57 = vpop.f32.mrb[73].mxu1  ;;  %v7245_v10 = vmul.f32 0.17677669, %v4873_v58 }
 0xb31   : > { %v4874_v16 = vpop.f32.mrb[74].mxu1  ;;  %v7251_v56 = vmul.f32 0.17677669, %v2647_v57 }
 0xb32   : > { %v7243_v1 = vmul.f32 0.17677669, %v4874_v16  ;;  %2702 = vmax.xlane.f32.xlu0 %v2682_v22  ;;  %v2650_v30 = vpop.f32.mrb[75].mxu1 }
 0xb33   : > { %v7248_v59 = vmul.f32 0.17677669, %v2650_v30 }
 0xb34   : > { %2716 = vmax.xlane.f32.xlu1 %v7243_v1 }
 0xb36   : > { %2714 = vmax.xlane.f32.xlu0 %v7245_v10 }
 0xb37   : > { %v4877_v0 = vpop.f32.mrb[76].mxu1 }
 0xb38   : > { %2712 = vmax.xlane.f32.xlu1 %v7248_v59  ;;  %v2663_v61 = vpop.f32.mrb[77].mxu1  ;;  %v7255_v52 = vmul.f32 0.17677669, %v4877_v0 }
 0xb39   : > { %v4878_v29 = vpop.f32.mrb[78].mxu1  ;;  %v7258_v13 = vmul.f32 0.17677669, %v2663_v61 }
 0xb3a   : > { %2710 = vmax.xlane.f32.xlu0 %v7251_v56  ;;  %v2666_v19 = vpop.f32.mrb[79].mxu1  ;;  %v7265_v21 = vmul.f32 0.17677669, %v4878_v29 }
 0xb3b   : > { %v7268_v42 = vmul.f32 0.17677669, %v2666_v19 }
 0xb3e   : > { %2722 = vmax.xlane.f32.xlu0 %v7255_v52 }
 0xb42   : > { %2718 = vmax.xlane.f32.xlu0 %v7258_v13 }
 0xb49   : > { %2856 = vrot.lane.b32.xlu1 %v6464_v15, %s5930_s20 }
 0xb58   : > { %2854 = vrot.lane.b32.xlu0 %v6467_v39, %s5930_s20 }
 0xb6d   : > { %2724 = vmax.xlane.f32.xlu1 %v7265_v21 }
 0xb71   : > { %2720 = vmax.xlane.f32.xlu1 %v7268_v42 }
 0xbaf   : > { %v2699_v50 = vpop.xlane.xlu0 %2698 }
 0xbb0   : > { %v2728_v58 = vsub.f32 %v2680_v9, %v2699_v50 }
 0xbb2   : > { %v2746_v57 = vmul.f32 1.442695, %v2728_v58  ;;  %v2697_v30 = vpop.xlane.xlu1 %2696 }
 0xbb3   : > { %v2695_v16 = vpop.xlane.xlu0 %2694  ;;  %v2727_v15 = vsub.f32 %v2679_v17, %v2697_v30 }
 0xbb4   : > { %5522 = vpow2.f32 %v2746_v57  ;;  %v2726_v0 = vsub.f32 %v2678_v45, %v2695_v16 }
 0xbb5   : > { %v2744_v37 = vmul.f32 1.442695, %v2727_v15 }
 0xbb6   : > { %v2742_v61 = vmul.f32 1.442695, %v2726_v0 }
 0xbb7   : > { %v2701_v48 = vpop.xlane.xlu0 %2700 }
 0xbb8   : > { %5524 = vpow2.f32 %v2742_v61  ;;  %v2729_v39 = vsub.f32 %v2681_v63, %v2701_v48 }
 0xbb9   : > { %v2709_v29 = vpop.xlane.xlu1 %2708 }
 0xbba   : > { %v2748_v20 = vmul.f32 1.442695, %v2729_v39  ;;  %v2733_v5 = vsub.f32 %v2685_v14, %v2709_v29 }
 0xbbb   : > { %v2707_v19 = vpop.xlane.xlu0 %2706 }
 0xbbc   : > { %5526 = vpow2.f32 %v2748_v20  ;;  %v2732_v62 = vsub.f32 %v2684_v27, %v2707_v19  ;;  %v2756_v50 = vmul.f32 1.442695, %v2733_v5 }
 0xbbd   : > { %v2705_v43 = vpop.xlane.xlu1 %2704  ;;  %5528 = vpow2.f32 %v2744_v37 }
 0xbbe   : > { %v7271_v3 = vpop.eup %5522  ;;  %v2754_v9 = vmul.f32 1.442695, %v2732_v62  ;;  %v2731_v17 = vsub.f32 %v7240_v4, %v2705_v43 }
 0xbbf   : > { %2778 = vadd.xlane.f32.xlu1 %v7271_v3  ;;  %v2703_v45 = vpop.xlane.xlu0 %2702 }
 0xbc0   : > { %5530 = vpow2.f32 %v2754_v9  ;;  %v2730_v48 = vsub.f32 %v2682_v22, %v2703_v45  ;;  %v2752_v14 = vmul.f32 1.442695, %v2731_v17 }
 0xbc1   : > { %5532 = vpow2.f32 %v2756_v50  ;;  %v2717_v37 = vpop.xlane.xlu1 %2716 }
 0xbc2   : > { %v7275_v63 = vpop.eup %5524  ;;  %v2750_v58 = vmul.f32 1.442695, %v2730_v48  ;;  %v2737_v29 = vsub.f32 %v7243_v1, %v2717_v37 }
 0xbc3   : > { %2774 = vadd.xlane.f32.xlu1 %v7275_v63  ;;  %v2715_v20 = vpop.xlane.xlu0 %2714 }
 0xbc4   : > { %5534 = vpow2.f32 %v2750_v58  ;;  %v2764_v50 = vmul.f32 1.442695, %v2737_v29  ;;  %v2736_v45 = vsub.f32 %v7245_v10, %v2715_v20 }
 0xbc5   : > { %5536 = vpow2.f32 %v2752_v14  ;;  %v2713_v16 = vpop.xlane.xlu1 %2712 }
 0xbc6   : > { %v7278_v27 = vpop.eup %5526  ;;  %v2735_v19 = vsub.f32 %v7248_v59, %v2713_v16  ;;  %v2762_v58 = vmul.f32 1.442695, %v2736_v45 }
 0xbc7   : > { %2780 = vadd.xlane.f32.xlu1 %v7278_v27  ;;  %v2711_v62 = vpop.xlane.xlu0 %2710  ;;  %v7281_v5 = vpop.eup %5528 }
 0xbc8   : > { %v2734_v39 = vsub.f32 %v7251_v56, %v2711_v62  ;;  %v2760_v17 = vmul.f32 1.442695, %v2735_v19 }
 0xbc9   : > { %v2857_v15 = vpop.permute.xlu1 %2856 }
 0xbca   : > { %v7283_v43 = vpop.eup %5530  ;;  %v2758_v9 = vmul.f32 1.442695, %v2734_v39  ;;  %v7920_v39 = vpack.i.bf16 %v7196_v40, %v7192_v44 }
 0xbcb   : > { %2776 = vadd.xlane.f32.xlu1 %v7281_v5  ;;  %2786 = vadd.xlane.f32.xlu0 %v7283_v43  ;;  %v2723_v4 = vpop.xlane.xlu0 %2722  ;;  %v7287_v22 = vpop.eup %5532 }
 0xbcc   : > { %5538 = vpow2.f32 %v2758_v9  ;;  %v2740_v1 = vsub.f32 %v7255_v52, %v2723_v4 }
 0xbcd   : > { %5540 = vpow2.f32 %v2764_v50 }
 0xbce   : > { %v7289_v57 = vpop.eup %5534  ;;  %5542 = vpow2.f32 %v2760_v17  ;;  %v2770_v20 = vmul.f32 1.442695, %v2740_v1 }
 0xbcf   : > { %2788 = vadd.xlane.f32.xlu0 %v7287_v22  ;;  %2782 = vadd.xlane.f32.xlu1 %v7289_v57  ;;  %v2719_v30 = vpop.xlane.xlu0 %2718  ;;  %v7293_v0 = vpop.eup %5536  ;;  %5544 = vpow2.f32 %v2762_v58 }
 0xbd3   : > { %2784 = vadd.xlane.f32.xlu0 %v7293_v0  ;;  %v2855_v61 = vpop.permute.xlu0 %2854 }
 0xbd4   : > { %4887 = vmatprep.subr.bf16.mxu0 %v2855_v61 }
 0xbd5   : > { %4888 = vmatpush3.bf16.msra.mxu0 %v2855_v61  ;;  %v7918_v61 = vpack.i.bf16 %v6967_v46, %v6963_v47 }
 0xbd6   : > { %4889 = vmatprep.subr.bf16.mxu0 %v2857_v15  ;;  %v7308_v37 = vpop.eup %5538 }
 0xbd7   : > { %v7311_v16 = vpop.eup %5540 }
 0xbd9   : > { %4890 = vmatpush3.bf16.msra.mxu0 %v2857_v15  ;;  %v7919_v15 = vpack.i.bf16 %v6971_v51, %v6965_v23 }
 0xbe0   : > { %2860 = vrot.lane.b32.xlu1 %v6480_v25, %s5930_s20  ;;  %v2738_v25 = vsub.f32 %v7258_v13, %v2719_v30  ;;  %v7313_v13 = vpop.eup %5542 }
 0xbe1   : > { %v7317_v52 = vpop.eup %5544 }
 0xbe2   : > { %v2766_v59 = vmul.f32 1.442695, %v2738_v25 }
 0xbe9   : > { %2858 = vrot.lane.b32.xlu0 %v6483_v11, %s5930_s20 }
 0xbfa   : > { %v2725_v48 = vpop.xlane.xlu1 %2724 }
 0xbfb   : > { %v2741_v11 = vsub.f32 %v7265_v21, %v2725_v48 }
 0xbfd   : > { %v2772_v10 = vmul.f32 1.442695, %v2741_v11 }
 0xbfe   : > { %v2721_v14 = vpop.xlane.xlu1 %2720 }
 0xbff   : > { %v2739_v56 = vsub.f32 %v7268_v42, %v2721_v14 }
 0xc01   : > { %v2768_v62 = vmul.f32 1.442695, %v2739_v56 }
 0xc03   : > { %5546 = vpow2.f32 %v2768_v62 }
 0xc04   : > { %2790 = vadd.xlane.f32.xlu1 %v7308_v37  ;;  %5548 = vpow2.f32 %v2766_v59 }
 0xc05   : > { %5550 = vpow2.f32 %v2772_v10 }
 0xc06   : > { %5552 = vpow2.f32 %v2770_v20 }
 0xc08   : > { %2792 = vadd.xlane.f32.xlu0 %v7313_v13  ;;  %2796 = vadd.xlane.f32.xlu1 %v7311_v16 }
 0xc0c   : > { %2794 = vadd.xlane.f32.xlu0 %v7317_v52 }
 0xc0d   : > { %v7320_v21 = vpop.eup %5546 }
 0xc0e   : > { %2800 = vadd.xlane.f32.xlu1 %v7320_v21  ;;  %v7323_v42 = vpop.eup %5548 }
 0xc0f   : > { %v7326_v4 = vpop.eup %5550 }
 0xc10   : > { %2798 = vadd.xlane.f32.xlu0 %v7323_v42  ;;  %v7329_v30 = vpop.eup %5552 }
 0xc12   : > { %2804 = vadd.xlane.f32.xlu1 %v7326_v4 }
 0xc14   : > { %2802 = vadd.xlane.f32.xlu0 %v7329_v30 }
 0xc23   : > { %5112 = vrot.lane.b32.xlu1 %v7918_v61, %s5930_s20 }
 0xc27   : > { %5117 = vrot.lane.b32.xlu1 %v5116_v53, %s5929_s26 }
 0xc2a   : > { %5107 = vrot.lane.b32.xlu0 %v7919_v15, %s5930_s20 }
 0xc2b   : > { %5122 = vrot.lane.b32.xlu1 %v7920_v39, %s5929_s26 }
 0xc4c   : > { %v2779_v29 = vpop.xlane.xlu1 %2778 }
 0xc50   : > { %v2775_v19 = vpop.xlane.xlu1 %2774 }
 0xc51   : > { %5554 = vrcp.f32 %v2775_v19 }
 0xc54   : > { %v2781_v9 = vpop.xlane.xlu1 %2780 }
 0xc58   : > { %v2777_v47 = vpop.xlane.xlu1 %2776  ;;  %v2787_v46 = vpop.xlane.xlu0 %2786 }
 0xc59   : > { %5556 = vrcp.f32 %v2777_v47 }
 0xc5a   : > { %5558 = vrcp.f32 %v2781_v9 }
 0xc5b   : > { %5560 = vrcp.f32 %v2779_v29  ;;  %v5555_v23 = vpop.eup %5554 }
 0xc5c   : > { %v2783_v36 = vpop.xlane.xlu1 %2782  ;;  %v2789_v60 = vpop.xlane.xlu0 %2788  ;;  %v2807_v40 = vmul.f32 %v5555_v23, %v7275_v63 }
 0xc5d   : > { %5562 = vrcp.f32 %v2783_v36 }
 0xc60   : > { %v2785_v53 = vpop.xlane.xlu0 %2784  ;;  %v2861_v48 = vpop.permute.xlu1 %2860 }
 0xc61   : > { %5564 = vrcp.f32 %v2785_v53 }
 0xc62   : > { %5566 = vrcp.f32 %v2789_v60 }
 0xc63   : > { %v5557_v51 = vpop.eup %5556  ;;  %5568 = vrcp.f32 %v2787_v46 }
 0xc64   : > { %v5559_v50 = vpop.eup %5558  ;;  %v2859_v44 = vpop.permute.xlu0 %2858  ;;  %v2809_v45 = vmul.f32 %v5557_v51, %v7281_v5 }
 0xc65   : > { %4891 = vmatprep.subr.bf16.mxu0 %v2859_v44  ;;  %v5561_v17 = vpop.eup %5560  ;;  %v2813_v25 = vmul.f32 %v5559_v50, %v7278_v27 }
 0xc66   : > { %4892 = vmatpush3.bf16.msra.mxu0 %v2859_v44  ;;  %v2838_v58 = vpack.c.bf16 %v2809_v45, %v2807_v40  ;;  %v2811_v11 = vmul.f32 %v5561_v17, %v7271_v3 }
 0xc67   : > { %4893 = vmatprep.subr.bf16.mxu0 %v2861_v48  ;;  %v5563_v14 = vpop.eup %5562 }
 0xc68   : > { %4895 = vmatprep.mubr.bf16.mxu0 %v2838_v58  ;;  %v2839_v1 = vpack.c.bf16 %v2813_v25, %v2811_v11  ;;  %v2815_v63 = vmul.f32 %v5563_v14, %v7289_v57  ;;  %v5259_v14 = vld [vmem:[#allocation7 + $0x8] sm:$0xff]   ;;  %v5260_v11 = vld [vmem:[#allocation7 + $0x10] sm:$0xff]  }
 0xc6a   : > { %4894 = vmatpush3.bf16.msra.mxu0 %v2861_v48 }
 0xc6b   : > { %v5565_v56 = vpop.eup %5564 }
 0xc6c   : > { %v5567_v59 = vpop.eup %5566  ;;  %v2817_v5 = vmul.f32 %v5565_v56, %v7293_v0  ;;  %v5263_v56 = vld [vmem:[#allocation7 + $0x28] sm:$0xff]  }
 0xc6d   : > { %4896 = vmatmul.mubr.bf16.vlgmr.msra.gmra.mrb[80].mxu0 %v2839_v1  ;;  %v5569_v62 = vpop.eup %5568  ;;  %v2821_v20 = vmul.f32 %v5567_v59, %v7287_v22 }
 0xc6e   : > { %v2840_v10 = vpack.c.bf16 %v2817_v5, %v2815_v63  ;;  %v2819_v27 = vmul.f32 %v5569_v62, %v7283_v43 }
 0xc70   : > { %4899 = vmatprep.mubr.bf16.mxu0 %v2840_v10  ;;  %v2841_v61 = vpack.c.bf16 %v2821_v20, %v2819_v27  ;;  %v7921_v27 = vpack.i.bf16 %v6979_v31, %v6975_v2  ;;  %v7924_v2 = vpack.i.bf16 %v7212_v55, %v7206_v18  ;;  %v7926_v31 = vld [vmem:[#allocation35_spill] sm:$0xff]  ;;  %v7930_v18 = vpack.i.bf16 %v7224_v32, %v7218_v6  ;;  %v7935_v32 = vld [vmem:[#allocation37_spill] sm:$0xff] }
 0xc71   : > { %v7934_v6 = vld [vmem:[#allocation39_spill] sm:$0xff] }
 0xc75   : > { %4900 = vmatmul.mubr.bf16.gmra.mrb[84].mxu0 %v2841_v61 }
 0xc91   : > { %v2791_v15 = vpop.xlane.xlu1 %2790 }
 0xc92   : > { %5570 = vrcp.f32 %v2791_v15  ;;  %v7922_v15 = vpack.i.bf16 %v6983_v28, %v6977_v41  ;;  %v7925_v41 = vpack.i.bf16 %v6991_v38, %v6987_v35  ;;  %v7927_v28 = vld [vmem:[#allocation34_spill] sm:$0xff] }
 0xc95   : > { %v2797_v3 = vpop.xlane.xlu1 %2796  ;;  %v2793_v39 = vpop.xlane.xlu0 %2792 }
 0xc96   : > { %5572 = vrcp.f32 %v2793_v39 }
 0xc97   : > { %5574 = vrcp.f32 %v2797_v3 }
 0xc99   : > { %v2795_v29 = vpop.xlane.xlu0 %2794 }
 0xc9a   : > { %5576 = vrcp.f32 %v2795_v29 }
 0xc9b   : > { %v2801_v57 = vpop.xlane.xlu1 %2800 }
 0xc9c   : > { %5578 = vrcp.f32 %v2801_v57  ;;  %v5571_v19 = vpop.eup %5570 }
 0xc9d   : > { %v2799_v0 = vpop.xlane.xlu0 %2798  ;;  %v2823_v46 = vmul.f32 %v5571_v19, %v7308_v37  ;;  %v7928_v19 = vpack.i.bf16 %v7926_v31, %v7927_v28 }
 0xc9e   : > { %5580 = vrcp.f32 %v2799_v0  ;;  %v7923_v0 = vpack.i.bf16 %v7208_v34, %v7204_v33  ;;  %v7929_v33 = vpack.i.bf16 %v7220_v24, %v7216_v54  ;;  %v7932_v54 = vld [vmem:[#allocation36_spill] sm:$0xff] }
 0xc9f   : > { %v2805_v9 = vpop.xlane.xlu1 %2804 }
 0xca0   : > { %5582 = vrcp.f32 %v2805_v9  ;;  %v5573_v22 = vpop.eup %5572 }
 0xca1   : > { %v2803_v47 = vpop.xlane.xlu0 %2802  ;;  %v5575_v43 = vpop.eup %5574  ;;  %v2825_v36 = vmul.f32 %v5573_v22, %v7313_v13 }
 0xca2   : > { %5584 = vrcp.f32 %v2803_v47  ;;  %v2829_v51 = vmul.f32 %v5575_v43, %v7311_v16  ;;  %v5258_v16 = vld [vmem:[#allocation7] sm:$0xff]  }
 0xca3   : > { %v2842_v53 = vpack.c.bf16 %v2825_v36, %v2823_v46  ;;  %4911 = vmatprep.subr.bf16.mxu0 %v5258_v16  ;;  %v7931_v43 = vld [vmem:[#allocation38_spill] sm:$0xff]  ;;  %v7936_v36 = vpack.i.bf16 %v7934_v6, %v7935_v32  ;;  %v7946_v32 = vld [vmem:[#allocation23_spill] sm:$0xff] }
 0xca4   : > { %v5577_v60 = vpop.eup %5576  ;;  %4912 = vmatpush3.bf16.msra.mxu0 %v5258_v16  ;;  %v7933_v24 = vpack.i.bf16 %v7931_v43, %v7932_v54  ;;  %v7944_v43 = vld [vmem:[#allocation22_spill] sm:$0xff] }
 0xca5   : > { %v2827_v23 = vmul.f32 %v5577_v60, %v7317_v52  ;;  %4903 = vmatprep.mubr.bf16.mxu0 %v2842_v53  ;;  %4913 = vmatprep.subr.bf16.mxu0 %v5259_v14 }
 0xca6   : > { %v5579_v50 = vpop.eup %5578 }
 0xca7   : > { %v2843_v44 = vpack.c.bf16 %v2829_v51, %v2827_v23  ;;  %v2833_v17 = vmul.f32 %v5579_v50, %v7320_v21  ;;  %v5262_v21 = vld [vmem:[#allocation7 + $0x20] sm:$0xff]   ;;  %v7937_v50 = vpack.i.bf16 %v7232_v12, %v7228_v8 }
 0xca8   : > { %v5581_v40 = vpop.eup %5580  ;;  %4914 = vmatpush3.bf16.msra.mxu0 %v5259_v14  ;;  %v7939_v14 = vld [vmem:[#allocation21_spill] sm:$0xff] }
 0xca9   : > { %4904 = vmatmul.mubr.bf16.gmra.mrb[88].mxu0 %v2843_v44  ;;  %v2831_v45 = vmul.f32 %v5581_v40, %v7323_v42  ;;  %4915 = vmatprep.subr.bf16.mxu0 %v5260_v11  ;;  %v5261_v42 = vld [vmem:[#allocation7 + $0x18] sm:$0xff]   ;;  %v7938_v44 = vpack.i.bf16 %v7236_v26, %v7230_v7  ;;  %v5113_v40 = vpop.permute.xlu1 %5112  ;;  %v7940_v26 = vld [vmem:[#allocation19_spill] sm:$0xff] }
 0xcaa   : > { %v5583_v48 = vpop.eup %5582 }
 0xcab   : > { %v2844_v58 = vpack.c.bf16 %v2833_v17, %v2831_v45  ;;  %v2837_v25 = vmul.f32 %v5583_v48, %v7326_v4  ;;  %v5264_v4 = vld [vmem:[#allocation7 + $0x30] sm:$0xff]   ;;  %v5108_v17 = vpop.permute.xlu0 %5107 }
 0xcac   : > { %v5585_v37 = vpop.eup %5584  ;;  %4916 = vmatpush3.bf16.msra.mxu0 %v5260_v11 }
 0xcad   : > { %4907 = vmatprep.mubr.bf16.mxu0 %v2844_v58  ;;  %v2835_v13 = vmul.f32 %v5585_v37, %v7329_v30  ;;  %4917 = vmatprep.subr.bf16.mxu0 %v5261_v42  ;;  %v5265_v30 = vld [vmem:[#allocation7 + $0x38] sm:$0xff]   ;;  %v5118_v45 = vpop.permute.xlu1 %5117  ;;  %v5110_v58 = vunpack.i.h.bf16 %v5108_v17  ;;  %v5109_v37 = vunpack.i.l.bf16 %v5108_v17 }
 0xcae   : > { %v5120_v12 = vunpack.i.h.bf16 %v5118_v45  ;;  %v5119_v16 = vunpack.i.l.bf16 %v5118_v45 }
 0xcaf   : > { %v2845_v52 = vpack.c.bf16 %v2837_v25, %v2835_v13  ;;  %v5115_v13 = vunpack.i.h.bf16 %v5113_v40  ;;  %v5114_v25 = vunpack.i.l.bf16 %v5113_v40  ;;  %v3160_v7 = vsel %vm1134_vm0, %v7939_v14, %v5110_v58 }
 0xcb0   : > { %4918 = vmatpush3.bf16.msra.mxu0 %v5261_v42  ;;  %v3159_v11 = vsel %vm1134_vm0, %v7940_v26, %v5109_v37 }
 0xcb1   : > { %4908 = vmatmul.mubr.bf16.gmra.mrb[92].mxu0 %v2845_v52  ;;  %4919 = vmatprep.subr.bf16.mxu0 %v5262_v21  ;;  %v5123_v48 = vpop.permute.xlu1 %5122 }
 0xcb2   : > { %v5125_v52 = vunpack.i.h.bf16 %v5123_v48  ;;  %v5124_v8 = vunpack.i.l.bf16 %v5123_v48 }
 0xcb4   : > { %4920 = vmatpush3.bf16.msra.mxu0 %v5262_v21  ;;  %v7941_v21 = vld [vmem:[#allocation20_spill] sm:$0xff] }
 0xcb5   : > { %4921 = vmatprep.subr.bf16.mxu0 %v5263_v56 }
 0xcb8   : > { %4922 = vmatpush3.bf16.msra.mxu0 %v5263_v56  ;;  %v3162_v56 = vsel %vm1134_vm0, %v7941_v21, %v5115_v13 }
 0xcb9   : > { %4923 = vmatprep.subr.bf16.mxu0 %v5264_v4 }
 0xcbc   : > { %4924 = vmatpush3.bf16.msra.mxu0 %v5264_v4  ;;  %v7942_v4 = vld [vmem:[#allocation18_spill] sm:$0xff] }
 0xcbd   : > { %4925 = vmatprep.subr.bf16.mxu0 %v5265_v30 }
 0xcc0   : > { %4926 = vmatpush3.bf16.msra.mxu0 %v5265_v30  ;;  %v3161_v30 = vsel %vm1134_vm0, %v7942_v4, %v5114_v25 }
 0xd40   : > { %v4897_v1 = vpop.f32.mrb[80].mxu0 }
 0xd41   : > { %v2904_v59 = vpop.f32.mrb[81].mxu0 }
 0xd42   : > { %v4898_v63 = vpop.f32.mrb[82].mxu0 }
 0xd43   : > { %v5131_v5 = vpack.i.bf16 %v4898_v63, %v4897_v1  ;;  %v2907_v62 = vpop.f32.mrb[83].mxu0 }
 0xd44   : > { %v5126_v10 = vpack.i.bf16 %v2907_v62, %v2904_v59  ;;  %v3179_v62 = vsel %vm3175_vm1, %v3162_v56, %v5125_v52 }
 0xd45   : > { %5132 = vrot.lane.b32.xlu1 %v5131_v5, %s5928_s3  ;;  %v3178_v5 = vsel %vm3175_vm1, %v3161_v30, %v5124_v8 }
 0xd46   : > { %5127 = vrot.lane.b32.xlu0 %v5126_v10, %s5928_s3 }
 0xd48   : > { %v4901_v20 = vpop.f32.mrb[84].mxu0 }
 0xd49   : > { %5142 = vrot.lane.b32.xlu1 %v7921_v27, %s5930_s20  ;;  %v2920_v61 = vpop.f32.mrb[85].mxu0  ;;  %v3176_v27 = vsel %vm3175_vm1, %v3159_v11, %v5119_v16 }
 0xd4a   : > { %5137 = vrot.lane.b32.xlu0 %v7922_v15, %s5930_s20  ;;  %v4902_v3 = vpop.f32.mrb[86].mxu0 }
 0xd4b   : > { %v5161_v39 = vpack.i.bf16 %v4902_v3, %v4901_v20  ;;  %v2923_v29 = vpop.f32.mrb[87].mxu0 }
 0xd4c   : > { %v5156_v57 = vpack.i.bf16 %v2923_v29, %v2920_v61  ;;  %v3177_v61 = vsel %vm3175_vm1, %v3160_v7, %v5120_v12 }
 0xd4d   : > { %5152 = vrot.lane.b32.xlu1 %v7923_v0, %s5929_s26 }
 0xd4e   : > { %5147 = vrot.lane.b32.xlu0 %v7924_v2, %s5929_s26 }
 0xd51   : > { %5162 = vrot.lane.b32.xlu1 %v5161_v39, %s5928_s3 }
 0xd52   : > { %5157 = vrot.lane.b32.xlu0 %v5156_v57, %s5928_s3 }
 0xd55   : > { %5172 = vrot.lane.b32.xlu1 %v7925_v41, %s5930_s20 }
 0xd56   : > { %5167 = vrot.lane.b32.xlu0 %v7928_v19, %s5930_s20 }
 0xd59   : > { %5182 = vrot.lane.b32.xlu1 %v7929_v33, %s5929_s26 }
 0xd5a   : > { %5177 = vrot.lane.b32.xlu0 %v7930_v18, %s5929_s26 }
 0xd7c   : > { %v4905_v34 = vpop.f32.mrb[88].mxu0 }
 0xd7d   : > { %v2936_v55 = vpop.f32.mrb[89].mxu0 }
 0xd7e   : > { %v4906_v9 = vpop.f32.mrb[90].mxu0 }
 0xd7f   : > { %v5191_v35 = vpack.i.bf16 %v4906_v9, %v4905_v34  ;;  %v2939_v38 = vpop.f32.mrb[91].mxu0 }
 0xd80   : > { %v5186_v22 = vpack.i.bf16 %v2939_v38, %v2936_v55 }
 0xd81   : > { %5192 = vrot.lane.b32.xlu1 %v5191_v35, %s5928_s3 }
 0xd82   : > { %5187 = vrot.lane.b32.xlu0 %v5186_v22, %s5928_s3  ;;  %v7943_v22 = vld [vmem:[#allocation24_spill] sm:$0xff] }
 0xd84   : > { %v4909_v47 = vpop.f32.mrb[92].mxu0 }
 0xd85   : > { %5202 = vrot.lane.b32.xlu1 %v7933_v24, %s5930_s20  ;;  %v2952_v46 = vpop.f32.mrb[93].mxu0 }
 0xd86   : > { %5197 = vrot.lane.b32.xlu0 %v7936_v36, %s5930_s20  ;;  %v4910_v60 = vpop.f32.mrb[94].mxu0  ;;  %s7760_s20 = scalar_lea.vmem [#allocation11], %s4324_s12  ;;  %s4446_s12 = sshll.u32 %s6020_s25, 11 }
 0xd87   : > { %v5221_v53 = vpack.i.bf16 %v4910_v60, %v4909_v47  ;;  %v2955_v23 = vpop.f32.mrb[95].mxu0  ;;  %s4202_s13 = sshll.u32 %s7760_s20, 4  ;;  %s7793_s21 = scalar_lea.hbm %s7957_s14, %s4446_s12  ;;  %s7795_s13 = int_to_ptr.vmem [resolvable:$true] %s4202_s13 }
 0xd88   : > { %v5216_v51 = vpack.i.bf16 %v2955_v23, %v2952_v46  ;;  %v7945_v46 = vld [vmem:[#allocation25_spill] sm:$0xff]  ;;  %s4189_s25 = scalar_lea.sflag [#allocation4], %s6213_s15  ;;  %p5847_p12 = scmp.lt.s32.totalorder %s7795_s13, %s5845_s29 }
 0xd89   : > { %5212 = vrot.lane.b32.xlu1 %v7937_v50, %s5929_s26 }
 0xd8a   : > { %5207 = vrot.lane.b32.xlu0 %v7938_v44, %s5929_s26  ;;  %s7956_s26 = sld [smem:[#allocation42_spill]] }
 0xd8d   : > { %5222 = vrot.lane.b32.xlu1 %v5221_v53, %s5928_s3 }
 0xd8e   : > { %5217 = vrot.lane.b32.xlu0 %v5216_v51, %s5928_s3 }
 0xdb7   : > { %v5133_v42 = vpop.permute.xlu1 %5132 }
 0xdb8   : > { %v5135_v1 = vunpack.i.h.bf16 %v5133_v42  ;;  %v5134_v59 = vunpack.i.l.bf16 %v5133_v42  ;;  %v5128_v63 = vpop.permute.xlu0 %5127 }
 0xdb9   : > { %v5130_v10 = vunpack.i.h.bf16 %v5128_v63  ;;  %v5129_v20 = vunpack.i.l.bf16 %v5128_v63  ;;  %v7948_v63 = vld [vmem:[#allocation26_spill] sm:$0xff] }
 0xdba   : > { %v3196_v15 = vsel %vm3192_vm2, %v3179_v62, %v5135_v1  ;;  %v3195_v3 = vsel %vm3192_vm2, %v3178_v5, %v5134_v59  ;;  %v7947_v1 = vld [vmem:[#allocation28_spill] sm:$0xff] }
 0xdbb   : > { %v3210_v39 = vpack.c.bf16 %v3196_v15, %v3195_v3  ;;  %v5143_v29 = vpop.permute.xlu1 %5142  ;;  %v3193_v57 = vsel %vm3192_vm2, %v3176_v27, %v5129_v20  ;;  %v3194_v0 = vsel %vm3192_vm2, %v3177_v61, %v5130_v10  ;;  %v7949_v10 = vld [vmem:[#allocation29_spill] sm:$0xff]  ;;  %v7950_v27 = vld [vmem:[#allocation27_spill] sm:$0xff] }
 0xdbc   : > { %v5138_v2 = vpop.permute.xlu0 %5137  ;;  %v3209_v41 = vpack.c.bf16 %v3194_v0, %v3193_v57  ;;  %v5145_v31 = vunpack.i.h.bf16 %v5143_v29  ;;  %v5144_v28 = vunpack.i.l.bf16 %v5143_v29 }
 0xdbd   : > { %v5140_v33 = vunpack.i.h.bf16 %v5138_v2  ;;  %v5139_v18 = vunpack.i.l.bf16 %v5138_v2 }
 0xdbe   : > { %4927 = vmatprep.mubr.bf16.mxu0 %v3209_v41  ;;  %v3166_v47 = vsel %vm1134_vm0, %v7943_v22, %v5145_v31  ;;  %v3165_v54 = vsel %vm1134_vm0, %v7944_v43, %v5144_v28 }
 0xdbf   : > { %v5153_v19 = vpop.permute.xlu1 %5152  ;;  %4928 = vmatmul.mubr.bf16.vlgmr.msra.gmra.mrb[96].mxu0 %v3210_v39  ;;  %v3164_v6 = vsel %vm1134_vm0, %v7945_v46, %v5140_v33  ;;  %v3163_v36 = vsel %vm1134_vm0, %v7946_v32, %v5139_v18 }
 0xdc0   : > { %v5148_v34 = vpop.permute.xlu0 %5147  ;;  %v5155_v55 = vunpack.i.h.bf16 %v5153_v19  ;;  %v5154_v9 = vunpack.i.l.bf16 %v5153_v19 }
 0xdc1   : > { %v5150_v35 = vunpack.i.h.bf16 %v5148_v34  ;;  %v5149_v38 = vunpack.i.l.bf16 %v5148_v34 }
 0xdc2   : > { %v3182_v51 = vsel %vm3175_vm1, %v3165_v54, %v5154_v9  ;;  %v3183_v50 = vsel %vm3175_vm1, %v3166_v47, %v5155_v55 }
 0xdc3   : > { %v5163_v24 = vpop.permute.xlu1 %5162  ;;  %v3180_v45 = vsel %vm3175_vm1, %v3163_v36, %v5149_v38  ;;  %v3181_v17 = vsel %vm3175_vm1, %v3164_v6, %v5150_v35 }
 0xdc4   : > { %v5165_v60 = vunpack.i.h.bf16 %v5163_v24  ;;  %v5164_v53 = vunpack.i.l.bf16 %v5163_v24  ;;  %v5158_v23 = vpop.permute.xlu0 %5157 }
 0xdc5   : > { %v5160_v44 = vunpack.i.h.bf16 %v5158_v23  ;;  %v5159_v40 = vunpack.i.l.bf16 %v5158_v23  ;;  %v7952_v23 = vld [vmem:[#allocation30_spill] sm:$0xff] }
 0xdc6   : > { %v3199_v48 = vsel %vm3192_vm2, %v3182_v51, %v5164_v53  ;;  %v3200_v58 = vsel %vm3192_vm2, %v3183_v50, %v5165_v60  ;;  %v7951_v60 = vld [vmem:[#allocation32_spill] sm:$0xff] }
 0xdc7   : > { %v3197_v37 = vsel %vm3192_vm2, %v3180_v45, %v5159_v40  ;;  %v3198_v13 = vsel %vm3192_vm2, %v3181_v17, %v5160_v44  ;;  %v3212_v25 = vpack.c.bf16 %v3200_v58, %v3199_v48  ;;  %v5173_v8 = vpop.permute.xlu1 %5172  ;;  %v7953_v44 = vld [vmem:[#allocation33_spill] sm:$0xff]  ;;  %v7954_v45 = vld [vmem:[#allocation31_spill] sm:$0xff] }
 0xdc8   : > { %v3211_v52 = vpack.c.bf16 %v3198_v13, %v3197_v37  ;;  %v5168_v12 = vpop.permute.xlu0 %5167  ;;  %v5175_v14 = vunpack.i.h.bf16 %v5173_v8  ;;  %v5174_v7 = vunpack.i.l.bf16 %v5173_v8 }
 0xdc9   : > { %v5170_v11 = vunpack.i.h.bf16 %v5168_v12  ;;  %v5169_v42 = vunpack.i.l.bf16 %v5168_v12 }
 0xdca   : > { %4931 = vmatprep.mubr.bf16.mxu0 %v3211_v52  ;;  %v3170_v59 = vsel %vm1134_vm0, %v7947_v1, %v5175_v14  ;;  %v3169_v5 = vsel %vm1134_vm0, %v7948_v63, %v5174_v7 }
 0xdcb   : > { %4932 = vmatmul.mubr.bf16.gmra.mrb[100].mxu0 %v3212_v25  ;;  %v5183_v16 = vpop.permute.xlu1 %5182  ;;  %v3168_v20 = vsel %vm1134_vm0, %v7949_v10, %v5170_v11  ;;  %v3167_v61 = vsel %vm1134_vm0, %v7950_v27, %v5169_v42  ;;  %v5683_v27 = vld [vmem:[%s6219_s28 + $0x8] sm:$0xff] }
 0xdcc   : > { %v5178_v26 = vpop.permute.xlu0 %5177  ;;  %v5185_v21 = vunpack.i.h.bf16 %v5183_v16  ;;  %v5184_v56 = vunpack.i.l.bf16 %v5183_v16 }
 0xdcd   : > { %v5180_v4 = vunpack.i.h.bf16 %v5178_v26  ;;  %v5179_v30 = vunpack.i.l.bf16 %v5178_v26 }
 0xdce   : > { %v3186_v29 = vsel %vm3175_vm1, %v3169_v5, %v5184_v56  ;;  %v3187_v57 = vsel %vm3175_vm1, %v3170_v59, %v5185_v21  ;;  %v7487_v56 = vld [vmem:[%s7848_s5] ss:$0 sm:$0xff] }
 0xdcf   : > { %v3184_v41 = vsel %vm3175_vm1, %v3167_v61, %v5179_v30  ;;  %v3185_v31 = vsel %vm3175_vm1, %v3168_v20, %v5180_v4 }
 0xdf3   : > { %v5193_v62 = vpop.permute.xlu1 %5192 }
 0xdf4   : > { %v5195_v15 = vunpack.i.h.bf16 %v5193_v62  ;;  %v5194_v3 = vunpack.i.l.bf16 %v5193_v62  ;;  %v5188_v39 = vpop.permute.xlu0 %5187  ;;  %v5682_v62 = vld [vmem:[%s6219_s28] sm:$0xff] }
 0xdf5   : > { %v5190_v0 = vunpack.i.h.bf16 %v5188_v39  ;;  %v5189_v2 = vunpack.i.l.bf16 %v5188_v39 }
 0xdf6   : > { %v3203_v28 = vsel %vm3192_vm2, %v3186_v29, %v5194_v3  ;;  %v3204_v19 = vsel %vm3192_vm2, %v3187_v57, %v5195_v15  ;;  %v5684_v15 = vld [vmem:[%s6219_s28 + $0x10] sm:$0xff]  ;;  %v5685_v29 = vld [vmem:[%s6219_s28 + $0x18] sm:$0xff] }
 0xdf7   : > { %v5203_v33 = vpop.permute.xlu1 %5202  ;;  %v3201_v18 = vsel %vm3192_vm2, %v3184_v41, %v5189_v2  ;;  %v3202_v34 = vsel %vm3192_vm2, %v3185_v31, %v5190_v0  ;;  %v3214_v55 = vpack.c.bf16 %v3204_v19, %v3203_v28 }
 0xdf8   : > { %v5198_v9 = vpop.permute.xlu0 %5197  ;;  %v3213_v35 = vpack.c.bf16 %v3202_v34, %v3201_v18  ;;  %v5205_v38 = vunpack.i.h.bf16 %v5203_v33  ;;  %v5204_v22 = vunpack.i.l.bf16 %v5203_v33  ;;  %v5686_v33 = vld [vmem:[%s6219_s28 + $0x20] sm:$0xff] }
 0xdf9   : > { %v5200_v43 = vunpack.i.h.bf16 %v5198_v9  ;;  %v5199_v54 = vunpack.i.l.bf16 %v5198_v9  ;;  %v5687_v9 = vld [vmem:[%s6219_s28 + $0x28] sm:$0xff] }
 0xdfa   : > { %4935 = vmatprep.mubr.bf16.mxu0 %v3213_v35  ;;  %v3174_v53 = vsel %vm1134_vm0, %v7951_v60, %v5205_v38  ;;  %v3173_v51 = vsel %vm1134_vm0, %v7952_v23, %v5204_v22  ;;  %v5688_v38 = vld [vmem:[%s6219_s28 + $0x30] sm:$0xff]  ;;  %v5690_v60 = vld [vmem:[%s6219_s28 + $0x40] sm:$0xff] }
 0xdfb   : > { %v5213_v47 = vpop.permute.xlu1 %5212  ;;  %4936 = vmatmul.mubr.bf16.gmra.mrb[104].mxu0 %v3214_v55  ;;  %v3172_v40 = vsel %vm1134_vm0, %v7953_v44, %v5200_v43  ;;  %v3171_v17 = vsel %vm1134_vm0, %v7954_v45, %v5199_v54 }
 0xdfc   : > { %v5208_v24 = vpop.permute.xlu0 %5207  ;;  %v5215_v46 = vunpack.i.h.bf16 %v5213_v47  ;;  %v5214_v6 = vunpack.i.l.bf16 %v5213_v47  ;;  %v5689_v47 = vld [vmem:[%s6219_s28 + $0x38] sm:$0xff] }
 0xdfd   : > { %v5210_v32 = vunpack.i.h.bf16 %v5208_v24  ;;  %v5209_v36 = vunpack.i.l.bf16 %v5208_v24 }
 0xdfe   : > { %v3190_v13 = vsel %vm3175_vm1, %v3173_v51, %v5214_v6  ;;  %v3191_v25 = vsel %vm3175_vm1, %v3174_v53, %v5215_v46 }
 0xdff   : > { %v5223_v50 = vpop.permute.xlu1 %5222  ;;  %v3188_v12 = vsel %vm3175_vm1, %v3171_v17, %v5209_v36  ;;  %v3189_v16 = vsel %vm3175_vm1, %v3172_v40, %v5210_v32  ;;  %v5692_v40 = vld [vmem:[%s6219_s28 + $0x50] sm:$0xff]  ;;  %v5693_v17 = vld [vmem:[%s6219_s28 + $0x58] sm:$0xff] }
 0xe00   : > { %v5225_v48 = vunpack.i.h.bf16 %v5223_v50  ;;  %v5224_v58 = vunpack.i.l.bf16 %v5223_v50  ;;  %v5218_v37 = vpop.permute.xlu0 %5217  ;;  %v5691_v50 = vld [vmem:[%s6219_s28 + $0x48] sm:$0xff] }
 0xe01   : > { %v5220_v52 = vunpack.i.h.bf16 %v5218_v37  ;;  %v5219_v8 = vunpack.i.l.bf16 %v5218_v37 }
 0xe02   : > { %v3207_v14 = vsel %vm3192_vm2, %v3190_v13, %v5224_v58  ;;  %v3208_v7 = vsel %vm3192_vm2, %v3191_v25, %v5225_v48 }
 0xe03   : > { %v3205_v26 = vsel %vm3192_vm2, %v3188_v12, %v5219_v8  ;;  %v3206_v11 = vsel %vm3192_vm2, %v3189_v16, %v5220_v52  ;;  %v3216_v42 = vpack.c.bf16 %v3208_v7, %v3207_v14  ;;  %v5694_v12 = vld [vmem:[%s6219_s28 + $0x60] sm:$0xff] }
 0xe04   : > { %v3215_v21 = vpack.c.bf16 %v3206_v11, %v3205_v26  ;;  %v5695_v26 = vld [vmem:[%s6219_s28 + $0x68] sm:$0xff] }
 0xe06   : > { %4939 = vmatprep.mubr.bf16.mxu0 %v3215_v21 }
 0xe07   : > { %4940 = vmatmul.mubr.bf16.gmra.mrb[108].mxu0 %v3216_v42  ;;  %v5696_v42 = vld [vmem:[%s6219_s28 + $0x70] sm:$0xff] }
 0xe92   : > { %v4929_v4 = vpop.f32.mrb[96].mxu0 }
 0xe93   : > { %v3322_v30 = vpop.f32.mrb[97].mxu0  ;;  %v3331_v5 = vadd.f32 %v4929_v4, %v7487_v56  ;;  %v5697_v4 = vld [vmem:[%s6219_s28 + $0x78] sm:$0xff]  ;;  %s5840_s28 = scalar_lea.vmem %s7795_s13, 2048 }
 0xe94   : > { %v3323_v1 = vadd.f32 %v7487_v56, %v3322_v30  ;;  %v4930_v59 = vpop.f32.mrb[98].mxu0  ;;  %p5841_p3 = scmp.ne.s32.totalorder %s7795_s13, %s5840_s28 }
 0xe95   : > { %v3325_v63 = vpop.f32.mrb[99].mxu0  ;;  %v7500_v3 = vadd.f32 %v5684_v15, %v3331_v5  ;;  %v3334_v39 = vadd.f32 %v4930_v59, %v7487_v56  ;;  %v5268_v59 = vld [vmem:[#allocation8 + $0x4] ss:$8 sps:$4 sm:$0xff]  }
 0xe96   : > { %v7492_v10 = vadd.f32 %v5682_v62, %v3323_v1  ;;  %v3326_v20 = vadd.f32 %v7487_v56, %v3325_v63  ;;  %v5266_v1 = vld [vmem:[#allocation8] ss:$8 sps:$4 sm:$0xff]   ;;  %3739 = vmatprep.subr.bf16.mxu1 %v5268_v59  ;;  %v5269_v63 = vld [vmem:[#allocation8 + $0x10] ss:$8 sps:$4 sm:$0xff]   ;;  %p5842_p5 = pnand %p5841_p3, %p6158_p10 }
 0xe97   : > { %v7506_v57 = vadd.f32 %v5685_v29, %v3334_v39  ;;  %3740 = vmatpush1.bf16.msra.mxu1 %v5266_v1  ;;  %v5287_v1 = vld [vmem:[#allocation8 + $0x70] ss:$8 sps:$4 sm:$0xff]  }
 0xe98   : > { %v7496_v61 = vadd.f32 %v5683_v27, %v3326_v20  ;;  %3403 = vadd.xlane.f32.xlu0 %v7492_v10  ;;  %p5843_p7 = pneg %p5842_p5 }
 0xe9a   : > { %3405 = vadd.xlane.f32.xlu1 %v7496_v61 }
 0xe9c   : > { %3407 = vadd.xlane.f32.xlu0 %v7500_v3 }
 0xe9e   : > { %v4933_v0 = vpop.f32.mrb[100].mxu0 }
 0xe9f   : > { %v3338_v2 = vpop.f32.mrb[101].mxu0  ;;  %v3347_v19 = vadd.f32 %v4933_v0, %v7487_v56 }
 0xea0   : > { %v3339_v41 = vadd.f32 %v7487_v56, %v3338_v2  ;;  %v4934_v31 = vpop.f32.mrb[102].mxu0  ;;  %3409 = vadd.xlane.f32.xlu0 %v7506_v57 }
 0xea1   : > { %v3341_v28 = vpop.f32.mrb[103].mxu0  ;;  %v3350_v55 = vadd.f32 %v4934_v31, %v7487_v56  ;;  %v7521_v22 = vadd.f32 %v5688_v38, %v3347_v19 }
 0xea2   : > { %v7512_v18 = vadd.f32 %v5686_v33, %v3339_v41  ;;  %v3342_v34 = vadd.f32 %v7487_v56, %v3341_v28 }
 0xea3   : > { %v7525_v43 = vadd.f32 %v5689_v47, %v3350_v55 }
 0xea4   : > { %v7517_v35 = vadd.f32 %v5687_v9, %v3342_v34  ;;  %3411 = vadd.xlane.f32.xlu0 %v7512_v18 }
 0xea6   : > { %3413 = vadd.xlane.f32.xlu1 %v7517_v35 }
 0xea8   : > { %3415 = vadd.xlane.f32.xlu0 %v7521_v22 }
 0xeaa   : > { %3417 = vadd.xlane.f32.xlu1 %v7525_v43 }
 0xece   : > { %v4937_v54 = vpop.f32.mrb[104].mxu0 }
 0xecf   : > { %v3354_v24 = vpop.f32.mrb[105].mxu0  ;;  %v3363_v36 = vadd.f32 %v4937_v54, %v7487_v56 }
 0xed0   : > { %v3355_v46 = vadd.f32 %v7487_v56, %v3354_v24  ;;  %v4938_v6 = vpop.f32.mrb[106].mxu0 }
 0xed1   : > { %v3357_v32 = vpop.f32.mrb[107].mxu0  ;;  %v3366_v51 = vadd.f32 %v4938_v6, %v7487_v56  ;;  %v7541_v45 = vadd.f32 %v5692_v40, %v3363_v36 }
 0xed2   : > { %v7532_v53 = vadd.f32 %v5690_v60, %v3355_v46  ;;  %v3358_v23 = vadd.f32 %v7487_v56, %v3357_v32 }
 0xed3   : > { %v7545_v48 = vadd.f32 %v5693_v17, %v3366_v51 }
 0xed4   : > { %v7537_v44 = vadd.f32 %v5691_v50, %v3358_v23  ;;  %3419 = vadd.xlane.f32.xlu0 %v7532_v53 }
 0xed6   : > { %3421 = vadd.xlane.f32.xlu1 %v7537_v44 }
 0xed8   : > { %3423 = vadd.xlane.f32.xlu0 %v7541_v45 }
 0xeda   : > { %v4941_v58 = vpop.f32.mrb[108].mxu0  ;;  %3425 = vadd.xlane.f32.xlu1 %v7545_v48 }
 0xedb   : > { %v3370_v37 = vpop.f32.mrb[109].mxu0  ;;  %v3379_v8 = vadd.f32 %v4941_v58, %v7487_v56  ;;  %v5274_v58 = vld [vmem:[#allocation8 + $0x24] ss:$8 sps:$4 sm:$0xff]  }
 0xedc   : > { %v3371_v13 = vadd.f32 %v7487_v56, %v3370_v37  ;;  %v4942_v25 = vpop.f32.mrb[110].mxu0 }
 0xedd   : > { %v3373_v52 = vpop.f32.mrb[111].mxu0  ;;  %v3382_v7 = vadd.f32 %v4942_v25, %v7487_v56  ;;  %v7561_v21 = vadd.f32 %v5696_v42, %v3379_v8  ;;  %v5277_v25 = vld [vmem:[#allocation8 + $0x34] ss:$8 sps:$4 sm:$0xff]   ;;  %v5280_v8 = vld [vmem:[#allocation8 + $0x44] ss:$8 sps:$4 sm:$0xff]  }
 0xede   : > { %v7552_v16 = vadd.f32 %v5694_v12, %v3371_v13  ;;  %v3374_v14 = vadd.f32 %v7487_v56, %v3373_v52  ;;  %v5271_v56 = vld [vmem:[#allocation8 + $0x14] ss:$8 sps:$4 sm:$0xff]   ;;  %v5272_v13 = vld [vmem:[#allocation8 + $0x20] ss:$8 sps:$4 sm:$0xff]   ;;  %v5275_v52 = vld [vmem:[#allocation8 + $0x30] ss:$8 sps:$4 sm:$0xff]  }
 0xedf   : > { %v7565_v30 = vadd.f32 %v5697_v4, %v3382_v7  ;;  %3741 = vmatprep.subr.bf16.mxu1 %v5271_v56  ;;  %v5278_v12 = vld [vmem:[#allocation8 + $0x40] ss:$8 sps:$4 sm:$0xff]   ;;  %v5281_v7 = vld [vmem:[#allocation8 + $0x50] ss:$8 sps:$4 sm:$0xff]   ;;  %v5289_v4 = vld [vmem:[#allocation8 + $0x74] ss:$8 sps:$4 sm:$0xff]  }
 0xee0   : > { %v7557_v11 = vadd.f32 %v5695_v26, %v3374_v14  ;;  %3427 = vadd.xlane.f32.xlu0 %v7552_v16  ;;  %3742 = vmatpush1.bf16.msra.mxu1 %v5269_v63  ;;  %v5283_v14 = vld [vmem:[#allocation8 + $0x54] ss:$8 sps:$4 sm:$0xff]   ;;  %v5286_v26 = vld [vmem:[#allocation8 + $0x64] ss:$8 sps:$4 sm:$0xff]   ;;  %v5284_v42 = vld [vmem:[#allocation8 + $0x60] ss:$8 sps:$4 sm:$0xff]  }
 0xee1   : > { %3743 = vmatprep.subr.bf16.mxu1 %v5274_v58 }
 0xee2   : > { %3429 = vadd.xlane.f32.xlu1 %v7557_v11 }
 0xee4   : > { %3431 = vadd.xlane.f32.xlu0 %v7561_v21  ;;  %3744 = vmatpush1.bf16.msra.mxu1 %v5272_v13 }
 0xee5   : > { %3745 = vmatprep.subr.bf16.mxu1 %v5277_v25 }
 0xee6   : > { %3433 = vadd.xlane.f32.xlu1 %v7565_v30 }
 0xee8   : > { %3746 = vmatpush1.bf16.msra.mxu1 %v5275_v52 }
 0xee9   : > { %3747 = vmatprep.subr.bf16.mxu1 %v5280_v8 }
 0xeec   : > { %3748 = vmatpush1.bf16.msra.mxu1 %v5278_v12 }
 0xeed   : > { %3749 = vmatprep.subr.bf16.mxu1 %v5283_v14 }
 0xef0   : > { %3750 = vmatpush1.bf16.msra.mxu1 %v5281_v7 }
 0xef1   : > { %3751 = vmatprep.subr.bf16.mxu1 %v5286_v26 }
 0xef4   : > { %3752 = vmatpush1.bf16.msra.mxu1 %v5284_v42 }
 0xef5   : > { %3753 = vmatprep.subr.bf16.mxu1 %v5289_v4 }
 0xef8   : > { %3754 = vmatpush1.bf16.msra.mxu1 %v5287_v1 }
 0xf25   : > { %v3404_v5 = vpop.xlane.xlu0 %3403 }
 0xf26   : > { %v3435_v62 = vmul.f32 0.0078125, %v3404_v5 }
 0xf27   : > { %v3406_v20 = vpop.xlane.xlu1 %3405 }
 0xf28   : > { %v7570_v27 = vsub.f32 %v7492_v10, %v3435_v62  ;;  %v3436_v15 = vmul.f32 0.0078125, %v3406_v20 }
 0xf29   : > { %v3408_v39 = vpop.xlane.xlu0 %3407 }
 0xf2a   : > { %v7573_v29 = vsub.f32 %v7496_v61, %v3436_v15  ;;  %v3437_v0 = vmul.f32 0.0078125, %v3408_v39  ;;  %v3467_v2 = vmul.f32 %v7570_v27, %v7570_v27 }
 0xf2c   : > { %v7578_v41 = vsub.f32 %v7500_v3, %v3437_v0  ;;  %3483 = vadd.xlane.f32.xlu0 %v3467_v2  ;;  %v3468_v31 = vmul.f32 %v7573_v29, %v7573_v29 }
 0xf2d   : > { %v3410_v28 = vpop.xlane.xlu0 %3409 }
 0xf2e   : > { %v3438_v19 = vmul.f32 0.0078125, %v3410_v28  ;;  %3485 = vadd.xlane.f32.xlu1 %v3468_v31  ;;  %v3469_v33 = vmul.f32 %v7578_v41, %v7578_v41 }
 0xf30   : > { %v7585_v34 = vsub.f32 %v7506_v57, %v3438_v19  ;;  %3487 = vadd.xlane.f32.xlu0 %v3469_v33 }
 0xf31   : > { %v3412_v55 = vpop.xlane.xlu0 %3411 }
 0xf32   : > { %v3439_v9 = vmul.f32 0.0078125, %v3412_v55  ;;  %v3470_v38 = vmul.f32 %v7585_v34, %v7585_v34 }
 0xf33   : > { %v3414_v47 = vpop.xlane.xlu1 %3413 }
 0xf34   : > { %v7590_v54 = vsub.f32 %v7512_v18, %v3439_v9  ;;  %v3440_v24 = vmul.f32 0.0078125, %v3414_v47  ;;  %3489 = vadd.xlane.f32.xlu1 %v3470_v38 }
 0xf35   : > { %v3416_v46 = vpop.xlane.xlu0 %3415 }
 0xf36   : > { %v7593_v6 = vsub.f32 %v7517_v35, %v3440_v24  ;;  %v3441_v32 = vmul.f32 0.0078125, %v3416_v46  ;;  %v3471_v36 = vmul.f32 %v7590_v54, %v7590_v54 }
 0xf37   : > { %v3418_v60 = vpop.xlane.xlu1 %3417 }
 0xf38   : > { %v7598_v23 = vsub.f32 %v7521_v22, %v3441_v32  ;;  %v3442_v51 = vmul.f32 0.0078125, %v3418_v60  ;;  %3491 = vadd.xlane.f32.xlu0 %v3471_v36  ;;  %v3472_v50 = vmul.f32 %v7593_v6, %v7593_v6 }
 0xf3a   : > { %v7603_v40 = vsub.f32 %v7525_v43, %v3442_v51  ;;  %3493 = vadd.xlane.f32.xlu1 %v3472_v50  ;;  %v3473_v17 = vmul.f32 %v7598_v23, %v7598_v23 }
 0xf3c   : > { %3495 = vadd.xlane.f32.xlu0 %v3473_v17  ;;  %v3474_v37 = vmul.f32 %v7603_v40, %v7603_v40 }
 0xf3e   : > { %3497 = vadd.xlane.f32.xlu1 %v3474_v37 }
 0xf61   : > { %v3420_v59 = vpop.xlane.xlu0 %3419 }
 0xf62   : > { %v3443_v56 = vmul.f32 0.0078125, %v3420_v59 }
 0xf63   : > { %v3422_v63 = vpop.xlane.xlu1 %3421 }
 0xf64   : > { %v7610_v5 = vsub.f32 %v7532_v53, %v3443_v56  ;;  %v3444_v62 = vmul.f32 0.0078125, %v3422_v63 }
 0xf65   : > { %v3424_v20 = vpop.xlane.xlu0 %3423 }
 0xf66   : > { %v7613_v15 = vsub.f32 %v7537_v44, %v3444_v62  ;;  %v3445_v39 = vmul.f32 0.0078125, %v3424_v20  ;;  %v3475_v0 = vmul.f32 %v7610_v5, %v7610_v5 }
 0xf67   : > { %v3426_v2 = vpop.xlane.xlu1 %3425 }
 0xf68   : > { %v7618_v31 = vsub.f32 %v7541_v45, %v3445_v39  ;;  %v3446_v28 = vmul.f32 0.0078125, %v3426_v2  ;;  %3499 = vadd.xlane.f32.xlu0 %v3475_v0  ;;  %v3476_v19 = vmul.f32 %v7613_v15, %v7613_v15 }
 0xf6a   : > { %v7623_v33 = vsub.f32 %v7545_v48, %v3446_v28  ;;  %3501 = vadd.xlane.f32.xlu1 %v3476_v19  ;;  %v3477_v55 = vmul.f32 %v7618_v31, %v7618_v31  ;;  %v7652_v19 = vld [vmem:[%s7849_s6] ss:$0 sm:$0xff] }
 0xf6c   : > { %3503 = vadd.xlane.f32.xlu0 %v3477_v55  ;;  %v3478_v9 = vmul.f32 %v7623_v33, %v7623_v33 }
 0xf6d   : > { %v3428_v38 = vpop.xlane.xlu0 %3427 }
 0xf6e   : > { %v3447_v47 = vmul.f32 0.0078125, %v3428_v38  ;;  %3505 = vadd.xlane.f32.xlu1 %v3478_v9 }
 0xf6f   : > { %v3430_v24 = vpop.xlane.xlu1 %3429 }
 0xf70   : > { %v7630_v46 = vsub.f32 %v7552_v16, %v3447_v47  ;;  %v3448_v32 = vmul.f32 0.0078125, %v3430_v24 }
 0xf71   : > { %v3432_v36 = vpop.xlane.xlu0 %3431 }
 0xf72   : > { %v7633_v60 = vsub.f32 %v7557_v11, %v3448_v32  ;;  %v3449_v51 = vmul.f32 0.0078125, %v3432_v36  ;;  %v3479_v50 = vmul.f32 %v7630_v46, %v7630_v46 }
 0xf73   : > { %v3434_v17 = vpop.xlane.xlu1 %3433 }
 0xf74   : > { %v7638_v58 = vsub.f32 %v7561_v21, %v3449_v51  ;;  %v3450_v37 = vmul.f32 0.0078125, %v3434_v17  ;;  %3507 = vadd.xlane.f32.xlu0 %v3479_v50  ;;  %v3480_v13 = vmul.f32 %v7633_v60, %v7633_v60 }
 0xf76   : > { %v7643_v25 = vsub.f32 %v7565_v30, %v3450_v37  ;;  %3509 = vadd.xlane.f32.xlu1 %v3480_v13  ;;  %v3481_v52 = vmul.f32 %v7638_v58, %v7638_v58 }
 0xf78   : > { %3511 = vadd.xlane.f32.xlu0 %v3481_v52  ;;  %v3482_v8 = vmul.f32 %v7643_v25, %v7643_v25  ;;  %v7660_v52 = vld [vmem:[%s7850_s7] ss:$0 sm:$0xff] }
 0xf7a   : > { %3513 = vadd.xlane.f32.xlu1 %v3482_v8 }
 0xfb9   : > { %v3484_v12 = vpop.xlane.xlu0 %3483 }
 0xfba   : > { %v3515_v14 = vmul.f32 0.0078125, %v3484_v12 }
 0xfbb   : > { %v3486_v7 = vpop.xlane.xlu1 %3485 }
 0xfbc   : > { %v3531_v26 = vadd.f32 1e-05, %v3515_v14  ;;  %v3516_v42 = vmul.f32 0.0078125, %v3486_v7 }
 0xfbd   : > { %v3488_v4 = vpop.xlane.xlu0 %3487 }
 0xfbe   : > { %5586 = vrsqrt.f32 %v3531_v26  ;;  %v3532_v1 = vadd.f32 1e-05, %v3516_v42  ;;  %v3517_v59 = vmul.f32 0.0078125, %v3488_v4 }
 0xfc0   : > { %5588 = vrsqrt.f32 %v3532_v1  ;;  %v3533_v56 = vadd.f32 1e-05, %v3517_v59 }
 0xfc1   : > { %v3490_v63 = vpop.xlane.xlu1 %3489 }
 0xfc2   : > { %5590 = vrsqrt.f32 %v3533_v56  ;;  %v3518_v62 = vmul.f32 0.0078125, %v3490_v63 }
 0xfc4   : > { %v3534_v20 = vadd.f32 1e-05, %v3518_v62 }
 0xfc5   : > { %v3492_v39 = vpop.xlane.xlu0 %3491 }
 0xfc6   : > { %5592 = vrsqrt.f32 %v3534_v20  ;;  %v3519_v0 = vmul.f32 0.0078125, %v3492_v39 }
 0xfc7   : > { %v3494_v2 = vpop.xlane.xlu1 %3493 }
 0xfc8   : > { %v5587_v28 = vpop.eup %5586  ;;  %v3535_v55 = vadd.f32 1e-05, %v3519_v0  ;;  %v3520_v9 = vmul.f32 0.0078125, %v3494_v2 }
 0xfc9   : > { %v3563_v38 = vmul.f32 %v5587_v28, %v7570_v27  ;;  %v3496_v47 = vpop.xlane.xlu0 %3495 }
 0xfca   : > { %v5589_v24 = vpop.eup %5588  ;;  %5594 = vrsqrt.f32 %v3535_v55  ;;  %v3536_v32 = vadd.f32 1e-05, %v3520_v9  ;;  %v3521_v36 = vmul.f32 0.0078125, %v3496_v47 }
 0xfcb   : > { %v3585_v51 = vmul.f32 %v7652_v19, %v3563_v38  ;;  %v3564_v50 = vmul.f32 %v5589_v24, %v7573_v29  ;;  %v3498_v17 = vpop.xlane.xlu1 %3497 }
 0xfcc   : > { %v5591_v37 = vpop.eup %5590  ;;  %5596 = vrsqrt.f32 %v3536_v32  ;;  %v3522_v13 = vmul.f32 0.0078125, %v3498_v17  ;;  %v3537_v8 = vadd.f32 1e-05, %v3521_v36 }
 0xfcd   : > { %v3586_v27 = vmul.f32 %v7652_v19, %v3564_v50  ;;  %v3607_v14 = vadd.f32 %v7660_v52, %v3585_v51  ;;  %v3565_v26 = vmul.f32 %v5591_v37, %v7578_v41 }
 0xfce   : > { %v3538_v12 = vadd.f32 1e-05, %v3522_v13 }
 0xfcf   : > { %v3608_v7 = vadd.f32 %v7660_v52, %v3586_v27  ;;  %v3587_v1 = vmul.f32 %v7652_v19, %v3565_v26 }
 0xfd0   : > { %v5593_v29 = vpop.eup %5592  ;;  %5598 = vrsqrt.f32 %v3538_v12 }
 0xfd1   : > { %v3623_v42 = vpack.c.bf16 %v3608_v7, %v3607_v14  ;;  %v3566_v4 = vmul.f32 %v5593_v29, %v7585_v34  ;;  %5600 = vrsqrt.f32 %v3537_v8  ;;  %v3609_v20 = vadd.f32 %v7660_v52, %v3587_v1 }
 0xfd3   : > { %3772 = vmatmul.mubr.bf16.vlgmr.msra.gmra.mrb[80].mxu1 %v3623_v42  ;;  %v3588_v59 = vmul.f32 %v7652_v19, %v3566_v4 }
 0xfd4   : > { %v5595_v56 = vpop.eup %5594  ;;  %3781 = vmatprep.mubr.bf16.mxu1 %v7917_v49 }
 0xfd5   : > { %v3610_v63 = vadd.f32 %v7660_v52, %v3588_v59  ;;  %v3567_v41 = vmul.f32 %v5595_v56, %v7590_v54 }
 0xfd6   : > { %v5597_v62 = vpop.eup %5596 }
 0xfd7   : > { %v3568_v39 = vmul.f32 %v5597_v62, %v7593_v6  ;;  %v3624_v0 = vpack.c.bf16 %v3610_v63, %v3609_v20  ;;  %v3589_v28 = vmul.f32 %v7652_v19, %v3567_v41 }
 0xfd9   : > { %v3590_v34 = vmul.f32 %v7652_v19, %v3568_v39  ;;  %v3611_v47 = vadd.f32 %v7660_v52, %v3589_v28 }
 0xfda   : > { %v5599_v2 = vpop.eup %5598 }
 0xfdb   : > { %3782 = vmatmul.mubr.bf16.gmra.mrb[84].mxu1 %v3624_v0  ;;  %v5601_v55 = vpop.eup %5600  ;;  %v3612_v9 = vadd.f32 %v7660_v52, %v3590_v34  ;;  %v3570_v38 = vmul.f32 %v5599_v2, %v7603_v40 }
 0xfdc   : > { %3791 = vmatprep.mubr.bf16.mxu1 %v7917_v49  ;;  %v3569_v54 = vmul.f32 %v5601_v55, %v7598_v23 }
 0xfdd   : > { %v3625_v24 = vpack.c.bf16 %v3612_v9, %v3611_v47  ;;  %v3592_v6 = vmul.f32 %v7652_v19, %v3570_v38 }
 0xfde   : > { %v3591_v32 = vmul.f32 %v7652_v19, %v3569_v54 }
 0xfdf   : > { %v3614_v36 = vadd.f32 %v7660_v52, %v3592_v6 }
 0xfe0   : > { %v3613_v51 = vadd.f32 %v7660_v52, %v3591_v32 }
 0xfe2   : > { %v3626_v50 = vpack.c.bf16 %v3614_v36, %v3613_v51 }
 0xfe3   : > { %3792 = vmatmul.mubr.bf16.gmra.mrb[88].mxu1 %v3625_v24 }
 0xfe4   : > { %3801 = vmatprep.mubr.bf16.mxu1 %v7917_v49 }
 0xfeb   : > { %3802 = vmatmul.mubr.bf16.gmra.mrb[92].mxu1 %v3626_v50 }
 0xfec   : > { %3811 = vmatprep.mubr.bf16.mxu1 %v7917_v49 }
 0xff5   : > { %v3500_v40 = vpop.xlane.xlu0 %3499 }
 0xff6   : > { %v3523_v17 = vmul.f32 0.0078125, %v3500_v40 }
 0xff7   : > { %v3502_v37 = vpop.xlane.xlu1 %3501 }
 0xff8   : > { %v3539_v23 = vadd.f32 1e-05, %v3523_v17  ;;  %v3524_v13 = vmul.f32 0.0078125, %v3502_v37 }
 0xff9   : > { %v3504_v27 = vpop.xlane.xlu0 %3503 }
 0xffa   : > { %5602 = vrsqrt.f32 %v3539_v23  ;;  %v3540_v8 = vadd.f32 1e-05, %v3524_v13  ;;  %v3525_v12 = vmul.f32 0.0078125, %v3504_v27 }
 0xffb   : > { %v3506_v14 = vpop.xlane.xlu1 %3505 }
 0xffc   : > { %5604 = vrsqrt.f32 %v3540_v8  ;;  %v3541_v7 = vadd.f32 1e-05, %v3525_v12  ;;  %v3526_v26 = vmul.f32 0.0078125, %v3506_v14 }
 0xffe   : > { %5606 = vrsqrt.f32 %v3541_v7  ;;  %v3542_v29 = vadd.f32 1e-05, %v3526_v26 }
0x1000   : > { %5608 = vrsqrt.f32 %v3542_v29 }
0x1001   : > { %v3508_v42 = vpop.xlane.xlu0 %3507 }
0x1002   : > { %v3527_v4 = vmul.f32 0.0078125, %v3508_v42 }
0x1003   : > { %v3510_v1 = vpop.xlane.xlu1 %3509 }
0x1004   : > { %v5603_v59 = vpop.eup %5602  ;;  %v3543_v56 = vadd.f32 1e-05, %v3527_v4  ;;  %v3528_v63 = vmul.f32 0.0078125, %v3510_v1 }
0x1005   : > { %v3512_v62 = vpop.xlane.xlu0 %3511  ;;  %v3571_v20 = vmul.f32 %v5603_v59, %v7610_v5 }
0x1006   : > { %v5605_v41 = vpop.eup %5604  ;;  %5610 = vrsqrt.f32 %v3543_v56  ;;  %v3544_v39 = vadd.f32 1e-05, %v3528_v63  ;;  %v3529_v0 = vmul.f32 0.0078125, %v3512_v62  ;;  %v5290_v63 = vld [vmem:[#allocation10] sm:$0xff]   ;;  %v5293_v62 = vld [vmem:[#allocation10 + $0x18] sm:$0xff]  }
0x1007   : > { %v3514_v34 = vpop.xlane.xlu1 %3513  ;;  %v3572_v2 = vmul.f32 %v5605_v41, %v7613_v15  ;;  %v3593_v28 = vmul.f32 %v7652_v19, %v3571_v20  ;;  %4943 = vmatprep.subr.bf16.mxu0 %v5290_v63  ;;  %v5297_v20 = vld [vmem:[#allocation10 + $0x38] sm:$0xff]   ;;  %v3649_v41 = vlaneseq }
0x1008   : > { %v5607_v55 = vpop.eup %5606  ;;  %5612 = vrsqrt.f32 %v3544_v39  ;;  %v3530_v9 = vmul.f32 0.0078125, %v3514_v34  ;;  %v3545_v54 = vadd.f32 1e-05, %v3529_v0  ;;  %4944 = vmatpush3.bf16.msra.mxu0 %v5290_v63  ;;  %v3647_v34 = vld [vmem:[%s7955_s17] sm:$0x3]  ;;  %s5846_s17 = scalar_lea.vmem %s5845_s29, 4096 }
0x1009   : > { %v3594_v38 = vmul.f32 %v7652_v19, %v3572_v2  ;;  %v3615_v6 = vadd.f32 %v7660_v52, %v3593_v28  ;;  %v3573_v32 = vmul.f32 %v5607_v55, %v7618_v31  ;;  %v3650_v39 = vshrl.u32 %v3649_v41, 7  ;;  %p5848_p2 = scmp.lt.s32.totalorder %s5846_s17, %s5840_s28 }
0x100a   : > { %v5609_v47 = vpop.eup %5608  ;;  %v3546_v24 = vadd.f32 1e-05, %v3530_v9 }
0x100b   : > { %v3616_v5 = vadd.f32 %v7660_v52, %v3594_v38  ;;  %v3574_v36 = vmul.f32 %v5609_v47, %v7623_v33  ;;  %v3595_v50 = vmul.f32 %v7652_v19, %v3573_v32  ;;  %v3651_v0 = vsub.s32 0, %v3650_v39  ;;  %p5849_p1 = por %p5848_p2, %p5847_p12 }
0x100c   : > { %5614 = vrsqrt.f32 %v3546_v24 }
0x100d   : > { %v3627_v15 = vpack.c.bf16 %v3616_v5, %v3615_v6  ;;  %v3596_v51 = vmul.f32 %v7652_v19, %v3574_v36  ;;  %5616 = vrsqrt.f32 %v3545_v54  ;;  %v3617_v23 = vadd.f32 %v7660_v52, %v3595_v50  ;;  %p5850_p13 = pnand %p5849_p1, %p5843_p7 }
0x100e   : > { %v7717_v2 = vrot.slane %v3647_v34, %v3651_v0 }
0x100f   : > { %3812 = vmatmul.mubr.bf16.gmra.mrb[96].mxu1 %v3627_v15  ;;  %v3618_v17 = vadd.f32 %v7660_v52, %v3596_v51 }
0x1010   : > { %v5611_v40 = vpop.eup %5610  ;;  %3821 = vmatprep.mubr.bf16.mxu1 %v7917_v49 }
0x1011   : > { %v3575_v31 = vmul.f32 %v5611_v40, %v7630_v46  ;;  %v3628_v13 = vpack.c.bf16 %v3618_v17, %v3617_v23 }
0x1012   : > { %v5613_v37 = vpop.eup %5612 }
0x1013   : > { %v3576_v33 = vmul.f32 %v5613_v37, %v7633_v60  ;;  %v3597_v12 = vmul.f32 %v7652_v19, %v3575_v31 }
0x1015   : > { %v3598_v27 = vmul.f32 %v7652_v19, %v3576_v33  ;;  %v3619_v29 = vadd.f32 %v7660_v52, %v3597_v12 }
0x1016   : > { %v5615_v8 = vpop.eup %5614 }
0x1017   : > { %3822 = vmatmul.mubr.bf16.gmra.mrb[100].mxu1 %v3628_v13  ;;  %v5617_v14 = vpop.eup %5616  ;;  %v3620_v7 = vadd.f32 %v7660_v52, %v3598_v27  ;;  %v3578_v26 = vmul.f32 %v5615_v8, %v7643_v25  ;;  %v5291_v25 = vld [vmem:[#allocation10 + $0x8] sm:$0xff]  }
0x1018   : > { %3831 = vmatprep.mubr.bf16.mxu1 %v7917_v49  ;;  %v3577_v46 = vmul.f32 %v5617_v14, %v7638_v58  ;;  %4945 = vmatprep.subr.bf16.mxu0 %v5291_v25  ;;  %v5292_v58 = vld [vmem:[#allocation10 + $0x10] sm:$0xff]  }
0x1019   : > { %v3629_v42 = vpack.c.bf16 %v3620_v7, %v3619_v29  ;;  %v3600_v60 = vmul.f32 %v7652_v19, %v3578_v26  ;;  %4946 = vmatpush3.bf16.msra.mxu0 %v5291_v25  ;;  %v3655_v29 = vsub.s32 1, %v3650_v39 }
0x101a   : > { %v3599_v4 = vmul.f32 %v7652_v19, %v3577_v46  ;;  %4947 = vmatprep.subr.bf16.mxu0 %v5292_v58  ;;  %v5294_v19 = vld [vmem:[#allocation10 + $0x20] sm:$0xff]  }
0x101b   : > { %v3622_v1 = vadd.f32 %v7660_v52, %v3600_v60 }
0x101c   : > { %v3621_v59 = vadd.f32 %v7660_v52, %v3599_v4  ;;  %v5296_v52 = vld [vmem:[#allocation10 + $0x30] sm:$0xff]  }
0x101d   : > { %4948 = vmatpush3.bf16.msra.mxu0 %v5292_v58 }
0x101e   : > { %v3630_v56 = vpack.c.bf16 %v3622_v1, %v3621_v59  ;;  %4949 = vmatprep.subr.bf16.mxu0 %v5293_v62  ;;  %v7725_v59 = vrot.slane %v3647_v34, %v3655_v29 }
0x101f   : > { %3832 = vmatmul.mubr.bf16.gmra.mrb[104].mxu1 %v3629_v42 }
0x1020   : > { %3841 = vmatprep.mubr.bf16.mxu1 %v7917_v49  ;;  %v5295_v49 = vld [vmem:[#allocation10 + $0x28] sm:$0xff]  }
0x1021   : > { %4950 = vmatpush3.bf16.msra.mxu0 %v5293_v62 }
0x1022   : > { %4951 = vmatprep.subr.bf16.mxu0 %v5294_v19 }
0x1025   : > { %4952 = vmatpush3.bf16.msra.mxu0 %v5294_v19 }
0x1026   : > { %4953 = vmatprep.subr.bf16.mxu0 %v5295_v49 }
0x1027   : > { %3842 = vmatmul.mubr.bf16.gmra.mrb[108].mxu1 %v3630_v56 }
0x1029   : > { %4954 = vmatpush3.bf16.msra.mxu0 %v5295_v49 }
0x102a   : > { %4955 = vmatprep.subr.bf16.mxu0 %v5296_v52 }
0x102d   : > { %4956 = vmatpush3.bf16.msra.mxu0 %v5296_v52 }
0x102e   : > { %4957 = vmatprep.subr.bf16.mxu0 %v5297_v20 }
0x1031   : > { %4958 = vmatpush3.bf16.msra.mxu0 %v5297_v20 }
0x10a6   : > { %v3773_v28 = vpop.f32.mrb[80].mxu1 }
0x10a7   : > { %v3774_v55 = vadd.f32 %v3773_v28, %v7717_v2  ;;  %v3775_v9 = vpop.f32.mrb[81].mxu1 }
0x10a8   : > { %v3777_v38 = vpop.f32.mrb[82].mxu1  ;;  %v3776_v41 = vadd.f32 %v3775_v9, %v7725_v59 }
0x10a9   : > { %v4415_v47 = vmul.f32 -1.442695, %v3774_v55  ;;  %v3778_v54 = vadd.f32 %v3777_v38, %v7717_v2  ;;  %v3779_v24 = vpop.f32.mrb[83].mxu1 }
0x10ab   : > { %5618 = vpow2.f32 %v4415_v47  ;;  %v4416_v6 = vmul.f32 -1.442695, %v3778_v54  ;;  %v3780_v47 = vadd.f32 %v3779_v24, %v7725_v59 }
0x10ad   : > { %5620 = vpow2.f32 %v4416_v6 }
0x10ae   : > { %v3783_v5 = vpop.f32.mrb[84].mxu1 }
0x10af   : > { %v3784_v32 = vadd.f32 %v3783_v5, %v7717_v2  ;;  %v3785_v36 = vpop.f32.mrb[85].mxu1 }
0x10b0   : > { %v3787_v15 = vpop.f32.mrb[86].mxu1  ;;  %v3786_v9 = vadd.f32 %v3785_v36, %v7725_v59 }
0x10b1   : > { %v4417_v51 = vmul.f32 -1.442695, %v3784_v32  ;;  %v3788_v50 = vadd.f32 %v3787_v15, %v7717_v2  ;;  %v3789_v40 = vpop.f32.mrb[87].mxu1 }
0x10b3   : > { %5622 = vpow2.f32 %v4417_v51  ;;  %v4418_v17 = vmul.f32 -1.442695, %v3788_v50 }
0x10b5   : > { %v5619_v37 = vpop.eup %5618  ;;  %5624 = vpow2.f32 %v4418_v17 }
0x10b6   : > { %v3900_v23 = vadd.f32 1.0, %v5619_v37  ;;  %v3793_v31 = vpop.f32.mrb[88].mxu1 }
0x10b7   : > { %v5621_v33 = vpop.eup %5620  ;;  %v3794_v13 = vadd.f32 %v3793_v31, %v7717_v2  ;;  %v3795_v27 = vpop.f32.mrb[89].mxu1 }
0x10b8   : > { %5626 = vrcp.f32 %v3900_v23  ;;  %v3901_v8 = vadd.f32 1.0, %v5621_v33  ;;  %v3797_v12 = vpop.f32.mrb[90].mxu1 }
0x10b9   : > { %v4419_v14 = vmul.f32 -1.442695, %v3794_v13  ;;  %v3798_v7 = vadd.f32 %v3797_v12, %v7717_v2  ;;  %v3799_v26 = vpop.f32.mrb[91].mxu1 }
0x10ba   : > { %5628 = vrcp.f32 %v3901_v8 }
0x10bb   : > { %5630 = vpow2.f32 %v4419_v14  ;;  %v4420_v46 = vmul.f32 -1.442695, %v3798_v7 }
0x10bd   : > { %v5623_v42 = vpop.eup %5622  ;;  %5632 = vpow2.f32 %v4420_v46 }
0x10be   : > { %v3902_v60 = vadd.f32 1.0, %v5623_v42  ;;  %v3803_v4 = vpop.f32.mrb[92].mxu1 }
0x10bf   : > { %v5625_v1 = vpop.eup %5624  ;;  %v3804_v56 = vadd.f32 %v3803_v4, %v7717_v2  ;;  %v3805_v63 = vpop.f32.mrb[93].mxu1 }
0x10c0   : > { %5634 = vrcp.f32 %v3902_v60  ;;  %v3903_v25 = vadd.f32 1.0, %v5625_v1  ;;  %v3807_v58 = vpop.f32.mrb[94].mxu1 }
0x10c1   : > { %v4421_v62 = vmul.f32 -1.442695, %v3804_v56  ;;  %v3808_v19 = vadd.f32 %v3807_v58, %v7717_v2  ;;  %v3809_v49 = vpop.f32.mrb[95].mxu1 }
0x10c2   : > { %v5627_v52 = vpop.eup %5626  ;;  %5636 = vrcp.f32 %v3903_v25  ;;  %v3800_v25 = vadd.f32 %v3799_v26, %v7725_v59 }
0x10c3   : > { %v3948_v20 = vmul.f32 %v5627_v52, %v3774_v55  ;;  %5638 = vpow2.f32 %v4421_v62  ;;  %v4422_v39 = vmul.f32 -1.442695, %v3808_v19  ;;  %v3806_v52 = vadd.f32 %v3805_v63, %v7725_v59 }
0x10c4   : > { %v5629_v0 = vpop.eup %5628 }
0x10c5   : > { %v5631_v34 = vpop.eup %5630  ;;  %v3964_v28 = vmul.f32 %v3948_v20, %v3776_v41  ;;  %v3949_v38 = vmul.f32 %v5629_v0, %v3778_v54  ;;  %5640 = vpow2.f32 %v4422_v39  ;;  %v3790_v54 = vadd.f32 %v3789_v40, %v7725_v59 }
0x10c6   : > { %v3904_v6 = vadd.f32 1.0, %v5631_v34 }
0x10c7   : > { %v5633_v5 = vpop.eup %5632  ;;  %v3965_v15 = vmul.f32 %v3949_v38, %v3780_v47 }
0x10c8   : > { %5642 = vrcp.f32 %v3904_v6  ;;  %v3905_v51 = vadd.f32 1.0, %v5633_v5 }
0x10c9   : > { %v3980_v17 = vpack.c.bf16 %v3965_v15, %v3964_v28 }
0x10ca   : > { %v5635_v37 = vpop.eup %5634  ;;  %5644 = vrcp.f32 %v3905_v51 }
0x10cb   : > { %v3950_v55 = vmul.f32 %v5635_v37, %v3784_v32  ;;  %4959 = vmatprep.mubr.bf16.mxu0 %v3980_v17  ;;  %v3796_v32 = vadd.f32 %v3795_v27, %v7725_v59 }
0x10cc   : > { %v5637_v23 = vpop.eup %5636 }
0x10cd   : > { %v5639_v31 = vpop.eup %5638  ;;  %v3966_v33 = vmul.f32 %v3950_v55, %v3786_v9  ;;  %v3951_v8 = vmul.f32 %v5637_v23, %v3788_v50 }
0x10ce   : > { %v3906_v24 = vadd.f32 1.0, %v5639_v31 }
0x10cf   : > { %v5641_v12 = vpop.eup %5640  ;;  %v3967_v14 = vmul.f32 %v3951_v8, %v3790_v54 }
0x10d0   : > { %5646 = vrcp.f32 %v3906_v24  ;;  %v3907_v29 = vadd.f32 1.0, %v5641_v12 }
0x10d1   : > { %v3981_v46 = vpack.c.bf16 %v3967_v14, %v3966_v33 }
0x10d2   : > { %v5643_v42 = vpop.eup %5642  ;;  %5648 = vrcp.f32 %v3907_v29 }
0x10d3   : > { %v3952_v60 = vmul.f32 %v5643_v42, %v3794_v13  ;;  %4960 = vmatmul.mubr.bf16.vlgmr.msra.gmra.mrb[112].mxu0 %v3981_v46  ;;  %v3810_v13 = vadd.f32 %v3809_v49, %v7725_v59 }
0x10d4   : > { %v5645_v36 = vpop.eup %5644 }
0x10d5   : > { %v3968_v4 = vmul.f32 %v3952_v60, %v3796_v32  ;;  %v3953_v1 = vmul.f32 %v5645_v36, %v3798_v7 }
0x10d7   : > { %v3969_v50 = vmul.f32 %v3953_v1, %v3800_v25 }
0x10d9   : > { %v3982_v58 = vpack.c.bf16 %v3969_v50, %v3968_v4 }
0x10da   : > { %v5647_v40 = vpop.eup %5646 }
0x10db   : > { %v3954_v62 = vmul.f32 %v5647_v40, %v3804_v56  ;;  %4963 = vmatprep.mubr.bf16.mxu0 %v3982_v58 }
0x10dc   : > { %v5649_v20 = vpop.eup %5648 }
0x10dd   : > { %v3970_v41 = vmul.f32 %v3954_v62, %v3806_v52  ;;  %v3955_v39 = vmul.f32 %v5649_v20, %v3808_v19 }
0x10df   : > { %v3971_v0 = vmul.f32 %v3955_v39, %v3810_v13 }
0x10e1   : > { %v3983_v27 = vpack.c.bf16 %v3971_v0, %v3970_v41 }
0x10e2   : > { %v3813_v34 = vpop.f32.mrb[96].mxu1 }
0x10e3   : > { %v3814_v28 = vadd.f32 %v3813_v34, %v7717_v2  ;;  %v3815_v7 = vpop.f32.mrb[97].mxu1  ;;  %4964 = vmatmul.mubr.bf16.gmra.mrb[116].mxu0 %v3983_v27 }
0x10e4   : > { %v3817_v26 = vpop.f32.mrb[98].mxu1  ;;  %v3816_v41 = vadd.f32 %v3815_v7, %v7725_v59 }
0x10e5   : > { %v4423_v38 = vmul.f32 -1.442695, %v3814_v28  ;;  %v3818_v47 = vadd.f32 %v3817_v26, %v7717_v2  ;;  %v3819_v56 = vpop.f32.mrb[99].mxu1 }
0x10e6   : > { %v3820_v26 = vadd.f32 %v3819_v56, %v7725_v59 }
0x10e7   : > { %5650 = vpow2.f32 %v4423_v38  ;;  %v4424_v63 = vmul.f32 -1.442695, %v3818_v47 }
0x10e9   : > { %5652 = vpow2.f32 %v4424_v63 }
0x10ea   : > { %v3823_v6 = vpop.f32.mrb[100].mxu1 }
0x10eb   : > { %v3824_v19 = vadd.f32 %v3823_v6, %v7717_v2  ;;  %v3825_v5 = vpop.f32.mrb[101].mxu1 }
0x10ec   : > { %v3827_v49 = vpop.f32.mrb[102].mxu1  ;;  %v3826_v7 = vadd.f32 %v3825_v5, %v7725_v59 }
0x10ed   : > { %v4425_v15 = vmul.f32 -1.442695, %v3824_v19  ;;  %v3828_v51 = vadd.f32 %v3827_v49, %v7717_v2  ;;  %v3829_v17 = vpop.f32.mrb[103].mxu1 }
0x10ef   : > { %5654 = vpow2.f32 %v4425_v15  ;;  %v4426_v37 = vmul.f32 -1.442695, %v3828_v51 }
0x10f1   : > { %v5651_v55 = vpop.eup %5650  ;;  %5656 = vpow2.f32 %v4426_v37 }
0x10f2   : > { %v3908_v9 = vadd.f32 1.0, %v5651_v55  ;;  %v3833_v23 = vpop.f32.mrb[104].mxu1 }
0x10f3   : > { %v5653_v31 = vpop.eup %5652  ;;  %v3834_v33 = vadd.f32 %v3833_v23, %v7717_v2  ;;  %v3835_v8 = vpop.f32.mrb[105].mxu1 }
0x10f4   : > { %5658 = vrcp.f32 %v3908_v9  ;;  %v3909_v54 = vadd.f32 1.0, %v5653_v31  ;;  %v3837_v24 = vpop.f32.mrb[106].mxu1 }
0x10f5   : > { %v4427_v12 = vmul.f32 -1.442695, %v3834_v33  ;;  %v3838_v14 = vadd.f32 %v3837_v24, %v7717_v2  ;;  %v3839_v29 = vpop.f32.mrb[107].mxu1 }
0x10f6   : > { %5660 = vrcp.f32 %v3909_v54 }
0x10f7   : > { %5662 = vpow2.f32 %v4427_v12  ;;  %v4428_v46 = vmul.f32 -1.442695, %v3838_v14 }
0x10f9   : > { %v5655_v42 = vpop.eup %5654  ;;  %5664 = vpow2.f32 %v4428_v46 }
0x10fa   : > { %v3910_v60 = vadd.f32 1.0, %v5655_v42  ;;  %v3843_v32 = vpop.f32.mrb[108].mxu1 }
0x10fb   : > { %v5657_v36 = vpop.eup %5656  ;;  %v3844_v4 = vadd.f32 %v3843_v32, %v7717_v2  ;;  %v3845_v1 = vpop.f32.mrb[109].mxu1 }
0x10fc   : > { %5666 = vrcp.f32 %v3910_v60  ;;  %v3911_v25 = vadd.f32 1.0, %v5657_v36  ;;  %v3847_v50 = vpop.f32.mrb[110].mxu1  ;;  %v3840_v36 = vadd.f32 %v3839_v29, %v7725_v59 }
0x10fd   : > { %v4429_v58 = vmul.f32 -1.442695, %v3844_v4  ;;  %v3848_v40 = vadd.f32 %v3847_v50, %v7717_v2  ;;  %v3849_v62 = vpop.f32.mrb[111].mxu1 }
0x10fe   : > { %v5659_v52 = vpop.eup %5658  ;;  %5668 = vrcp.f32 %v3911_v25 }
0x10ff   : > { %v3956_v20 = vmul.f32 %v5659_v52, %v3814_v28  ;;  %5670 = vpow2.f32 %v4429_v58  ;;  %v4430_v39 = vmul.f32 -1.442695, %v3848_v40  ;;  %v3846_v58 = vadd.f32 %v3845_v1, %v7725_v59 }
0x1100   : > { %v5661_v13 = vpop.eup %5660 }
0x1101   : > { %v5663_v0 = vpop.eup %5662  ;;  %v3972_v27 = vmul.f32 %v3956_v20, %v3816_v41  ;;  %v3957_v34 = vmul.f32 %v5661_v13, %v3818_v47  ;;  %5672 = vpow2.f32 %v4430_v39  ;;  %v3830_v47 = vadd.f32 %v3829_v17, %v7725_v59 }
0x1102   : > { %v3912_v38 = vadd.f32 1.0, %v5663_v0 }
0x1103   : > { %v5665_v63 = vpop.eup %5664  ;;  %v3973_v6 = vmul.f32 %v3957_v34, %v3820_v26 }
0x1104   : > { %5674 = vrcp.f32 %v3912_v38  ;;  %v3913_v2 = vadd.f32 1.0, %v5665_v63 }
0x1105   : > { %v3984_v49 = vpack.c.bf16 %v3973_v6, %v3972_v27 }
0x1106   : > { %v5667_v15 = vpop.eup %5666  ;;  %5676 = vrcp.f32 %v3913_v2 }
0x1107   : > { %v3958_v28 = vmul.f32 %v5667_v15, %v3824_v19  ;;  %4967 = vmatprep.mubr.bf16.mxu0 %v3984_v49  ;;  %v3836_v19 = vadd.f32 %v3835_v8, %v7725_v59 }
0x1108   : > { %v5669_v37 = vpop.eup %5668 }
0x1109   : > { %v5671_v55 = vpop.eup %5670  ;;  %v3974_v9 = vmul.f32 %v3958_v28, %v3826_v7  ;;  %v3959_v23 = vmul.f32 %v5669_v37, %v3828_v51 }
0x110a   : > { %v3914_v56 = vadd.f32 1.0, %v5671_v55 }
0x110b   : > { %v5673_v31 = vpop.eup %5672  ;;  %v3975_v54 = vmul.f32 %v3959_v23, %v3830_v47 }
0x110c   : > { %5678 = vrcp.f32 %v3914_v56  ;;  %v3915_v24 = vadd.f32 1.0, %v5673_v31 }
0x110d   : > { %v3985_v12 = vpack.c.bf16 %v3975_v54, %v3974_v9 }
0x110e   : > { %v5675_v46 = vpop.eup %5674  ;;  %5680 = vrcp.f32 %v3915_v24 }
0x110f   : > { %v3960_v42 = vmul.f32 %v5675_v46, %v3834_v33  ;;  %4968 = vmatmul.mubr.bf16.gmra.mrb[120].mxu0 %v3985_v12  ;;  %v3850_v33 = vadd.f32 %v3849_v62, %v7725_v59 }
0x1110   : > { %v5677_v5 = vpop.eup %5676 }
0x1111   : > { %v3976_v60 = vmul.f32 %v3960_v42, %v3836_v19  ;;  %v3961_v32 = vmul.f32 %v5677_v5, %v3838_v14  ;;  %v4431_v14 = vld [vmem:[%s7956_s26] ss:$0 sm:$0xff] }
0x1113   : > { %v3977_v51 = vmul.f32 %v3961_v32, %v3840_v36 }
0x1115   : > { %v3986_v25 = vpack.c.bf16 %v3977_v51, %v3976_v60 }
0x1116   : > { %v5679_v17 = vpop.eup %5678 }
0x1117   : > { %v3962_v50 = vmul.f32 %v5679_v17, %v3844_v4  ;;  %4971 = vmatprep.mubr.bf16.mxu0 %v3986_v25 }
0x1118   : > { %v5681_v52 = vpop.eup %5680 }
0x1119   : > { %v3978_v20 = vmul.f32 %v3962_v50, %v3846_v58  ;;  %v3963_v41 = vmul.f32 %v5681_v52, %v3848_v40 }
0x111b   : > { %v3979_v8 = vmul.f32 %v3963_v41, %v3850_v33 }
0x111d   : > { %v3987_v39 = vpack.c.bf16 %v3979_v8, %v3978_v20 }
0x111f   : > { %4972 = vmatmul.mubr.bf16.gmra.mrb[124].mxu0 %v3987_v39 }
0x11a6   : > { %v4961_v29 = vpop.f32.mrb[112].mxu0 }
0x11a7   : > { %v4102_v13 = vadd.f32 %v4961_v29, %v4431_v14  ;;  %v4093_v0 = vpop.f32.mrb[113].mxu0 }
0x11a8   : > { %v4094_v4 = vadd.f32 %v4431_v14, %v4093_v0  ;;  %v4962_v27 = vpop.f32.mrb[114].mxu0 }
0x11a9   : > { %v4158_v1 = vadd.f32 %v4102_v13, %v7500_v3  ;;  %v4105_v34 = vadd.f32 %v4962_v27, %v4431_v14  ;;  %v4096_v26 = vpop.f32.mrb[115].mxu0 }
0x11aa   : > { %v4156_v40 = vadd.f32 %v4094_v4, %v7492_v10  ;;  %v4097_v38 = vadd.f32 %v4431_v14, %v4096_v26 }
0x11ab   : > { %4174 = vst [vmem:[%s7760_s20 + $0x10] sm:$0xff] %v4158_v1  ;;  %v4159_v59 = vadd.f32 %v4105_v34, %v7506_v57 }
0x11ac   : > { %4172 = vst [vmem:[%s7760_s20] sm:$0xff] %v4156_v40  ;;  %v4157_v3 = vadd.f32 %v4097_v38, %v7496_v61 }
0x11ad   : > { %4175 = vst [vmem:[%s7760_s20 + $0x18] sm:$0xff] %v4159_v59 }
0x11ae   : > { %4173 = vst [vmem:[%s7760_s20 + $0x8] sm:$0xff] %v4157_v3 }
0x11b6   : > { %v4965_v10 = vpop.f32.mrb[116].mxu0 }
0x11b7   : > { %v4118_v62 = vadd.f32 %v4965_v10, %v4431_v14  ;;  %v4109_v63 = vpop.f32.mrb[117].mxu0 }
0x11b8   : > { %v4110_v6 = vadd.f32 %v4431_v14, %v4109_v63  ;;  %v4966_v2 = vpop.f32.mrb[118].mxu0 }
0x11b9   : > { %v4162_v49 = vadd.f32 %v4118_v62, %v7521_v22  ;;  %v4121_v15 = vadd.f32 %v4966_v2, %v4431_v14  ;;  %v4112_v28 = vpop.f32.mrb[119].mxu0 }
0x11ba   : > { %v4160_v7 = vadd.f32 %v4110_v6, %v7512_v18  ;;  %v4113_v57 = vadd.f32 %v4431_v14, %v4112_v28 }
0x11bb   : > { %4178 = vst [vmem:[%s7760_s20 + $0x30] sm:$0xff] %v4162_v49  ;;  %v4163_v61 = vadd.f32 %v4121_v15, %v7525_v43 }
0x11bc   : > { %4176 = vst [vmem:[%s7760_s20 + $0x20] sm:$0xff] %v4160_v7  ;;  %v4161_v37 = vadd.f32 %v4113_v57, %v7517_v35 }
0x11bd   : > { %4179 = vst [vmem:[%s7760_s20 + $0x38] sm:$0xff] %v4163_v61 }
0x11be   : > { %4177 = vst [vmem:[%s7760_s20 + $0x28] sm:$0xff] %v4161_v37 }
0x11e2   : > { %v4969_v55 = vpop.f32.mrb[120].mxu0 }
0x11e3   : > { %v4134_v9 = vadd.f32 %v4969_v55, %v4431_v14  ;;  %v4125_v22 = vpop.f32.mrb[121].mxu0 }
0x11e4   : > { %v4126_v23 = vadd.f32 %v4431_v14, %v4125_v22  ;;  %v4970_v47 = vpop.f32.mrb[122].mxu0 }
0x11e5   : > { %v4166_v18 = vadd.f32 %v4134_v9, %v7541_v45  ;;  %v4137_v56 = vadd.f32 %v4970_v47, %v4431_v14  ;;  %v4128_v31 = vpop.f32.mrb[123].mxu0 }
0x11e6   : > { %v4164_v43 = vadd.f32 %v4126_v23, %v7532_v53  ;;  %v4129_v54 = vadd.f32 %v4431_v14, %v4128_v31 }
0x11e7   : > { %4182 = vst [vmem:[%s7760_s20 + $0x50] sm:$0xff] %v4166_v18  ;;  %v4167_v35 = vadd.f32 %v4137_v56, %v7545_v48 }
0x11e8   : > { %4180 = vst [vmem:[%s7760_s20 + $0x40] sm:$0xff] %v4164_v43  ;;  %v4165_v24 = vadd.f32 %v4129_v54, %v7537_v44 }
0x11e9   : > { %4183 = vst [vmem:[%s7760_s20 + $0x58] sm:$0xff] %v4167_v35 }
0x11ea   : > { %4181 = vst [vmem:[%s7760_s20 + $0x48] sm:$0xff] %v4165_v24 }
0x11f2   : > { %v4973_v12 = vpop.f32.mrb[124].mxu0 }
0x11f3   : > { %v4150_v46 = vadd.f32 %v4973_v12, %v4431_v14  ;;  %v4141_v45 = vpop.f32.mrb[125].mxu0 }
0x11f4   : > { %v4142_v42 = vadd.f32 %v4431_v14, %v4141_v45  ;;  %v4974_v19 = vpop.f32.mrb[126].mxu0 }
0x11f5   : > { %v4170_v53 = vadd.f32 %v4150_v46, %v7561_v21  ;;  %v4153_v48 = vadd.f32 %v4974_v19, %v4431_v14  ;;  %v4144_v5 = vpop.f32.mrb[127].mxu0 }
0x11f6   : > { %v4168_v44 = vadd.f32 %v4142_v42, %v7552_v16  ;;  %v4145_v60 = vadd.f32 %v4431_v14, %v4144_v5 }
0x11f7   : > { %4186 = vst [vmem:[%s7760_s20 + $0x70] sm:$0xff] %v4170_v53  ;;  %v4171_v32 = vadd.f32 %v4153_v48, %v7565_v30 }
0x11f8   : > { %4184 = vst [vmem:[%s7760_s20 + $0x60] sm:$0xff] %v4168_v44  ;;  %v4169_v21 = vadd.f32 %v4145_v60, %v7557_v11 }
0x11f9   : > { %4187 = vst [vmem:[%s7760_s20 + $0x78] sm:$0xff] %v4171_v32 }
0x11fa   : > { %4185 = vst [vmem:[%s7760_s20 + $0x68] sm:$0xff] %v4169_v21 }
0x11fb   : > { %5853 = shalt.err (!%p5850_p13)
}
0x11fc   : > { %s5854_s16 = scalar_lea.hbm %s7793_s21, 2048  ;;  %s5858_s20 = scalar_lea.hbm %s7957_s14, 4096 }
0x11fd   : > { %p5855_p9 = scmp.ne.s32.totalorder %s7793_s21, %s5854_s16  ;;  %p5859_p4 = scmp.lt.u32.totalorder %s7793_s21, %s7957_s14 }
0x11fe   : > { %p5860_p8 = scmp.lt.u32.totalorder %s5858_s20, %s5854_s16  ;;  %p5862_p3 = scmp.lt.u32.totalorder %s5854_s16, %s7793_s21 }
0x11ff   : > { %p5856_p0 = pnand %p5855_p9, %p6158_p10 }
0x1200   : > { %p5861_p6 = por %p5860_p8, %p5859_p4 }
0x1201   : > { %p5857_p11 = pneg %p5856_p0 }
0x1202   : > { %p5863_p5 = por %p5862_p3, %p5861_p6 }
0x1204   : > { %p5864_p7 = pnand %p5863_p5, %p5857_p11 }
0x1206   : > { %5867 = shalt.err (!%p5864_p7)
}
0x1207   : > { %s5932_s18 = smov 128   ;;  %s5933_s28 = smov 8  }
0x1208   : > { %5025 = dma.vmem_to_hbm [thread:$0]  (%p6158_p10), %s7795_s13, 2048, %s7793_s21, %s4189_s25, %s5932_s18, %s5932_s18, %s5933_s28  }
0x1209 PF: > { %s7958_s27 = sld [smem:[#allocation16_spill]]  ;;  %s7959_s29 = sld [smem:[#allocation17_spill]] }
0x120a   : > { %p7961_p2 = scmp.ge.s32.totalorder %s5914_s24, 2 }
0x120f   : > { %s4217_s17 = sand.u32 1, %s7958_s27   ;;  %p7960_p12 = scmp.ne.s32.totalorder %s7959_s29, 0 }
0x1210   : > { %s4218_s16 = scalar_lea.sflag [#allocation4], %s4217_s17 }
0x1211   : > { %p5045_p1 = pnand %p7961_p2, %p7960_p12 }
0x1213   : > { %5897 = dma.done.wait (!%p5045_p1), %s4218_s16, 2048  }
0x1214   : > { %5899 = vsyncadd (!%p5045_p1), %s4218_s16, 4294965248  ;;  %p27_p13 = scmp.ge.s32.totalorder %s6148_s30, 4   ;;  %s7962_s21 = smov %s5906_s22 }
0x1215   : > { %s7963_s22 = smov %s5910_s23  ;;  %s7964_s23 = smov %s6164_s19 }
0x1216   : > { %s7965_s24 = smov %s6148_s30  ;;  %29 = sbr.rel (!%p27_p13) target bundleno = 12 (0xc), region = 129 }
0x121d   :  { %4223 = vsyncpa [#allocation3], 1 }
0x121e   :  { %4225 = vsyncpa [#allocation3 + $0x1], 1 }
0x121f   :  { %4226 = vsyncpa [#allocation6], 1 }
0x1220   :  { %4227 = vsyncpa [#allocation9], 1 }
0x1221   :  { %4228 = vsyncpa [#allocation4], 1 }
0x1222   :  { %4230 = vsyncpa [#allocation4 + $0x1], 1 }

</bundles_post_ra>
